<compile_context>
chip_gen: v6e
topology: v6e:2x2x1
jax: 0.10.0
libtpu: 0.0.40
codegen_flags: <defaults>
</compile_context>

<pallas_src>
import functools

import jax
import jax.numpy as jnp
from jax.experimental import pallas as pl
from jax.experimental.pallas import tpu as pltpu

EPS = 1e-5  # PyTorch BatchNorm2d default eps


# -----------------------------------------------------------------------------
# Static configuration
# -----------------------------------------------------------------------------
def make_cfg(B, H, W, first_expansion_channels, mid_channels, kernel_sizes):
    C1 = first_expansion_channels
    C2 = len(kernel_sizes) * mid_channels
    K1, K3 = 3, 3                                  # first / last conv are 3x3
    KM = max(max(kernel_sizes), K1)                # merged mid-conv footprint
    PAD = max(KM // 2, 1)                          # common zero-ring width
    # roll-as-tap is only safe if the zero ring covers every tap offset
    assert K1 // 2 <= PAD and K3 // 2 <= PAD and KM // 2 <= PAD
    HP, WP = H + 2 * PAD, W + 2 * PAD
    R = B * HP * WP
    RP = ((R + 127) // 128) * 128                  # lane-pad to multiple of 128
    T1, T2, T3 = K1 * K1, KM * KM, K3 * K3
    S1 = ((T1 + 7) // 8) * 8                       # stage-1 stacked rows (>=T1, mult of 8)
    SROWS = max(T2 * C1, T3 * C2, S1)              # shared stacked-taps scratch rows
    SPROWS = max(C1, C2, 8)
    return dict(B=B, H=H, W=W, C1=C1, C2=C2, CM=mid_channels,
                K1=K1, K3=K3, KM=KM, PAD=PAD, HP=HP, WP=WP, R=R, RP=RP,
                T1=T1, T2=T2, T3=T3, S1=S1, SROWS=SROWS, SPROWS=SPROWS)


# -----------------------------------------------------------------------------
# The single fused kernel
# -----------------------------------------------------------------------------
def _fused_policy_kernel(cfg, x_ref, mask_ref, maskc_ref, w1_ref, w2_ref, w3_ref,
                         sp_ref, out_ref, stk_ref):
    C1, C2 = cfg["C1"], cfg["C2"]
    K1, K3, KM = cfg["K1"], cfg["K3"], cfg["KM"]
    T1, T2, T3, S1 = cfg["T1"], cfg["T2"], cfg["T3"], cfg["S1"]
    WP, RP = cfg["WP"], cfg["RP"]
    inv_n = 1.0 / float(cfg["B"] * cfg["H"] * cfg["W"])

    mask = mask_ref[...]          # (1, RP): 1.0 on valid pixels, 0.0 on ring + lane tail

    # obs normalization; mask keeps ring + tail at exactly 0 (== conv zero pad)
    x0 = ((x_ref[...] - 3.5) * (1.0 / 4.5)) * mask             # (1, RP)

    def tap(v, dy, dx):
        # tap(v)[:, r] == v[:, r + dy*WP + dx] for every valid (non-ring) r.
        # Circular wrap-around / tail reads only corrupt ring or tail positions,
        # which every stage re-zeroes via '* mask'.
        off = dy * WP + dx
        if off == 0:
            return v
        return pltpu.roll(v, shift=(-off) % RP, axis=1)

    def bn_relu(y, c, gcol, bcol):
        # Training-mode BatchNorm2d over the B*H*W valid positions (biased var),
        # one-pass stats.  The two cross-lane reductions run on the MXU
        # (matvec vs. the masked ones column) to keep the XLU free for the rolls.
        s1 = jnp.dot(y, maskc_ref[...], preferred_element_type=jnp.float32)      # (c, 1)
        s2 = jnp.dot(y * y, maskc_ref[...], preferred_element_type=jnp.float32)  # (c, 1)
        mean = s1 * inv_n
        var = jnp.maximum(s2 * inv_n - mean * mean, 0.0)       # f32 cancellation guard
        g = sp_ref[0:c, gcol:gcol + 1]                         # (c, 1)
        b = sp_ref[0:c, bcol:bcol + 1]                         # (c, 1)
        scale = g * jax.lax.rsqrt(var + EPS)
        shift = b - mean * scale
        # trailing '* mask' restores the zero ring for the next stage's taps
        return jnp.maximum(y * scale + shift, 0.0) * mask      # (c, RP)

    # ---- stage 1: first_conv (3x3, 1 -> C1) + bn1 + relu --------------------
    # 9 rolled copies of x0 stacked into scratch rows 0..8, rows 9..S1-1 zeroed,
    # then one (C1,S1)@(S1,RP) matmul.  Conv bias omitted: a per-channel constant
    # cancels exactly under batch-statistics BatchNorm.
    p1 = K1 // 2
    t = 0
    for dy in range(-p1, p1 + 1):
        for dx in range(-p1, p1 + 1):
            stk_ref[t:t + 1, :] = tap(x0, dy, dx)
            t += 1
    if S1 > T1:
        stk_ref[T1:S1, :] = jnp.zeros((S1 - T1, RP), jnp.float32)
    y1 = jnp.dot(w1_ref[...], stk_ref[0:S1, :],
                 preferred_element_type=jnp.float32)            # (C1, RP)
    h1 = bn_relu(y1, C1, 0, 1)

    # ---- stage 2: all mid_convs merged into one KMxKM-footprint conv --------
    # 25 rolled copies of h1 stored at sublane offset t*C1, then ONE
    # (C2, T2*C1) @ (T2*C1, RP) matmul (K=200, no serial accumulation).
    pm = KM // 2
    t = 0
    for dy in range(-pm, pm + 1):
        for dx in range(-pm, pm + 1):
            stk_ref[t * C1:(t + 1) * C1, :] = tap(h1, dy, dx)
            t += 1
    y2 = jnp.dot(w2_ref[...], stk_ref[0:T2 * C1, :],
                 preferred_element_type=jnp.float32)            # (C2, RP)
    h2 = bn_relu(y2, C2, 2, 3)

    # ---- stage 3: last_conv (3x3, C2 -> 1) + bias ----------------------------
    # 9 rolled copies of h2 at sublane offset t*C2 (reusing the same scratch
    # rows), one (8, T3*C2) @ (T3*C2, RP) matmul; only output row 0 is real
    # (rows 1..7 of the weight slab are zero).
    p3 = K3 // 2
    t = 0
    for dy in range(-p3, p3 + 1):
        for dx in range(-p3, p3 + 1):
            stk_ref[t * C2:(t + 1) * C2, :] = tap(h2, dy, dx)
            t += 1
    acc3 = jnp.dot(w3_ref[...], stk_ref[0:T3 * C2, :],
                   preferred_element_type=jnp.float32)          # (8, RP)
    out_ref[...] = acc3[0:1, :] + sp_ref[0:1, 4:5]              # + last_conv bias


# -----------------------------------------------------------------------------
# Deterministic synthetic parameters as ready-to-use MXU slabs
# -----------------------------------------------------------------------------
def init_params(key, in_channels, first_expansion_channels, mid_channels,
                kernel_sizes, cfg):
    assert in_channels == 1  # one_hotify=False path
    C1, C2, CM = cfg["C1"], cfg["C2"], cfg["CM"]
    K1, K3, KM = cfg["K1"], cfg["K3"], cfg["KM"]
    T1, T2, T3, S1 = cfg["T1"], cfg["T2"], cfg["T3"], cfg["S1"]
    NB = len(kernel_sizes)
    keys = jax.random.split(key, 7 + NB)

    def conv_w(k, ks, cin, cout):
        fan_in = ks * ks * cin
        return (jax.random.normal(k, (ks, ks, cin, cout), jnp.float32)
                / jnp.sqrt(float(fan_in)))

    w1 = conv_w(keys[0], K1, 1, C1)                # (3,3,1,C1)  [ky,kx,ci,co]
    w3 = conv_w(keys[1], K3, C2, 1)                # (3,3,C2,1)
    bn1_g = 1.0 + 0.1 * jax.random.normal(keys[2], (C1,), jnp.float32)
    bn1_b = 0.1 * jax.random.normal(keys[3], (C1,), jnp.float32)
    bn2_g = 1.0 + 0.1 * jax.random.normal(keys[4], (C2,), jnp.float32)
    bn2_b = 0.1 * jax.random.normal(keys[5], (C2,), jnp.float32)
    b_last = 0.1 * jax.random.normal(keys[6], (), jnp.float32)

    # Merged mid-conv weight, tap-major: w2m[t, ci, co], t = (dy+pm)*KM + (dx+pm).
    # Smaller kernels are zero-embedded into the KMxKM footprint; output-channel
    # blocks follow the torch.cat(dim=1) branch order.
    w2m = jnp.zeros((T2, C1, C2), jnp.float32)
    for bi, ks in enumerate(kernel_sizes):
        wb = conv_w(keys[7 + bi], ks, C1, CM)      # (ks,ks,C1,CM)
        off = (KM - ks) // 2
        for ky in range(ks):
            for kx in range(ks):
                t = (ky + off) * KM + (kx + off)
                w2m = w2m.at[t, :, bi * CM:(bi + 1) * CM].set(wb[ky, kx])

    # Ready-to-use, lane-contiguous MXU weight slabs (no in-kernel slicing).
    w1_slab = jnp.zeros((C1, S1), jnp.float32).at[:, 0:T1].set(w1.reshape(T1, C1).T)
    w2_slab = jnp.transpose(w2m, (2, 0, 1)).reshape(C2, T2 * C1)   # [co, t*C1+ci]
    w3_slab = jnp.zeros((8, T3 * C2), jnp.float32).at[0, :].set(w3.reshape(T3 * C2))

    # Small per-channel table: col0/1 = bn1 gamma/beta, col2/3 = bn2 gamma/beta,
    # col4 row0 = last_conv bias.  first/mid conv biases intentionally absent:
    # a per-channel constant cancels exactly under batch-statistics BatchNorm.
    sp = jnp.zeros((cfg["SPROWS"], 8), jnp.float32)
    sp = sp.at[0:C1, 0].set(bn1_g).at[0:C1, 1].set(bn1_b)
    sp = sp.at[0:C2, 2].set(bn2_g).at[0:C2, 3].set(bn2_b)
    sp = sp.at[0, 4].set(b_last)
    return (w1_slab, w2_slab, w3_slab, sp)


# -----------------------------------------------------------------------------
# Forward / act (ConvActorPolicy.forward, one_hotify=False)
# -----------------------------------------------------------------------------
def conv_actor_policy_forward(obs, params, cfg):
    B, H, W = cfg["B"], cfg["H"], cfg["W"]
    PAD, HP, WP = cfg["PAD"], cfg["HP"], cfg["WP"]
    R, RP = cfg["R"], cfg["RP"]
    w1_slab, w2_slab, w3_slab, sp = params

    pad_widths = ((0, 0), (PAD, PAD), (PAD, PAD))
    x_flat = jnp.pad(obs.astype(jnp.float32), pad_widths).reshape(1, R)
    x_flat = jnp.pad(x_flat, ((0, 0), (0, RP - R)))                 # lane tail -> 0
    mask = jnp.pad(jnp.ones((B, H, W), jnp.float32), pad_widths).reshape(1, R)
    mask = jnp.pad(mask, ((0, 0), (0, RP - R)))
    mask_col = mask.reshape(RP, 1)          # masked ones column for MXU BN reductions

    y3 = pl.pallas_call(
        functools.partial(_fused_policy_kernel, cfg),
        out_shape=jax.ShapeDtypeStruct((1, RP), jnp.float32),
        in_specs=[pl.BlockSpec(memory_space=pltpu.MemorySpace.VMEM)] * 7,
        out_specs=pl.BlockSpec(memory_space=pltpu.MemorySpace.VMEM),
        scratch_shapes=[pltpu.VMEM((cfg["SROWS"], RP), jnp.float32)],
    )(x_flat, mask, mask_col, w1_slab, w2_slab, w3_slab, sp)

    # Valid-pixel extraction + flatten(1): free reshape/slice glue in XLA.
    logits = (y3[:, 0:R].reshape(B, HP, WP)[:, PAD:PAD + H, PAD:PAD + W]
              .reshape(B, H * W))
    return logits


def act(obs, params, cfg):
    logits = conv_actor_policy_forward(obs, params, cfg)
    actions = jnp.argmax(logits, axis=-1)   # mirrors Policy.act (plain-JAX glue)
    return actions, logits


if __name__ == "__main__":
    key = jax.random.PRNGKey(0)
    k_obs, k_par = jax.random.split(key)

    B, H, W = 2, 16, 16
    first_expansion_channels = 8
    mid_channels = 8
    kernel_sizes = [3, 5]

    cfg = make_cfg(B, H, W, first_expansion_channels, mid_channels, kernel_sizes)
    obs = jax.random.randint(k_obs, (B, H, W), 0, 13).astype(jnp.float32)
    params = init_params(k_par, 1, first_expansion_channels, mid_channels,
                         kernel_sizes, cfg)

    # TODO(synk): the one_hotify=True embedding branch and the Adam optimizer
    # state are not part of the exercised forward path and are not implemented.
    act_fn = jax.jit(functools.partial(act, cfg=cfg))
    actions, logits = act_fn(obs, params)
    logits = jax.block_until_ready(logits)
    actions = jax.block_until_ready(actions)

    assert logits.shape == (B, H * W)
    assert actions.shape == (B,)
    assert bool(jnp.all(jnp.isfinite(logits)))
    print("KERNEL_OK")
</pallas_src>

<mosaic_0001>
module attributes {stable_mosaic.version = 11 : i64} {
  func.func @_fused_policy_kernel(%arg0: memref<1x896xf32, #tpu.memory_space<vmem>>, %arg1: memref<1x896xf32, #tpu.memory_space<vmem>>, %arg2: memref<896x1xf32, #tpu.memory_space<vmem>>, %arg3: memref<8x16xf32, #tpu.memory_space<vmem>>, %arg4: memref<16x200xf32, #tpu.memory_space<vmem>>, %arg5: memref<8x144xf32, #tpu.memory_space<vmem>>, %arg6: memref<16x8xf32, #tpu.memory_space<vmem>>, %arg7: memref<1x896xf32, #tpu.memory_space<vmem>>, %arg8: memref<200x896xf32, #tpu.memory_space<vmem>>) attributes {dimension_semantics = [], scalar_prefetch = 0 : i64, scratch_operands = 1 : i64, tpu.core_type = #tpu.core_type<tc>} {
    %c0 = arith.constant 0 : index
    %c0_0 = arith.constant 0 : index
    %0 = vector.load %arg1[%c0, %c0_0] : memref<1x896xf32, #tpu.memory_space<vmem>>, vector<1x896xf32>
    %c0_1 = arith.constant 0 : index
    %c0_2 = arith.constant 0 : index
    %1 = vector.load %arg0[%c0_1, %c0_2] : memref<1x896xf32, #tpu.memory_space<vmem>>, vector<1x896xf32>
    %cst = arith.constant 3.500000e+00 : f32
    %2 = vector.broadcast %cst : f32 to vector<1x896xf32>
    %3 = arith.subf %1, %2 : vector<1x896xf32>
    %cst_3 = arith.constant 0.222222224 : f32
    %4 = vector.broadcast %cst_3 : f32 to vector<1x896xf32>
    %5 = arith.mulf %3, %4 : vector<1x896xf32>
    %6 = arith.mulf %5, %0 : vector<1x896xf32>
    %c21_i32 = arith.constant 21 : i32
    %7 = tpu.dynamic_rotate %6 by %c21_i32 dim 1 : vector<1x896xf32>, i32 -> vector<1x896xf32>
    %c0_4 = arith.constant 0 : index
    %c0_5 = arith.constant 0 : index
    %8 = vector.load %arg8[%c0_4, %c0_5] : memref<200x896xf32, #tpu.memory_space<vmem>>, vector<1x896xf32>
    tpu.vector_store %arg8[%c0_4, %c0_5], %7 {strides = array<i32>} : memref<200x896xf32, #tpu.memory_space<vmem>>, vector<1x896xf32>,
    %c20_i32 = arith.constant 20 : i32
    %9 = tpu.dynamic_rotate %6 by %c20_i32 dim 1 : vector<1x896xf32>, i32 -> vector<1x896xf32>
    %c1 = arith.constant 1 : index
    %c0_6 = arith.constant 0 : index
    %10 = vector.load %arg8[%c1, %c0_6] : memref<200x896xf32, #tpu.memory_space<vmem>>, vector<1x896xf32>
    tpu.vector_store %arg8[%c1, %c0_6], %9 {strides = array<i32>} : memref<200x896xf32, #tpu.memory_space<vmem>>, vector<1x896xf32>,
    %c19_i32 = arith.constant 19 : i32
    %11 = tpu.dynamic_rotate %6 by %c19_i32 dim 1 : vector<1x896xf32>, i32 -> vector<1x896xf32>
    %c2 = arith.constant 2 : index
    %c0_7 = arith.constant 0 : index
    %12 = vector.load %arg8[%c2, %c0_7] : memref<200x896xf32, #tpu.memory_space<vmem>>, vector<1x896xf32>
    tpu.vector_store %arg8[%c2, %c0_7], %11 {strides = array<i32>} : memref<200x896xf32, #tpu.memory_space<vmem>>, vector<1x896xf32>,
    %c1_i32 = arith.constant 1 : i32
    %13 = tpu.dynamic_rotate %6 by %c1_i32 dim 1 : vector<1x896xf32>, i32 -> vector<1x896xf32>
    %c3 = arith.constant 3 : index
    %c0_8 = arith.constant 0 : index
    %14 = vector.load %arg8[%c3, %c0_8] : memref<200x896xf32, #tpu.memory_space<vmem>>, vector<1x896xf32>
    tpu.vector_store %arg8[%c3, %c0_8], %13 {strides = array<i32>} : memref<200x896xf32, #tpu.memory_space<vmem>>, vector<1x896xf32>,
    %c4 = arith.constant 4 : index
    %c0_9 = arith.constant 0 : index
    %15 = vector.load %arg8[%c4, %c0_9] : memref<200x896xf32, #tpu.memory_space<vmem>>, vector<1x896xf32>
    tpu.vector_store %arg8[%c4, %c0_9], %6 {strides = array<i32>} : memref<200x896xf32, #tpu.memory_space<vmem>>, vector<1x896xf32>,
    %c895_i32 = arith.constant 895 : i32
    %16 = tpu.dynamic_rotate %6 by %c895_i32 dim 1 : vector<1x896xf32>, i32 -> vector<1x896xf32>
    %c5 = arith.constant 5 : index
    %c0_10 = arith.constant 0 : index
    %17 = vector.load %arg8[%c5, %c0_10] : memref<200x896xf32, #tpu.memory_space<vmem>>, vector<1x896xf32>
    tpu.vector_store %arg8[%c5, %c0_10], %16 {strides = array<i32>} : memref<200x896xf32, #tpu.memory_space<vmem>>, vector<1x896xf32>,
    %c877_i32 = arith.constant 877 : i32
    %18 = tpu.dynamic_rotate %6 by %c877_i32 dim 1 : vector<1x896xf32>, i32 -> vector<1x896xf32>
    %c6 = arith.constant 6 : index
    %c0_11 = arith.constant 0 : index
    %19 = vector.load %arg8[%c6, %c0_11] : memref<200x896xf32, #tpu.memory_space<vmem>>, vector<1x896xf32>
    tpu.vector_store %arg8[%c6, %c0_11], %18 {strides = array<i32>} : memref<200x896xf32, #tpu.memory_space<vmem>>, vector<1x896xf32>,
    %c876_i32 = arith.constant 876 : i32
    %20 = tpu.dynamic_rotate %6 by %c876_i32 dim 1 : vector<1x896xf32>, i32 -> vector<1x896xf32>
    %c7 = arith.constant 7 : index
    %c0_12 = arith.constant 0 : index
    %21 = vector.load %arg8[%c7, %c0_12] : memref<200x896xf32, #tpu.memory_space<vmem>>, vector<1x896xf32>
    tpu.vector_store %arg8[%c7, %c0_12], %20 {strides = array<i32>} : memref<200x896xf32, #tpu.memory_space<vmem>>, vector<1x896xf32>,
    %c875_i32 = arith.constant 875 : i32
    %22 = tpu.dynamic_rotate %6 by %c875_i32 dim 1 : vector<1x896xf32>, i32 -> vector<1x896xf32>
    %c8 = arith.constant 8 : index
    %c0_13 = arith.constant 0 : index
    %23 = vector.load %arg8[%c8, %c0_13] : memref<200x896xf32, #tpu.memory_space<vmem>>, vector<1x896xf32>
    tpu.vector_store %arg8[%c8, %c0_13], %22 {strides = array<i32>} : memref<200x896xf32, #tpu.memory_space<vmem>>, vector<1x896xf32>,
    %cst_14 = arith.constant 0.000000e+00 : f32
    %24 = vector.broadcast %cst_14 : f32 to vector<7x896xf32>
    %c9 = arith.constant 9 : index
    %c0_15 = arith.constant 0 : index
    %25 = vector.load %arg8[%c9, %c0_15] : memref<200x896xf32, #tpu.memory_space<vmem>>, vector<7x896xf32>
    tpu.vector_store %arg8[%c9, %c0_15], %24 {strides = array<i32>} : memref<200x896xf32, #tpu.memory_space<vmem>>, vector<7x896xf32>,
    %c0_16 = arith.constant 0 : index
    %c0_17 = arith.constant 0 : index
    %26 = vector.load %arg3[%c0_16, %c0_17] : memref<8x16xf32, #tpu.memory_space<vmem>>, vector<8x16xf32>
    %c0_18 = arith.constant 0 : index
    %c0_19 = arith.constant 0 : index
    %27 = vector.load %arg8[%c0_18, %c0_19] : memref<200x896xf32, #tpu.memory_space<vmem>>, vector<16x896xf32>
    %cst_20 = arith.constant dense<0.000000e+00> : vector<8x896xf32>
    %28 = tpu.matmul %26, %27, %cst_20 {dimension_numbers = #tpu.dot_dimension_numbers<[1], [0], [0], [1], [0, 0, 1, 1], [], []>} : vector<8x16xf32>, vector<16x896xf32>, vector<8x896xf32> -> vector<8x896xf32>
    %c0_21 = arith.constant 0 : index
    %c0_22 = arith.constant 0 : index
    %29 = vector.load %arg2[%c0_21, %c0_22] : memref<896x1xf32, #tpu.memory_space<vmem>>, vector<896x1xf32>
    %cst_23 = arith.constant dense<0.000000e+00> : vector<8x1xf32>
    %30 = tpu.matmul %28, %29, %cst_23 {dimension_numbers = #tpu.dot_dimension_numbers<[1], [0], [0], [1], [0, 0, 1, 1], [], []>} : vector<8x896xf32>, vector<896x1xf32>, vector<8x1xf32> -> vector<8x1xf32>
    %31 = arith.mulf %28, %28 : vector<8x896xf32>
    %c0_24 = arith.constant 0 : index
    %c0_25 = arith.constant 0 : index
    %32 = vector.load %arg2[%c0_24, %c0_25] : memref<896x1xf32, #tpu.memory_space<vmem>>, vector<896x1xf32>
    %cst_26 = arith.constant dense<0.000000e+00> : vector<8x1xf32>
    %33 = tpu.matmul %31, %32, %cst_26 {dimension_numbers = #tpu.dot_dimension_numbers<[1], [0], [0], [1], [0, 0, 1, 1], [], []>} : vector<8x896xf32>, vector<896x1xf32>, vector<8x1xf32> -> vector<8x1xf32>
    %cst_27 = arith.constant 0.001953125 : f32
    %34 = vector.broadcast %cst_27 : f32 to vector<8x1xf32>
    %35 = arith.mulf %30, %34 : vector<8x1xf32>
    %cst_28 = arith.constant 0.001953125 : f32
    %36 = vector.broadcast %cst_28 : f32 to vector<8x1xf32>
    %37 = arith.mulf %33, %36 : vector<8x1xf32>
    %38 = arith.mulf %35, %35 : vector<8x1xf32>
    %39 = arith.subf %37, %38 : vector<8x1xf32>
    %cst_29 = arith.constant 0.000000e+00 : f32
    %40 = vector.broadcast %cst_29 : f32 to vector<8x1xf32>
    %41 = arith.maximumf %39, %40 : vector<8x1xf32>
    %c0_30 = arith.constant 0 : index
    %c0_31 = arith.constant 0 : index
    %42 = vector.load %arg6[%c0_30, %c0_31] : memref<16x8xf32, #tpu.memory_space<vmem>>, vector<8x1xf32>
    %c0_32 = arith.constant 0 : index
    %c1_33 = arith.constant 1 : index
    %43 = vector.load %arg6[%c0_32, %c1_33] : memref<16x8xf32, #tpu.memory_space<vmem>>, vector<8x1xf32>
    %cst_34 = arith.constant 9.99999974E-6 : f32
    %44 = vector.broadcast %cst_34 : f32 to vector<8x1xf32>
    %45 = arith.addf %41, %44 : vector<8x1xf32>
    %46 = math.rsqrt %45 : vector<8x1xf32>
    %47 = arith.mulf %42, %46 : vector<8x1xf32>
    %48 = arith.mulf %35, %47 : vector<8x1xf32>
    %49 = arith.subf %43, %48 : vector<8x1xf32>
    %50 = vector.broadcast %47 : vector<8x1xf32> to vector<8x896xf32>
    %51 = arith.mulf %28, %50 : vector<8x896xf32>
    %52 = vector.broadcast %49 : vector<8x1xf32> to vector<8x896xf32>
    %53 = arith.addf %51, %52 : vector<8x896xf32>
    %cst_35 = arith.constant 0.000000e+00 : f32
    %54 = vector.broadcast %cst_35 : f32 to vector<8x896xf32>
    %55 = arith.maximumf %53, %54 : vector<8x896xf32>
    %56 = vector.broadcast %0 : vector<1x896xf32> to vector<8x896xf32>
    %57 = arith.mulf %55, %56 : vector<8x896xf32>
    %c42_i32 = arith.constant 42 : i32
    %58 = tpu.dynamic_rotate %57 by %c42_i32 dim 1 : vector<8x896xf32>, i32 -> vector<8x896xf32>
    %c0_36 = arith.constant 0 : index
    %c0_37 = arith.constant 0 : index
    %59 = vector.load %arg8[%c0_36, %c0_37] : memref<200x896xf32, #tpu.memory_space<vmem>>, vector<8x896xf32>
    tpu.vector_store %arg8[%c0_36, %c0_37], %58 {strides = array<i32>} : memref<200x896xf32, #tpu.memory_space<vmem>>, vector<8x896xf32>,
    %c41_i32 = arith.constant 41 : i32
    %60 = tpu.dynamic_rotate %57 by %c41_i32 dim 1 : vector<8x896xf32>, i32 -> vector<8x896xf32>
    %c8_38 = arith.constant 8 : index
    %c0_39 = arith.constant 0 : index
    %61 = vector.load %arg8[%c8_38, %c0_39] : memref<200x896xf32, #tpu.memory_space<vmem>>, vector<8x896xf32>
    tpu.vector_store %arg8[%c8_38, %c0_39], %60 {strides = array<i32>} : memref<200x896xf32, #tpu.memory_space<vmem>>, vector<8x896xf32>,
    %c40_i32 = arith.constant 40 : i32
    %62 = tpu.dynamic_rotate %57 by %c40_i32 dim 1 : vector<8x896xf32>, i32 -> vector<8x896xf32>
    %c16 = arith.constant 16 : index
    %c0_40 = arith.constant 0 : index
    %63 = vector.load %arg8[%c16, %c0_40] : memref<200x896xf32, #tpu.memory_space<vmem>>, vector<8x896xf32>
    tpu.vector_store %arg8[%c16, %c0_40], %62 {strides = array<i32>} : memref<200x896xf32, #tpu.memory_space<vmem>>, vector<8x896xf32>,
    %c39_i32 = arith.constant 39 : i32
    %64 = tpu.dynamic_rotate %57 by %c39_i32 dim 1 : vector<8x896xf32>, i32 -> vector<8x896xf32>
    %c24 = arith.constant 24 : index
    %c0_41 = arith.constant 0 : index
    %65 = vector.load %arg8[%c24, %c0_41] : memref<200x896xf32, #tpu.memory_space<vmem>>, vector<8x896xf32>
    tpu.vector_store %arg8[%c24, %c0_41], %64 {strides = array<i32>} : memref<200x896xf32, #tpu.memory_space<vmem>>, vector<8x896xf32>,
    %c38_i32 = arith.constant 38 : i32
    %66 = tpu.dynamic_rotate %57 by %c38_i32 dim 1 : vector<8x896xf32>, i32 -> vector<8x896xf32>
    %c32 = arith.constant 32 : index
    %c0_42 = arith.constant 0 : index
    %67 = vector.load %arg8[%c32, %c0_42] : memref<200x896xf32, #tpu.memory_space<vmem>>, vector<8x896xf32>
    tpu.vector_store %arg8[%c32, %c0_42], %66 {strides = array<i32>} : memref<200x896xf32, #tpu.memory_space<vmem>>, vector<8x896xf32>,
    %c22_i32 = arith.constant 22 : i32
    %68 = tpu.dynamic_rotate %57 by %c22_i32 dim 1 : vector<8x896xf32>, i32 -> vector<8x896xf32>
    %c40 = arith.constant 40 : index
    %c0_43 = arith.constant 0 : index
    %69 = vector.load %arg8[%c40, %c0_43] : memref<200x896xf32, #tpu.memory_space<vmem>>, vector<8x896xf32>
    tpu.vector_store %arg8[%c40, %c0_43], %68 {strides = array<i32>} : memref<200x896xf32, #tpu.memory_space<vmem>>, vector<8x896xf32>,
    %c21_i32_44 = arith.constant 21 : i32
    %70 = tpu.dynamic_rotate %57 by %c21_i32_44 dim 1 : vector<8x896xf32>, i32 -> vector<8x896xf32>
    %c48 = arith.constant 48 : index
    %c0_45 = arith.constant 0 : index
    %71 = vector.load %arg8[%c48, %c0_45] : memref<200x896xf32, #tpu.memory_space<vmem>>, vector<8x896xf32>
    tpu.vector_store %arg8[%c48, %c0_45], %70 {strides = array<i32>} : memref<200x896xf32, #tpu.memory_space<vmem>>, vector<8x896xf32>,
    %c20_i32_46 = arith.constant 20 : i32
    %72 = tpu.dynamic_rotate %57 by %c20_i32_46 dim 1 : vector<8x896xf32>, i32 -> vector<8x896xf32>
    %c56 = arith.constant 56 : index
    %c0_47 = arith.constant 0 : index
    %73 = vector.load %arg8[%c56, %c0_47] : memref<200x896xf32, #tpu.memory_space<vmem>>, vector<8x896xf32>
    tpu.vector_store %arg8[%c56, %c0_47], %72 {strides = array<i32>} : memref<200x896xf32, #tpu.memory_space<vmem>>, vector<8x896xf32>,
    %c19_i32_48 = arith.constant 19 : i32
    %74 = tpu.dynamic_rotate %57 by %c19_i32_48 dim 1 : vector<8x896xf32>, i32 -> vector<8x896xf32>
    %c64 = arith.constant 64 : index
    %c0_49 = arith.constant 0 : index
    %75 = vector.load %arg8[%c64, %c0_49] : memref<200x896xf32, #tpu.memory_space<vmem>>, vector<8x896xf32>
    tpu.vector_store %arg8[%c64, %c0_49], %74 {strides = array<i32>} : memref<200x896xf32, #tpu.memory_space<vmem>>, vector<8x896xf32>,
    %c18_i32 = arith.constant 18 : i32
    %76 = tpu.dynamic_rotate %57 by %c18_i32 dim 1 : vector<8x896xf32>, i32 -> vector<8x896xf32>
    %c72 = arith.constant 72 : index
    %c0_50 = arith.constant 0 : index
    %77 = vector.load %arg8[%c72, %c0_50] : memref<200x896xf32, #tpu.memory_space<vmem>>, vector<8x896xf32>
    tpu.vector_store %arg8[%c72, %c0_50], %76 {strides = array<i32>} : memref<200x896xf32, #tpu.memory_space<vmem>>, vector<8x896xf32>,
    %c2_i32 = arith.constant 2 : i32
    %78 = tpu.dynamic_rotate %57 by %c2_i32 dim 1 : vector<8x896xf32>, i32 -> vector<8x896xf32>
    %c80 = arith.constant 80 : index
    %c0_51 = arith.constant 0 : index
    %79 = vector.load %arg8[%c80, %c0_51] : memref<200x896xf32, #tpu.memory_space<vmem>>, vector<8x896xf32>
    tpu.vector_store %arg8[%c80, %c0_51], %78 {strides = array<i32>} : memref<200x896xf32, #tpu.memory_space<vmem>>, vector<8x896xf32>,
    %c1_i32_52 = arith.constant 1 : i32
    %80 = tpu.dynamic_rotate %57 by %c1_i32_52 dim 1 : vector<8x896xf32>, i32 -> vector<8x896xf32>
    %c88 = arith.constant 88 : index
    %c0_53 = arith.constant 0 : index
    %81 = vector.load %arg8[%c88, %c0_53] : memref<200x896xf32, #tpu.memory_space<vmem>>, vector<8x896xf32>
    tpu.vector_store %arg8[%c88, %c0_53], %80 {strides = array<i32>} : memref<200x896xf32, #tpu.memory_space<vmem>>, vector<8x896xf32>,
    %c96 = arith.constant 96 : index
    %c0_54 = arith.constant 0 : index
    %82 = vector.load %arg8[%c96, %c0_54] : memref<200x896xf32, #tpu.memory_space<vmem>>, vector<8x896xf32>
    tpu.vector_store %arg8[%c96, %c0_54], %57 {strides = array<i32>} : memref<200x896xf32, #tpu.memory_space<vmem>>, vector<8x896xf32>,
    %c895_i32_55 = arith.constant 895 : i32
    %83 = tpu.dynamic_rotate %57 by %c895_i32_55 dim 1 : vector<8x896xf32>, i32 -> vector<8x896xf32>
    %c104 = arith.constant 104 : index
    %c0_56 = arith.constant 0 : index
    %84 = vector.load %arg8[%c104, %c0_56] : memref<200x896xf32, #tpu.memory_space<vmem>>, vector<8x896xf32>
    tpu.vector_store %arg8[%c104, %c0_56], %83 {strides = array<i32>} : memref<200x896xf32, #tpu.memory_space<vmem>>, vector<8x896xf32>,
    %c894_i32 = arith.constant 894 : i32
    %85 = tpu.dynamic_rotate %57 by %c894_i32 dim 1 : vector<8x896xf32>, i32 -> vector<8x896xf32>
    %c112 = arith.constant 112 : index
    %c0_57 = arith.constant 0 : index
    %86 = vector.load %arg8[%c112, %c0_57] : memref<200x896xf32, #tpu.memory_space<vmem>>, vector<8x896xf32>
    tpu.vector_store %arg8[%c112, %c0_57], %85 {strides = array<i32>} : memref<200x896xf32, #tpu.memory_space<vmem>>, vector<8x896xf32>,
    %c878_i32 = arith.constant 878 : i32
    %87 = tpu.dynamic_rotate %57 by %c878_i32 dim 1 : vector<8x896xf32>, i32 -> vector<8x896xf32>
    %c120 = arith.constant 120 : index
    %c0_58 = arith.constant 0 : index
    %88 = vector.load %arg8[%c120, %c0_58] : memref<200x896xf32, #tpu.memory_space<vmem>>, vector<8x896xf32>
    tpu.vector_store %arg8[%c120, %c0_58], %87 {strides = array<i32>} : memref<200x896xf32, #tpu.memory_space<vmem>>, vector<8x896xf32>,
    %c877_i32_59 = arith.constant 877 : i32
    %89 = tpu.dynamic_rotate %57 by %c877_i32_59 dim 1 : vector<8x896xf32>, i32 -> vector<8x896xf32>
    %c128 = arith.constant 128 : index
    %c0_60 = arith.constant 0 : index
    %90 = vector.load %arg8[%c128, %c0_60] : memref<200x896xf32, #tpu.memory_space<vmem>>, vector<8x896xf32>
    tpu.vector_store %arg8[%c128, %c0_60], %89 {strides = array<i32>} : memref<200x896xf32, #tpu.memory_space<vmem>>, vector<8x896xf32>,
    %c876_i32_61 = arith.constant 876 : i32
    %91 = tpu.dynamic_rotate %57 by %c876_i32_61 dim 1 : vector<8x896xf32>, i32 -> vector<8x896xf32>
    %c136 = arith.constant 136 : index
    %c0_62 = arith.constant 0 : index
    %92 = vector.load %arg8[%c136, %c0_62] : memref<200x896xf32, #tpu.memory_space<vmem>>, vector<8x896xf32>
    tpu.vector_store %arg8[%c136, %c0_62], %91 {strides = array<i32>} : memref<200x896xf32, #tpu.memory_space<vmem>>, vector<8x896xf32>,
    %c875_i32_63 = arith.constant 875 : i32
    %93 = tpu.dynamic_rotate %57 by %c875_i32_63 dim 1 : vector<8x896xf32>, i32 -> vector<8x896xf32>
    %c144 = arith.constant 144 : index
    %c0_64 = arith.constant 0 : index
    %94 = vector.load %arg8[%c144, %c0_64] : memref<200x896xf32, #tpu.memory_space<vmem>>, vector<8x896xf32>
    tpu.vector_store %arg8[%c144, %c0_64], %93 {strides = array<i32>} : memref<200x896xf32, #tpu.memory_space<vmem>>, vector<8x896xf32>,
    %c874_i32 = arith.constant 874 : i32
    %95 = tpu.dynamic_rotate %57 by %c874_i32 dim 1 : vector<8x896xf32>, i32 -> vector<8x896xf32>
    %c152 = arith.constant 152 : index
    %c0_65 = arith.constant 0 : index
    %96 = vector.load %arg8[%c152, %c0_65] : memref<200x896xf32, #tpu.memory_space<vmem>>, vector<8x896xf32>
    tpu.vector_store %arg8[%c152, %c0_65], %95 {strides = array<i32>} : memref<200x896xf32, #tpu.memory_space<vmem>>, vector<8x896xf32>,
    %c858_i32 = arith.constant 858 : i32
    %97 = tpu.dynamic_rotate %57 by %c858_i32 dim 1 : vector<8x896xf32>, i32 -> vector<8x896xf32>
    %c160 = arith.constant 160 : index
    %c0_66 = arith.constant 0 : index
    %98 = vector.load %arg8[%c160, %c0_66] : memref<200x896xf32, #tpu.memory_space<vmem>>, vector<8x896xf32>
    tpu.vector_store %arg8[%c160, %c0_66], %97 {strides = array<i32>} : memref<200x896xf32, #tpu.memory_space<vmem>>, vector<8x896xf32>,
    %c857_i32 = arith.constant 857 : i32
    %99 = tpu.dynamic_rotate %57 by %c857_i32 dim 1 : vector<8x896xf32>, i32 -> vector<8x896xf32>
    %c168 = arith.constant 168 : index
    %c0_67 = arith.constant 0 : index
    %100 = vector.load %arg8[%c168, %c0_67] : memref<200x896xf32, #tpu.memory_space<vmem>>, vector<8x896xf32>
    tpu.vector_store %arg8[%c168, %c0_67], %99 {strides = array<i32>} : memref<200x896xf32, #tpu.memory_space<vmem>>, vector<8x896xf32>,
    %c856_i32 = arith.constant 856 : i32
    %101 = tpu.dynamic_rotate %57 by %c856_i32 dim 1 : vector<8x896xf32>, i32 -> vector<8x896xf32>
    %c176 = arith.constant 176 : index
    %c0_68 = arith.constant 0 : index
    %102 = vector.load %arg8[%c176, %c0_68] : memref<200x896xf32, #tpu.memory_space<vmem>>, vector<8x896xf32>
    tpu.vector_store %arg8[%c176, %c0_68], %101 {strides = array<i32>} : memref<200x896xf32, #tpu.memory_space<vmem>>, vector<8x896xf32>,
    %c855_i32 = arith.constant 855 : i32
    %103 = tpu.dynamic_rotate %57 by %c855_i32 dim 1 : vector<8x896xf32>, i32 -> vector<8x896xf32>
    %c184 = arith.constant 184 : index
    %c0_69 = arith.constant 0 : index
    %104 = vector.load %arg8[%c184, %c0_69] : memref<200x896xf32, #tpu.memory_space<vmem>>, vector<8x896xf32>
    tpu.vector_store %arg8[%c184, %c0_69], %103 {strides = array<i32>} : memref<200x896xf32, #tpu.memory_space<vmem>>, vector<8x896xf32>,
    %c854_i32 = arith.constant 854 : i32
    %105 = tpu.dynamic_rotate %57 by %c854_i32 dim 1 : vector<8x896xf32>, i32 -> vector<8x896xf32>
    %c192 = arith.constant 192 : index
    %c0_70 = arith.constant 0 : index
    %106 = vector.load %arg8[%c192, %c0_70] : memref<200x896xf32, #tpu.memory_space<vmem>>, vector<8x896xf32>
    tpu.vector_store %arg8[%c192, %c0_70], %105 {strides = array<i32>} : memref<200x896xf32, #tpu.memory_space<vmem>>, vector<8x896xf32>,
    %c0_71 = arith.constant 0 : index
    %c0_72 = arith.constant 0 : index
    %107 = vector.load %arg4[%c0_71, %c0_72] : memref<16x200xf32, #tpu.memory_space<vmem>>, vector<16x200xf32>
    %c0_73 = arith.constant 0 : index
    %c0_74 = arith.constant 0 : index
    %108 = vector.load %arg8[%c0_73, %c0_74] : memref<200x896xf32, #tpu.memory_space<vmem>>, vector<200x896xf32>
    %cst_75 = arith.constant dense<0.000000e+00> : vector<16x896xf32>
    %109 = tpu.matmul %107, %108, %cst_75 {dimension_numbers = #tpu.dot_dimension_numbers<[1], [0], [0], [1], [0, 0, 1, 1], [], []>} : vector<16x200xf32>, vector<200x896xf32>, vector<16x896xf32> -> vector<16x896xf32>
    %c0_76 = arith.constant 0 : index
    %c0_77 = arith.constant 0 : index
    %110 = vector.load %arg2[%c0_76, %c0_77] : memref<896x1xf32, #tpu.memory_space<vmem>>, vector<896x1xf32>
    %cst_78 = arith.constant dense<0.000000e+00> : vector<16x1xf32>
    %111 = tpu.matmul %109, %110, %cst_78 {dimension_numbers = #tpu.dot_dimension_numbers<[1], [0], [0], [1], [0, 0, 1, 1], [], []>} : vector<16x896xf32>, vector<896x1xf32>, vector<16x1xf32> -> vector<16x1xf32>
    %112 = arith.mulf %109, %109 : vector<16x896xf32>
    %c0_79 = arith.constant 0 : index
    %c0_80 = arith.constant 0 : index
    %113 = vector.load %arg2[%c0_79, %c0_80] : memref<896x1xf32, #tpu.memory_space<vmem>>, vector<896x1xf32>
    %cst_81 = arith.constant dense<0.000000e+00> : vector<16x1xf32>
    %114 = tpu.matmul %112, %113, %cst_81 {dimension_numbers = #tpu.dot_dimension_numbers<[1], [0], [0], [1], [0, 0, 1, 1], [], []>} : vector<16x896xf32>, vector<896x1xf32>, vector<16x1xf32> -> vector<16x1xf32>
    %cst_82 = arith.constant 0.001953125 : f32
    %115 = vector.broadcast %cst_82 : f32 to vector<16x1xf32>
    %116 = arith.mulf %111, %115 : vector<16x1xf32>
    %cst_83 = arith.constant 0.001953125 : f32
    %117 = vector.broadcast %cst_83 : f32 to vector<16x1xf32>
    %118 = arith.mulf %114, %117 : vector<16x1xf32>
    %119 = arith.mulf %116, %116 : vector<16x1xf32>
    %120 = arith.subf %118, %119 : vector<16x1xf32>
    %cst_84 = arith.constant 0.000000e+00 : f32
    %121 = vector.broadcast %cst_84 : f32 to vector<16x1xf32>
    %122 = arith.maximumf %120, %121 : vector<16x1xf32>
    %c0_85 = arith.constant 0 : index
    %c2_86 = arith.constant 2 : index
    %123 = vector.load %arg6[%c0_85, %c2_86] : memref<16x8xf32, #tpu.memory_space<vmem>>, vector<16x1xf32>
    %c0_87 = arith.constant 0 : index
    %c3_88 = arith.constant 3 : index
    %124 = vector.load %arg6[%c0_87, %c3_88] : memref<16x8xf32, #tpu.memory_space<vmem>>, vector<16x1xf32>
    %cst_89 = arith.constant 9.99999974E-6 : f32
    %125 = vector.broadcast %cst_89 : f32 to vector<16x1xf32>
    %126 = arith.addf %122, %125 : vector<16x1xf32>
    %127 = math.rsqrt %126 : vector<16x1xf32>
    %128 = arith.mulf %123, %127 : vector<16x1xf32>
    %129 = arith.mulf %116, %128 : vector<16x1xf32>
    %130 = arith.subf %124, %129 : vector<16x1xf32>
    %131 = vector.broadcast %128 : vector<16x1xf32> to vector<16x896xf32>
    %132 = arith.mulf %109, %131 : vector<16x896xf32>
    %133 = vector.broadcast %130 : vector<16x1xf32> to vector<16x896xf32>
    %134 = arith.addf %132, %133 : vector<16x896xf32>
    %cst_90 = arith.constant 0.000000e+00 : f32
    %135 = vector.broadcast %cst_90 : f32 to vector<16x896xf32>
    %136 = arith.maximumf %134, %135 : vector<16x896xf32>
    %137 = vector.broadcast %0 : vector<1x896xf32> to vector<16x896xf32>
    %138 = arith.mulf %136, %137 : vector<16x896xf32>
    %c21_i32_91 = arith.constant 21 : i32
    %139 = tpu.dynamic_rotate %138 by %c21_i32_91 dim 1 : vector<16x896xf32>, i32 -> vector<16x896xf32>
    %c0_92 = arith.constant 0 : index
    %c0_93 = arith.constant 0 : index
    %140 = vector.load %arg8[%c0_92, %c0_93] : memref<200x896xf32, #tpu.memory_space<vmem>>, vector<16x896xf32>
    tpu.vector_store %arg8[%c0_92, %c0_93], %139 {strides = array<i32>} : memref<200x896xf32, #tpu.memory_space<vmem>>, vector<16x896xf32>,
    %c20_i32_94 = arith.constant 20 : i32
    %141 = tpu.dynamic_rotate %138 by %c20_i32_94 dim 1 : vector<16x896xf32>, i32 -> vector<16x896xf32>
    %c16_95 = arith.constant 16 : index
    %c0_96 = arith.constant 0 : index
    %142 = vector.load %arg8[%c16_95, %c0_96] : memref<200x896xf32, #tpu.memory_space<vmem>>, vector<16x896xf32>
    tpu.vector_store %arg8[%c16_95, %c0_96], %141 {strides = array<i32>} : memref<200x896xf32, #tpu.memory_space<vmem>>, vector<16x896xf32>,
    %c19_i32_97 = arith.constant 19 : i32
    %143 = tpu.dynamic_rotate %138 by %c19_i32_97 dim 1 : vector<16x896xf32>, i32 -> vector<16x896xf32>
    %c32_98 = arith.constant 32 : index
    %c0_99 = arith.constant 0 : index
    %144 = vector.load %arg8[%c32_98, %c0_99] : memref<200x896xf32, #tpu.memory_space<vmem>>, vector<16x896xf32>
    tpu.vector_store %arg8[%c32_98, %c0_99], %143 {strides = array<i32>} : memref<200x896xf32, #tpu.memory_space<vmem>>, vector<16x896xf32>,
    %c1_i32_100 = arith.constant 1 : i32
    %145 = tpu.dynamic_rotate %138 by %c1_i32_100 dim 1 : vector<16x896xf32>, i32 -> vector<16x896xf32>
    %c48_101 = arith.constant 48 : index
    %c0_102 = arith.constant 0 : index
    %146 = vector.load %arg8[%c48_101, %c0_102] : memref<200x896xf32, #tpu.memory_space<vmem>>, vector<16x896xf32>
    tpu.vector_store %arg8[%c48_101, %c0_102], %145 {strides = array<i32>} : memref<200x896xf32, #tpu.memory_space<vmem>>, vector<16x896xf32>,
    %c64_103 = arith.constant 64 : index
    %c0_104 = arith.constant 0 : index
    %147 = vector.load %arg8[%c64_103, %c0_104] : memref<200x896xf32, #tpu.memory_space<vmem>>, vector<16x896xf32>
    tpu.vector_store %arg8[%c64_103, %c0_104], %138 {strides = array<i32>} : memref<200x896xf32, #tpu.memory_space<vmem>>, vector<16x896xf32>,
    %c895_i32_105 = arith.constant 895 : i32
    %148 = tpu.dynamic_rotate %138 by %c895_i32_105 dim 1 : vector<16x896xf32>, i32 -> vector<16x896xf32>
    %c80_106 = arith.constant 80 : index
    %c0_107 = arith.constant 0 : index
    %149 = vector.load %arg8[%c80_106, %c0_107] : memref<200x896xf32, #tpu.memory_space<vmem>>, vector<16x896xf32>
    tpu.vector_store %arg8[%c80_106, %c0_107], %148 {strides = array<i32>} : memref<200x896xf32, #tpu.memory_space<vmem>>, vector<16x896xf32>,
    %c877_i32_108 = arith.constant 877 : i32
    %150 = tpu.dynamic_rotate %138 by %c877_i32_108 dim 1 : vector<16x896xf32>, i32 -> vector<16x896xf32>
    %c96_109 = arith.constant 96 : index
    %c0_110 = arith.constant 0 : index
    %151 = vector.load %arg8[%c96_109, %c0_110] : memref<200x896xf32, #tpu.memory_space<vmem>>, vector<16x896xf32>
    tpu.vector_store %arg8[%c96_109, %c0_110], %150 {strides = array<i32>} : memref<200x896xf32, #tpu.memory_space<vmem>>, vector<16x896xf32>,
    %c876_i32_111 = arith.constant 876 : i32
    %152 = tpu.dynamic_rotate %138 by %c876_i32_111 dim 1 : vector<16x896xf32>, i32 -> vector<16x896xf32>
    %c112_112 = arith.constant 112 : index
    %c0_113 = arith.constant 0 : index
    %153 = vector.load %arg8[%c112_112, %c0_113] : memref<200x896xf32, #tpu.memory_space<vmem>>, vector<16x896xf32>
    tpu.vector_store %arg8[%c112_112, %c0_113], %152 {strides = array<i32>} : memref<200x896xf32, #tpu.memory_space<vmem>>, vector<16x896xf32>,
    %c875_i32_114 = arith.constant 875 : i32
    %154 = tpu.dynamic_rotate %138 by %c875_i32_114 dim 1 : vector<16x896xf32>, i32 -> vector<16x896xf32>
    %c128_115 = arith.constant 128 : index
    %c0_116 = arith.constant 0 : index
    %155 = vector.load %arg8[%c128_115, %c0_116] : memref<200x896xf32, #tpu.memory_space<vmem>>, vector<16x896xf32>
    tpu.vector_store %arg8[%c128_115, %c0_116], %154 {strides = array<i32>} : memref<200x896xf32, #tpu.memory_space<vmem>>, vector<16x896xf32>,
    %c0_117 = arith.constant 0 : index
    %c0_118 = arith.constant 0 : index
    %156 = vector.load %arg5[%c0_117, %c0_118] : memref<8x144xf32, #tpu.memory_space<vmem>>, vector<8x144xf32>
    %c0_119 = arith.constant 0 : index
    %c0_120 = arith.constant 0 : index
    %157 = vector.load %arg8[%c0_119, %c0_120] : memref<200x896xf32, #tpu.memory_space<vmem>>, vector<144x896xf32>
    %cst_121 = arith.constant dense<0.000000e+00> : vector<8x896xf32>
    %158 = tpu.matmul %156, %157, %cst_121 {dimension_numbers = #tpu.dot_dimension_numbers<[1], [0], [0], [1], [0, 0, 1, 1], [], []>} : vector<8x144xf32>, vector<144x896xf32>, vector<8x896xf32> -> vector<8x896xf32>
    %159 = vector.extract_strided_slice %158 {offsets = [0, 0], sizes = [1, 896], strides = [1, 1]} : vector<8x896xf32> to vector<1x896xf32>
    %c0_122 = arith.constant 0 : index
    %c4_123 = arith.constant 4 : index
    %160 = vector.load %arg6[%c0_122, %c4_123] : memref<16x8xf32, #tpu.memory_space<vmem>>, vector<1x1xf32>
    %161 = vector.broadcast %160 : vector<1x1xf32> to vector<1x896xf32>
    %162 = arith.addf %159, %161 : vector<1x896xf32>
    %c0_124 = arith.constant 0 : index
    %c0_125 = arith.constant 0 : index
    %163 = vector.load %arg7[%c0_124, %c0_125] : memref<1x896xf32, #tpu.memory_space<vmem>>, vector<1x896xf32>
    tpu.vector_store %arg7[%c0_124, %c0_125], %162 {strides = array<i32>} : memref<1x896xf32, #tpu.memory_space<vmem>>, vector<1x896xf32>,
    return
  }
}

</mosaic_0001>

<bundles_post_ra>
// kernel: act.1
= control target key start
LH: loop header
LB: loop body
LE: loop exit
PB: predicated region body
PF: predicated region fallthrough
CT: control target
= control target key end

     0   :  { %v32_v0 = vlaneseq  ;;  %v9910_v11 = vmov 0  ;;  %v9715_v22 = vmov 0.0   ;;  %s5508_s28 = smov 21   ;;  %s5509_s29 = smov 20   ;;  %v5515_v26 = vmov 1966171168   ;;  %s9700_s0 = inlined_call_operand.vmem [shape: f32[1,896], index: 0, kind: input, shape index: {}]   ;;  %s9701_s1 = inlined_call_operand.vmem [shape: f32[1,896], index: 1, kind: input, shape index: {}]   ;;  %s9702_s3 = inlined_call_operand.vmem [shape: f32[8,16], index: 3, kind: input, shape index: {}]   ;;  %s9703_s2 = inlined_call_operand.vmem [shape: f32[896,1], index: 2, kind: input, shape index: {}]   ;;  %s9704_s6 = inlined_call_operand.vmem [shape: f32[16,8], index: 6, kind: input, shape index: {}]   ;;  %s9705_s4 = inlined_call_operand.vmem [shape: f32[16,200], index: 4, kind: input, shape index: {}]   ;;  %s9706_s5 = inlined_call_operand.vmem [shape: f32[8,144], index: 5, kind: input, shape index: {}]   ;;  %s9707_s7 = inlined_call_operand.vmem [shape: f32[1,896], index: 7, kind: output, shape index: {}]  }
   0x1   :  { %v27_v1 = vld [vmem:[%s9700_s0] sm:$0xff]  ;;  %s5506_s0 = smov 107   ;;  %724 = vst [vmem:[#allocation2 + $0x40] sm:$0xfe] %v9715_v22  ;;  %723 = vst [vmem:[#allocation2 + $0x38] sm:$0xfe] %v9715_v22  ;;  %813 = vmatprep.mubr.f32.mxu0 %v9715_v22  ;;  %884 = vmatprep.mubr.f32.mxu1 %v9715_v22  ;;  %v102_v27 = vunpack.c.l.s4 %v5515_v26 }
   0x2   :  { %v4783_v2 = vadd.f32 -3.5, %v27_v1  ;;  %v5583_v3 = vshrl.u32 %v32_v0, 7  ;;  %v26_v4 = vld [vmem:[%s9701_s1] sm:$0xff]  ;;  %vm5593_vm0 = vcmp.lt.s32.totalorder %v32_v0, 896  ;;  %725 = vst [vmem:[#allocation2 + $0x48] sm:$0xfe] %v9715_v22 }
   0x3   :  { %v9911_v11 = vsel %vm5593_vm0, 4294967295, %v9910_v11  ;;  %726 = vst [vmem:[#allocation2 + $0x50] sm:$0xfe] %v9715_v22  ;;  %727 = vst [vmem:[#allocation2 + $0x58] sm:$0xfe] %v9715_v22  ;;  %s5510_s30 = smov 19   ;;  %v103_v30 = vunpack.c.0.s8 %v102_v27 }
   0x4   :  { %9909 = vst [vmem:[#allocation3_spill] sm:$0xff] %v5583_v3  ;;  %v29_v5 = vmul.f32 0.22222222, %v4783_v2  ;;  %v9709_v6 = vsub.s32 2, %v5583_v3  ;;  %v9714_v7 = vsub.s32 0, %v5583_v3  ;;  %v9708_v9 = vsub.s32 3, %v5583_v3 }
   0x5   :  { %v9713_v10 = vsub.s32 1, %v5583_v3  ;;  %9912 = vst [vmem:[#allocation4_spill] sm:$0xff] %v9911_v11  ;;  %v9711_v16 = vsub.s32 5, %v5583_v3  ;;  %v9712_v17 = vsub.s32 4, %v5583_v3  ;;  %v9710_v20 = vsub.s32 6, %v5583_v3  ;;  %s5511_s8 = smov 1  }
   0x6   :  { %v30_v8 = vmul.f32 %v29_v5, %v26_v4  ;;  %728 = vst [vmem:[#allocation2 + $0x60] sm:$0xfe] %v9715_v22  ;;  %729 = vst [vmem:[#allocation2 + $0x68] sm:$0xfe] %v9715_v22  ;;  %s5512_s9 = smov 127   ;;  %s5513_s10 = smov 109   ;;  %v5766_v37 = vsub.s32 %v103_v30, %v5583_v3 }
   0x7   :  { %s5514_s11 = smov 108   ;;  %v5754_v23 = vand.u32 127, %v32_v0  ;;  %vm9784_vm9 = vcmask 130048   ;;  %vm5516_vm10 = vmmov 0   ;;  %v6332_v11 = vld [vmem:[%s9703_s2 + $0x80] sm:$0xff]  ;;  %s5520_s20 = smov 126  }
   0x8   :  { %v5599_v12 = vrot.slane %v30_v8, %v9709_v6  ;;  %397 = vst.msk [vmem:[#allocation2 + $0x4] ss:$8 sm:$0xf] %vm5593_vm0, %v30_v8  ;;  %398 = vst.msk [vmem:[#allocation2 + $0x4] ss:$8 sm:$0x70] %vm5593_vm0, %v30_v8  ;;  %v5607_v13 = vrot.slane %v30_v8, %v9714_v7  ;;  %v5615_v14 = vrot.slane %v30_v8, %v9708_v9 }
   0x9   :  { %v5619_v15 = vrot.slane %v30_v8, %v9713_v10  ;;  %v5629_v18 = vrot.slane %v30_v8, %v9711_v16  ;;  %v5633_v19 = vrot.slane %v30_v8, %v9712_v17  ;;  %v5642_v21 = vrot.slane %v30_v8, %v9710_v20  ;;  %9913 = vst [vmem:[#allocation5_spill] sm:$0xff] %v5754_v23  ;;  %v6282_v9 = vld [vmem:[%s9703_s2 + $0x90] sm:$0xff]  ;;  %v6306_v17 = vld [vmem:[%s9703_s2 + $0x88] sm:$0xff]  ;;  %v6351_v3 = vld [vmem:[%s9703_s2 + $0x100] sm:$0xff]  ;;  %s5521_s21 = smov 2   ;;  %s5522_s22 = smov 18  }
   0xa   :  { %646 = vrot.lane.b32.xlu1 %v5599_v12, %s5506_s0  ;;  %642 = vrot.lane.b32.xlu0 %v5607_v13, %s5506_s0  ;;  %vm656_vm1 = vcmp.lt.s32.totalorder %v5754_v23, 107  ;;  %9914 = vst [vmem:[#allocation6_spill] sm:$0xff] %v5766_v37  ;;  %vm9788_vm2 = vcmp.lt.s32.totalorder %v5754_v23, 21  ;;  %vm9787_vm3 = vcmp.lt.s32.totalorder %v5754_v23, 20  ;;  %vm9785_vm4 = vcmp.lt.s32.totalorder %v5754_v23, 19  ;;  %9916 = vst [vmem:[#allocation8_spill] sm:$0xff] %v6282_v9 }
   0xb   :  { %vm9812_vm5 = vcmp.lt.s32.totalorder %v5754_v23, 1  ;;  %vm413_vm6 = vcmp.lt.s32.totalorder %v5754_v23, 127  ;;  %vm494_vm7 = vcmp.lt.s32.totalorder %v5754_v23, 109  ;;  %vm575_vm8 = vcmp.lt.s32.totalorder %v5754_v23, 108  ;;  %v6287_v6 = vld [vmem:[%s9703_s2 + $0x190] sm:$0xff]  ;;  %9920 = vst [vmem:[#allocation12_spill] sm:$0xff] %v6306_v17 }
   0xc   :  { %9917 = vst [vmem:[#allocation9_spill] sm:$0xff] %v6287_v6  ;;  %v6294_v20 = vld [vmem:[%s9703_s2 + $0x10] sm:$0xff]  ;;  %v6311_v10 = vld [vmem:[%s9703_s2 + $0x188] sm:$0xff]  ;;  %9924 = vst [vmem:[#allocation16_spill] sm:$0xff] %v6332_v11  ;;  %s5523_s23 = smov 22   ;;  %s5524_s24 = smov 38  }
   0xd   :  { %9918 = vst [vmem:[#allocation10_spill] sm:$0xff] %v6294_v20  ;;  %v6299_v16 = vld [vmem:[%s9703_s2 + $0x110] sm:$0xff]  ;;  %9921 = vst [vmem:[#allocation13_spill] sm:$0xff] %v6311_v10  ;;  %v6322_v7 = vld [vmem:[%s9703_s2 + $0x8] sm:$0xff]  ;;  %s5525_s25 = smov 39   ;;  %s5526_s26 = smov 40  }
   0xe   :  { %648 = vrot.lane.b32.xlu1 %v5615_v14, %s5506_s0  ;;  %644 = vrot.lane.b32.xlu0 %v5619_v15, %s5506_s0  ;;  %9919 = vst [vmem:[#allocation11_spill] sm:$0xff] %v6299_v16  ;;  %9922 = vst [vmem:[#allocation14_spill] sm:$0xff] %v6322_v7  ;;  %v6346_v23 = vld [vmem:[%s9703_s2] sm:$0xff]  ;;  %s5527_s27 = smov 41   ;;  %s5528_s12 = smov 42  }
   0xf   :  { %9926 = vst [vmem:[#allocation18_spill] sm:$0xff] %v6346_v23  ;;  %9927 = vst [vmem:[#allocation19_spill] sm:$0xff] %v6351_v3  ;;  %s5529_s13 = smov 86   ;;  %s5531_s14 = smov 88  }
  0x10   :  { %s5532_s15 = smov 89   ;;  %s5533_s16 = smov 90  }
  0x11   :  { %s5534_s17 = smov 106  }
  0x12   :  { %652 = vrot.lane.b32.xlu1 %v5629_v18, %s5506_s0  ;;  %650 = vrot.lane.b32.xlu0 %v5633_v19, %s5506_s0 }
  0x16   :  { %67 = vrot.lane.b32.xlu1 %v5607_v13, %s5508_s28  ;;  %654 = vrot.lane.b32.xlu0 %v5642_v21, %s5506_s0 }
  0x1a   :  { %71 = vrot.lane.b32.xlu1 %v5599_v12, %s5508_s28  ;;  %69 = vrot.lane.b32.xlu0 %v5619_v15, %s5508_s28 }
  0x1e   :  { %75 = vrot.lane.b32.xlu1 %v5633_v19, %s5508_s28  ;;  %73 = vrot.lane.b32.xlu0 %v5615_v14, %s5508_s28 }
  0x22   :  { %79 = vrot.lane.b32.xlu1 %v5642_v21, %s5508_s28  ;;  %77 = vrot.lane.b32.xlu0 %v5629_v18, %s5508_s28 }
  0x26   :  { %155 = vrot.lane.b32.xlu1 %v5619_v15, %s5509_s29  ;;  %153 = vrot.lane.b32.xlu0 %v5607_v13, %s5509_s29 }
  0x2a   :  { %159 = vrot.lane.b32.xlu1 %v5615_v14, %s5509_s29  ;;  %157 = vrot.lane.b32.xlu0 %v5599_v12, %s5509_s29 }
  0x2e   :  { %163 = vrot.lane.b32.xlu1 %v5629_v18, %s5509_s29  ;;  %161 = vrot.lane.b32.xlu0 %v5633_v19, %s5509_s29 }
  0x32   :  { %234 = vrot.lane.b32.xlu1 %v5607_v13, %s5510_s30  ;;  %165 = vrot.lane.b32.xlu0 %v5642_v21, %s5509_s29 }
  0x36   :  { %238 = vrot.lane.b32.xlu1 %v5599_v12, %s5510_s30  ;;  %236 = vrot.lane.b32.xlu0 %v5619_v15, %s5510_s30 }
  0x3a   :  { %242 = vrot.lane.b32.xlu1 %v5633_v19, %s5510_s30  ;;  %240 = vrot.lane.b32.xlu0 %v5615_v14, %s5510_s30 }
  0x3e   :  { %246 = vrot.lane.b32.xlu1 %v5642_v21, %s5510_s30  ;;  %244 = vrot.lane.b32.xlu0 %v5629_v18, %s5510_s30 }
  0x42   :  { %317 = vrot.lane.b32.xlu1 %v5619_v15, %s5511_s8  ;;  %315 = vrot.lane.b32.xlu0 %v5607_v13, %s5511_s8 }
  0x46   :  { %321 = vrot.lane.b32.xlu1 %v5615_v14, %s5511_s8  ;;  %319 = vrot.lane.b32.xlu0 %v5599_v12, %s5511_s8 }
  0x4a   :  { %325 = vrot.lane.b32.xlu1 %v5629_v18, %s5511_s8  ;;  %323 = vrot.lane.b32.xlu0 %v5633_v19, %s5511_s8 }
  0x4e   :  { %399 = vrot.lane.b32.xlu1 %v5607_v13, %s5512_s9  ;;  %327 = vrot.lane.b32.xlu0 %v5642_v21, %s5511_s8 }
  0x52   :  { %403 = vrot.lane.b32.xlu1 %v5599_v12, %s5512_s9  ;;  %401 = vrot.lane.b32.xlu0 %v5619_v15, %s5512_s9 }
  0x56   :  { %407 = vrot.lane.b32.xlu1 %v5633_v19, %s5512_s9  ;;  %405 = vrot.lane.b32.xlu0 %v5615_v14, %s5512_s9 }
  0x5a   :  { %411 = vrot.lane.b32.xlu1 %v5642_v21, %s5512_s9  ;;  %409 = vrot.lane.b32.xlu0 %v5629_v18, %s5512_s9 }
  0x5e   :  { %482 = vrot.lane.b32.xlu1 %v5619_v15, %s5513_s10  ;;  %480 = vrot.lane.b32.xlu0 %v5607_v13, %s5513_s10 }
  0x62   :  { %486 = vrot.lane.b32.xlu1 %v5615_v14, %s5513_s10  ;;  %484 = vrot.lane.b32.xlu0 %v5599_v12, %s5513_s10 }
  0x66   :  { %490 = vrot.lane.b32.xlu1 %v5629_v18, %s5513_s10  ;;  %488 = vrot.lane.b32.xlu0 %v5633_v19, %s5513_s10 }
  0x6a   :  { %561 = vrot.lane.b32.xlu1 %v5607_v13, %s5514_s11  ;;  %492 = vrot.lane.b32.xlu0 %v5642_v21, %s5513_s10 }
  0x6e   :  { %565 = vrot.lane.b32.xlu1 %v5599_v12, %s5514_s11  ;;  %563 = vrot.lane.b32.xlu0 %v5619_v15, %s5514_s11 }
  0x72   :  { %569 = vrot.lane.b32.xlu1 %v5633_v19, %s5514_s11  ;;  %567 = vrot.lane.b32.xlu0 %v5615_v14, %s5514_s11 }
  0x76   :  { %573 = vrot.lane.b32.xlu1 %v5642_v21, %s5514_s11  ;;  %571 = vrot.lane.b32.xlu0 %v5629_v18, %s5514_s11 }
  0x7c   :  { %v647_v24 = vpop.permute.xlu1 %646  ;;  %v643_v25 = vpop.permute.xlu0 %642 }
  0x80   :  { %v649_v28 = vpop.permute.xlu1 %648  ;;  %v645_v29 = vpop.permute.xlu0 %644 }
  0x81   :  { %v661_v31 = vsel %vm656_vm1, %v645_v29, %v647_v24  ;;  %v662_v32 = vsel %vm656_vm1, %v643_v25, %v645_v29  ;;  %v660_v35 = vsel %vm656_vm1, %v647_v24, %v649_v28 }
  0x82   :  { %v671_v38 = vcombine.low %v662_v32, %v661_v31 }
  0x84   :  { %v653_v33 = vpop.permute.xlu1 %652  ;;  %v651_v34 = vpop.permute.xlu0 %650  ;;  %v680_v46 = vrot.slane %v671_v38, %v5766_v37 }
  0x85   :  { %v659_v36 = vsel %vm656_vm1, %v649_v28, %v651_v34  ;;  %v658_v43 = vsel %vm656_vm1, %v651_v34, %v653_v33 }
  0x86   :  { %v672_v39 = vcombine.low %v660_v35, %v659_v36 }
  0x88   :  { %v687_v40 = vrot.slane %v672_v39, %v5766_v37  ;;  %v68_v41 = vpop.permute.xlu1 %67  ;;  %v655_v42 = vpop.permute.xlu0 %654 }
  0x89   :  { %v657_v44 = vsel %vm656_vm1, %v653_v33, %v655_v42  ;;  %v663_v45 = vsel %vm656_vm1, %v655_v42, %v643_v25 }
  0x8a   :  { %v673_v47 = vcombine.low %v658_v43, %v657_v44  ;;  %v702_v48 = vcombine.low %v680_v46, %v687_v40  ;;  %v701_v50 = vrot.slane %v663_v45, %v5766_v37 }
  0x8c   :  { %v694_v49 = vrot.slane %v673_v47, %v5766_v37  ;;  %v72_v51 = vpop.permute.xlu1 %71  ;;  %v70_v52 = vpop.permute.xlu0 %69  ;;  %v710_v54 = vrot.slane %v702_v48, %v5766_v37 }
  0x8d   :  { %v88_v60 = vsel %vm9788_vm2, %v70_v52, %v72_v51  ;;  %v89_v61 = vsel %vm9788_vm2, %v68_v41, %v70_v52 }
  0x8e   :  { %v703_v53 = vcombine.low %v694_v49, %v701_v50 }
  0x90   :  { %v717_v55 = vrot.slane %v703_v53, %v5766_v37  ;;  %v76_v56 = vpop.permute.xlu1 %75  ;;  %v74_v57 = vpop.permute.xlu0 %73 }
  0x91   :  { %v87_v58 = vsel %vm9788_vm2, %v72_v51, %v74_v57  ;;  %v86_v1 = vsel %vm9788_vm2, %v74_v57, %v76_v56 }
  0x92   :  { %v718_v59 = vcombine.low %v710_v54, %v717_v55  ;;  %v99_v62 = vcombine.low %v88_v60, %v87_v58 }
  0x94   :  { %721 = vst.msk [vmem:[#allocation2 + $0x38] ss:$8 sm:$0xf] %vm5593_vm0, %v718_v59  ;;  %722 = vst.msk [vmem:[#allocation2 + $0x38] ss:$8 sm:$0x70] %vm5593_vm0, %v718_v59  ;;  %v80_v63 = vpop.permute.xlu1 %79  ;;  %v78_v0 = vpop.permute.xlu0 %77  ;;  %v114_v13 = vrot.slane %v99_v62, %v5766_v37 }
  0x95   :  { %v90_v2 = vsel %vm9788_vm2, %v80_v63, %v68_v41  ;;  %v84_v4 = vsel %vm9788_vm2, %v78_v0, %v80_v63  ;;  %v85_v5 = vsel %vm9788_vm2, %v76_v56, %v78_v0 }
  0x96   :  { %v98_v8 = vcombine.low %v90_v2, %v89_v61  ;;  %v100_v12 = vcombine.low %v86_v1, %v85_v5  ;;  %v128_v18 = vrot.slane %v84_v4, %v5766_v37 }
  0x98   :  { %v107_v14 = vrot.slane %v98_v8, %v5766_v37  ;;  %v121_v15 = vrot.slane %v100_v12, %v5766_v37  ;;  %v156_v19 = vpop.permute.xlu1 %155  ;;  %v154_v21 = vpop.permute.xlu0 %153 }
  0x99   :  { %v173_v46 = vsel %vm9787_vm3, %v154_v21, %v156_v19 }
  0x9a   :  { %v129_v24 = vcombine.low %v107_v14, %v114_v13  ;;  %v130_v25 = vcombine.low %v121_v15, %v128_v18 }
  0x9b   :  { %v739_v26 = vld [vmem:[#allocation2 + $0x40] sm:$0xff]  ;;  %v741_v27 = vld [vmem:[#allocation2 + $0x50] sm:$0xff]  ;;  %v738_v28 = vld [vmem:[#allocation2 + $0x38] sm:$0xff] }
  0x9c   :  { %v137_v29 = vrot.slane %v129_v24, %v5766_v37  ;;  %v144_v30 = vrot.slane %v130_v25, %v5766_v37  ;;  %v160_v31 = vpop.permute.xlu1 %159  ;;  %777 = vmatprep.subr.mxu0 %v739_v26  ;;  %848 = vmatprep.subr.mxu1 %v741_v27  ;;  %v158_v32 = vpop.permute.xlu0 %157  ;;  %v740_v33 = vld [vmem:[#allocation2 + $0x48] sm:$0xff] }
  0x9d   :  { %778 = vmatpush1.msra.mxu0 %v738_v28  ;;  %849 = vmatpush1.msra.mxu1 %v740_v33  ;;  %v171_v38 = vsel %vm9787_vm3, %v158_v32, %v160_v31  ;;  %v172_v39 = vsel %vm9787_vm3, %v156_v19, %v158_v32 }
  0x9e   :  { %v145_v34 = vcombine.low %v137_v29, %v144_v30  ;;  %v183_v43 = vcombine.low %v172_v39, %v171_v38 }
  0xa0   :  { %151 = vst.msk [vmem:[#allocation2] ss:$8 sm:$0xf] %vm5593_vm0, %v145_v34  ;;  %152 = vst.msk [vmem:[#allocation2] ss:$8 sm:$0x70] %vm5593_vm0, %v145_v34  ;;  %v164_v35 = vpop.permute.xlu1 %163  ;;  %v162_v36 = vpop.permute.xlu0 %161  ;;  %v198_v52 = vrot.slane %v183_v43, %v5766_v37 }
  0xa1   :  { %v169_v40 = vsel %vm9787_vm3, %v162_v36, %v164_v35  ;;  %v170_v41 = vsel %vm9787_vm3, %v160_v31, %v162_v36 }
  0xa2   :  { %v184_v42 = vcombine.low %v170_v41, %v169_v40 }
  0xa4   :  { %v235_v44 = vpop.permute.xlu1 %234  ;;  %v166_v45 = vpop.permute.xlu0 %165  ;;  %v205_v49 = vrot.slane %v184_v42, %v5766_v37 }
  0xa5   :  { %v168_v47 = vsel %vm9787_vm3, %v164_v35, %v166_v45  ;;  %v174_v48 = vsel %vm9787_vm3, %v166_v45, %v154_v21 }
  0xa6   :  { %v182_v50 = vcombine.low %v174_v48, %v173_v46  ;;  %v212_v51 = vrot.slane %v168_v47, %v5766_v37 }
  0xa8   :  { %v191_v53 = vrot.slane %v182_v50, %v5766_v37  ;;  %v214_v54 = vcombine.low %v205_v49, %v212_v51  ;;  %v239_v55 = vpop.permute.xlu1 %238  ;;  %v237_v56 = vpop.permute.xlu0 %236 }
  0xa9   :  { %v253_v0 = vsel %vm9785_vm4, %v237_v56, %v239_v55  ;;  %v254_v1 = vsel %vm9785_vm4, %v235_v44, %v237_v56 }
  0xaa   :  { %v213_v57 = vcombine.low %v191_v53, %v198_v52  ;;  %v228_v59 = vrot.slane %v214_v54, %v5766_v37 }
  0xac   :  { %v221_v58 = vrot.slane %v213_v57, %v5766_v37  ;;  %v243_v60 = vpop.permute.xlu1 %242  ;;  %v241_v61 = vpop.permute.xlu0 %240 }
  0xad   :  { %v252_v62 = vsel %vm9785_vm4, %v239_v55, %v241_v61  ;;  %v251_v8 = vsel %vm9785_vm4, %v241_v61, %v243_v60 }
  0xae   :  { %v229_v63 = vcombine.low %v221_v58, %v228_v59  ;;  %v264_v2 = vcombine.low %v253_v0, %v252_v62 }
  0xb0   :  { %232 = vst.msk [vmem:[#allocation2 + $0x1] ss:$8 sm:$0xf] %vm5593_vm0, %v229_v63  ;;  %233 = vst.msk [vmem:[#allocation2 + $0x1] ss:$8 sm:$0x70] %vm5593_vm0, %v229_v63  ;;  %v247_v4 = vpop.permute.xlu1 %246  ;;  %v245_v5 = vpop.permute.xlu0 %244  ;;  %v279_v19 = vrot.slane %v264_v2, %v5766_v37 }
  0xb1   :  { %v255_v12 = vsel %vm9785_vm4, %v247_v4, %v235_v44  ;;  %v249_v13 = vsel %vm9785_vm4, %v245_v5, %v247_v4  ;;  %v250_v14 = vsel %vm9785_vm4, %v243_v60, %v245_v5 }
  0xb2   :  { %v263_v15 = vcombine.low %v255_v12, %v254_v1  ;;  %v265_v18 = vcombine.low %v251_v8, %v250_v14  ;;  %v293_v25 = vrot.slane %v249_v13, %v5766_v37 }
  0xb4   :  { %v272_v21 = vrot.slane %v263_v15, %v5766_v37  ;;  %v286_v24 = vrot.slane %v265_v18, %v5766_v37  ;;  %v318_v26 = vpop.permute.xlu1 %317  ;;  %v316_v27 = vpop.permute.xlu0 %315 }
  0xb5   :  { %v335_v46 = vsel %vm9812_vm5, %v316_v27, %v318_v26 }
  0xb6   :  { %v294_v28 = vcombine.low %v272_v21, %v279_v19  ;;  %v295_v29 = vcombine.low %v286_v24, %v293_v25 }
  0xb8   :  { %v302_v30 = vrot.slane %v294_v28, %v5766_v37  ;;  %v309_v31 = vrot.slane %v295_v29, %v5766_v37  ;;  %v322_v32 = vpop.permute.xlu1 %321  ;;  %v320_v33 = vpop.permute.xlu0 %319 }
  0xb9   :  { %v333_v38 = vsel %vm9812_vm5, %v320_v33, %v322_v32  ;;  %v334_v39 = vsel %vm9812_vm5, %v318_v26, %v320_v33 }
  0xba   :  { %v310_v34 = vcombine.low %v302_v30, %v309_v31  ;;  %v345_v43 = vcombine.low %v334_v39, %v333_v38 }
  0xbc   :  { %313 = vst.msk [vmem:[#allocation2 + $0x2] ss:$8 sm:$0xf] %vm5593_vm0, %v310_v34  ;;  %314 = vst.msk [vmem:[#allocation2 + $0x2] ss:$8 sm:$0x70] %vm5593_vm0, %v310_v34  ;;  %v326_v35 = vpop.permute.xlu1 %325  ;;  %v324_v36 = vpop.permute.xlu0 %323  ;;  %v360_v52 = vrot.slane %v345_v43, %v5766_v37 }
  0xbd   :  { %v331_v40 = vsel %vm9812_vm5, %v324_v36, %v326_v35  ;;  %v332_v41 = vsel %vm9812_vm5, %v322_v32, %v324_v36 }
  0xbe   :  { %v346_v42 = vcombine.low %v332_v41, %v331_v40 }
  0xc0   :  { %v400_v44 = vpop.permute.xlu1 %399  ;;  %v328_v45 = vpop.permute.xlu0 %327  ;;  %v367_v49 = vrot.slane %v346_v42, %v5766_v37 }
  0xc1   :  { %v330_v47 = vsel %vm9812_vm5, %v326_v35, %v328_v45  ;;  %v336_v48 = vsel %vm9812_vm5, %v328_v45, %v316_v27 }
  0xc2   :  { %v344_v50 = vcombine.low %v336_v48, %v335_v46  ;;  %v374_v51 = vrot.slane %v330_v47, %v5766_v37 }
  0xc4   :  { %v353_v53 = vrot.slane %v344_v50, %v5766_v37  ;;  %v376_v54 = vcombine.low %v367_v49, %v374_v51  ;;  %v404_v55 = vpop.permute.xlu1 %403  ;;  %v402_v56 = vpop.permute.xlu0 %401 }
  0xc5   :  { %v418_v58 = vsel %vm413_vm6, %v402_v56, %v404_v55  ;;  %v419_v59 = vsel %vm413_vm6, %v400_v44, %v402_v56 }
  0xc6   :  { %v375_v57 = vcombine.low %v353_v53, %v360_v52  ;;  %v390_v61 = vrot.slane %v376_v54, %v5766_v37  ;;  %v428_v4 = vcombine.low %v419_v59, %v418_v58 }
  0xc8   :  { %v383_v60 = vrot.slane %v375_v57, %v5766_v37  ;;  %v408_v62 = vpop.permute.xlu1 %407  ;;  %v406_v63 = vpop.permute.xlu0 %405  ;;  %v437_v19 = vrot.slane %v428_v4, %v5766_v37 }
  0xc9   :  { %v416_v0 = vsel %vm413_vm6, %v406_v63, %v408_v62  ;;  %v417_v1 = vsel %vm413_vm6, %v404_v55, %v406_v63 }
  0xca   :  { %v391_v2 = vcombine.low %v383_v60, %v390_v61  ;;  %v429_v5 = vcombine.low %v417_v1, %v416_v0 }
  0xcc   :  { %394 = vst.msk [vmem:[#allocation2 + $0x3] ss:$8 sm:$0xf] %vm5593_vm0, %v391_v2  ;;  %395 = vst.msk [vmem:[#allocation2 + $0x3] ss:$8 sm:$0x70] %vm5593_vm0, %v391_v2  ;;  %v444_v8 = vrot.slane %v429_v5, %v5766_v37  ;;  %v412_v12 = vpop.permute.xlu1 %411  ;;  %v410_v13 = vpop.permute.xlu0 %409 }
  0xcd   :  { %v420_v14 = vsel %vm413_vm6, %v412_v12, %v400_v44  ;;  %v414_v15 = vsel %vm413_vm6, %v410_v13, %v412_v12  ;;  %v415_v18 = vsel %vm413_vm6, %v408_v62, %v410_v13 }
  0xce   :  { %v430_v21 = vcombine.low %v415_v18, %v414_v15  ;;  %v459_v24 = vcombine.low %v437_v19, %v444_v8  ;;  %v458_v25 = vrot.slane %v420_v14, %v5766_v37 }
  0xd0   :  { %v451_v26 = vrot.slane %v430_v21, %v5766_v37  ;;  %v483_v27 = vpop.permute.xlu1 %482  ;;  %v481_v28 = vpop.permute.xlu0 %480  ;;  %v467_v30 = vrot.slane %v459_v24, %v5766_v37 }
  0xd1   :  { %v500_v39 = vsel %vm494_vm7, %v481_v28, %v483_v27 }
  0xd2   :  { %v460_v29 = vcombine.low %v451_v26, %v458_v25 }
  0xd4   :  { %v474_v31 = vrot.slane %v460_v29, %v5766_v37  ;;  %v487_v32 = vpop.permute.xlu1 %486  ;;  %v485_v33 = vpop.permute.xlu0 %484 }
  0xd5   :  { %v499_v35 = vsel %vm494_vm7, %v483_v27, %v485_v33  ;;  %v498_v40 = vsel %vm494_vm7, %v485_v33, %v487_v32 }
  0xd6   :  { %v475_v34 = vcombine.low %v467_v30, %v474_v31  ;;  %v509_v42 = vcombine.low %v500_v39, %v499_v35  ;;  %v730_v31 = vld [vmem:[%s9702_s3] sm:$0xff]  ;;  %v744_v39 = vld [vmem:[#allocation2 + $0x68] sm:$0xff]  ;;  %s5530_s3 = smov 87  }
  0xd8   :  { %478 = vst.msk [vmem:[#allocation2 + $0x5] ss:$8 sm:$0xf] %vm5593_vm0, %v475_v34  ;;  %479 = vst.msk [vmem:[#allocation2 + $0x5] ss:$8 sm:$0x70] %vm5593_vm0, %v475_v34  ;;  %v491_v36 = vpop.permute.xlu1 %490  ;;  %v489_v38 = vpop.permute.xlu0 %488  ;;  %v518_v50 = vrot.slane %v509_v42, %v5766_v37 }
  0xd9   :  { %v497_v41 = vsel %vm494_vm7, %v487_v32, %v489_v38  ;;  %v496_v47 = vsel %vm494_vm7, %v489_v38, %v491_v36  ;;  %v742_v38 = vld [vmem:[#allocation2 + $0x58] sm:$0xff] }
  0xda   :  { %v510_v43 = vcombine.low %v498_v40, %v497_v41 }
  0xdc   :  { %v525_v44 = vrot.slane %v510_v43, %v5766_v37  ;;  %v562_v45 = vpop.permute.xlu1 %561  ;;  %v493_v46 = vpop.permute.xlu0 %492  ;;  %v5969_v43 = vld [vmem:[%s9703_s2 + $0xf8] sm:$0xff] }
  0xdd   :  { %v495_v48 = vsel %vm494_vm7, %v491_v36, %v493_v46  ;;  %v501_v49 = vsel %vm494_vm7, %v493_v46, %v481_v28  ;;  %v743_v36 = vld [vmem:[#allocation2 + $0x60] sm:$0xff]  ;;  %v5987_v46 = vld [vmem:[%s9703_s2 + $0x178] sm:$0xff] }
  0xde   :  { %v511_v51 = vcombine.low %v496_v47, %v495_v48  ;;  %v540_v52 = vcombine.low %v518_v50, %v525_v44  ;;  %v539_v54 = vrot.slane %v501_v49, %v5766_v37  ;;  %v5974_v44 = vld [vmem:[%s9703_s2 + $0x1f8] sm:$0xff]  ;;  %v5994_v47 = vld [vmem:[%s9703_s2 + $0xf0] sm:$0xff] }
  0xdf   :  { %v5999_v48 = vld [vmem:[%s9703_s2 + $0x1f0] sm:$0xff] }
  0xe0   :  { %v532_v53 = vrot.slane %v511_v51, %v5766_v37  ;;  %v566_v55 = vpop.permute.xlu1 %565  ;;  %v564_v56 = vpop.permute.xlu0 %563  ;;  %v548_v60 = vrot.slane %v540_v52, %v5766_v37  ;;  %v6006_v49 = vld [vmem:[%s9703_s2 + $0x70] sm:$0xff]  ;;  %v6018_v51 = vld [vmem:[%s9703_s2 + $0xe8] sm:$0xff] }
  0xe1   :  { %v580_v58 = vsel %vm575_vm8, %v564_v56, %v566_v55  ;;  %v581_v59 = vsel %vm575_vm8, %v562_v45, %v564_v56  ;;  %v6011_v50 = vld [vmem:[%s9703_s2 + $0x170] sm:$0xff]  ;;  %v6023_v52 = vld [vmem:[%s9703_s2 + $0x1e8] sm:$0xff]  ;;  %v6047_v56 = vld [vmem:[%s9703_s2 + $0x1e0] sm:$0xff] }
  0xe2   :  { %v541_v57 = vcombine.low %v532_v53, %v539_v54  ;;  %v590_v4 = vcombine.low %v581_v59, %v580_v58  ;;  %v6030_v53 = vld [vmem:[%s9703_s2 + $0x68] sm:$0xff]  ;;  %v6059_v58 = vld [vmem:[%s9703_s2 + $0x160] sm:$0xff]  ;;  %v6066_v59 = vld [vmem:[%s9703_s2 + $0xd8] sm:$0xff] }
  0xe3   :  { %v6035_v54 = vld [vmem:[%s9703_s2 + $0x168] sm:$0xff] }
  0xe4   :  { %v555_v61 = vrot.slane %v541_v57, %v5766_v37  ;;  %v570_v62 = vpop.permute.xlu1 %569  ;;  %v568_v63 = vpop.permute.xlu0 %567  ;;  %v599_v19 = vrot.slane %v590_v4, %v5766_v37  ;;  %v6054_v57 = vld [vmem:[%s9703_s2 + $0x60] sm:$0xff]  ;;  %v6114_v4 = vld [vmem:[%s9703_s2 + $0xc8] sm:$0xff] }
  0xe5   :  { %v578_v0 = vsel %vm575_vm8, %v568_v63, %v570_v62  ;;  %v579_v1 = vsel %vm575_vm8, %v566_v55, %v568_v63  ;;  %v6042_v55 = vld [vmem:[%s9703_s2 + $0xe0] sm:$0xff]  ;;  %v6090_v63 = vld [vmem:[%s9703_s2 + $0xd0] sm:$0xff] }
  0xe6   :  { %v556_v2 = vcombine.low %v548_v60, %v555_v61  ;;  %v591_v5 = vcombine.low %v579_v1, %v578_v0  ;;  %v6071_v60 = vld [vmem:[%s9703_s2 + $0x1d8] sm:$0xff]  ;;  %v6095_v0 = vld [vmem:[%s9703_s2 + $0x1d0] sm:$0xff] }
  0xe7   :  { %v6078_v61 = vld [vmem:[%s9703_s2 + $0x58] sm:$0xff]  ;;  %v6102_v1 = vld [vmem:[%s9703_s2 + $0x50] sm:$0xff] }
  0xe8   :  { %559 = vst.msk [vmem:[#allocation2 + $0x6] ss:$8 sm:$0xf] %vm5593_vm0, %v556_v2  ;;  %560 = vst.msk [vmem:[#allocation2 + $0x6] ss:$8 sm:$0x70] %vm5593_vm0, %v556_v2  ;;  %v606_v8 = vrot.slane %v591_v5, %v5766_v37  ;;  %v574_v12 = vpop.permute.xlu1 %573  ;;  %v572_v13 = vpop.permute.xlu0 %571 }
  0xe9   :  { %v582_v14 = vsel %vm575_vm8, %v574_v12, %v562_v45  ;;  %v576_v15 = vsel %vm575_vm8, %v572_v13, %v574_v12  ;;  %v577_v18 = vsel %vm575_vm8, %v570_v62, %v572_v13  ;;  %v5982_v45 = vld [vmem:[%s9703_s2 + $0x78] sm:$0xff]  ;;  %v6107_v2 = vld [vmem:[%s9703_s2 + $0x150] sm:$0xff]  ;;  %v6119_v5 = vld [vmem:[%s9703_s2 + $0x1c8] sm:$0xff] }
  0xea   :  { %v592_v21 = vcombine.low %v577_v18, %v576_v15  ;;  %v621_v24 = vcombine.low %v599_v19, %v606_v8  ;;  %v620_v25 = vrot.slane %v582_v14, %v5766_v37  ;;  %v6083_v62 = vld [vmem:[%s9703_s2 + $0x158] sm:$0xff]  ;;  %v6126_v8 = vld [vmem:[%s9703_s2 + $0x48] sm:$0xff]  ;;  %v6138_v13 = vld [vmem:[%s9703_s2 + $0xc0] sm:$0xff] }
  0xeb   :  { %v6131_v12 = vld [vmem:[%s9703_s2 + $0x148] sm:$0xff]  ;;  %v6143_v14 = vld [vmem:[%s9703_s2 + $0x1c0] sm:$0xff]  ;;  %v6162_v19 = vld [vmem:[%s9703_s2 + $0xb8] sm:$0xff] }
  0xec   :  { %v613_v26 = vrot.slane %v592_v21, %v5766_v37  ;;  %v629_v28 = vrot.slane %v621_v24, %v5766_v37  ;;  %v6150_v15 = vld [vmem:[%s9703_s2 + $0x40] sm:$0xff]  ;;  %v6167_v21 = vld [vmem:[%s9703_s2 + $0x1b8] sm:$0xff] }
  0xed   :  { %v6155_v18 = vld [vmem:[%s9703_s2 + $0x140] sm:$0xff]  ;;  %v6174_v24 = vld [vmem:[%s9703_s2 + $0x38] sm:$0xff] }
  0xee   :  { %v622_v27 = vcombine.low %v613_v26, %v620_v25  ;;  %v6179_v25 = vld [vmem:[%s9703_s2 + $0x138] sm:$0xff]  ;;  %v6186_v26 = vld [vmem:[%s9703_s2 + $0xb0] sm:$0xff] }
  0xf0   :  { %v636_v29 = vrot.slane %v622_v27, %v5766_v37  ;;  %v6191_v27 = vld [vmem:[%s9703_s2 + $0x1b0] sm:$0xff]  ;;  %v6339_v37 = vld [vmem:[%s9703_s2 + $0x180] sm:$0xff] }
  0xf1   :  { %9925 = vst [vmem:[#allocation17_spill] sm:$0xff] %v6339_v37 }
  0xf2   :  { %v637_v30 = vcombine.low %v629_v28, %v636_v29  ;;  %v6198_v28 = vld [vmem:[%s9703_s2 + $0x30] sm:$0xff] }
  0xf3   :  { %v6203_v29 = vld [vmem:[%s9703_s2 + $0x130] sm:$0xff] }
  0xf4   :  { %640 = vst.msk [vmem:[#allocation2 + $0x7] ss:$8 sm:$0xf] %vm5593_vm0, %v637_v30  ;;  %641 = vst.msk [vmem:[#allocation2 + $0x7] ss:$8 sm:$0x70] %vm5593_vm0, %v637_v30 }
  0xf5   :  { %v6210_v30 = vld [vmem:[%s9703_s2 + $0xa8] sm:$0xff] }
  0xfb   :  { %v732_v32 = vld [vmem:[#allocation2 + $0x8] sm:$0xff]  ;;  %v734_v33 = vld [vmem:[#allocation2 + $0x18] sm:$0xff]  ;;  %v731_v34 = vld [vmem:[#allocation2] sm:$0xff] }
  0xfc   :  { %779 = vmatprep.subr.mxu0 %v732_v32  ;;  %850 = vmatprep.subr.mxu1 %v734_v33  ;;  %v733_v35 = vld [vmem:[#allocation2 + $0x10] sm:$0xff]  ;;  %v736_v40 = vld [vmem:[#allocation2 + $0x28] sm:$0xff]  ;;  %v735_v41 = vld [vmem:[#allocation2 + $0x20] sm:$0xff] }
  0xfd   :  { %780 = vmatpush1.msra.mxu0 %v731_v34  ;;  %851 = vmatpush1.msra.mxu1 %v733_v35  ;;  %v737_v42 = vld [vmem:[#allocation2 + $0x30] sm:$0xff]  ;;  %v6222_v32 = vld [vmem:[%s9703_s2 + $0x28] sm:$0xff]  ;;  %v6234_v34 = vld [vmem:[%s9703_s2 + $0xa0] sm:$0xff] }
  0xfe   :  { %4784 = vmatmul.mubr.msk.f32.vlgmr.msra.gmra.mxu0 %vm9784_vm9, %v730_v31  ;;  %4785 = vmatmul.mubr.msk.f32.vlgmr.msra.gmra.mxu1 %vm9784_vm9, %v730_v31  ;;  %v6227_v33 = vld [vmem:[%s9703_s2 + $0x128] sm:$0xff]  ;;  %v6239_v35 = vld [vmem:[%s9703_s2 + $0x1a0] sm:$0xff] }
  0xff   :  { %919 = vmatprep.subr.mxu0 %v743_v36  ;;  %5311 = vmatprep.subr.mxu1 %v9715_v22  ;;  %v6246_v36 = vld [vmem:[%s9703_s2 + $0x20] sm:$0xff] }
 0x100   :  { %920 = vmatpush1.msra.mxu0 %v742_v38  ;;  %5312 = vmatpush3.msra.mxu1 %v744_v39  ;;  %v6251_v38 = vld [vmem:[%s9703_s2 + $0x120] sm:$0xff]  ;;  %v6258_v39 = vld [vmem:[%s9703_s2 + $0x98] sm:$0xff] }
 0x101   :  { %921 = vmatprep.subr.mxu0 %v736_v40  ;;  %5313 = vmatprep.subr.mxu1 %v9715_v22  ;;  %v6263_v40 = vld [vmem:[%s9703_s2 + $0x198] sm:$0xff] }
 0x102   :  { %922 = vmatpush1.msra.mxu0 %v735_v41  ;;  %5314 = vmatpush3.msra.mxu1 %v737_v42  ;;  %v6270_v41 = vld [vmem:[%s9703_s2 + $0x18] sm:$0xff] }
 0x103   :  { %955 = vmatprep.mubr.f32.mxu0 %v9715_v22  ;;  %5315 = vmatprep.mubr.msk.f32.mxu1 %vm5516_vm10, %v9715_v22  ;;  %v6275_v42 = vld [vmem:[%s9703_s2 + $0x118] sm:$0xff]  ;;  %v6327_v22 = vld [vmem:[%s9703_s2 + $0x108] sm:$0xff] }
 0x104   :  { %4786 = vmatmul.mubr.msk.f32.vlgmr.msra.gmra.mxu0 %vm9784_vm9, %v730_v31  ;;  %5316 = vmatmul.mubr.msk.f32.vlgmr.msra.gmra.mxu1 %vm9784_vm9, %v730_v31  ;;  %v6215_v31 = vld [vmem:[%s9703_s2 + $0x1a8] sm:$0xff]  ;;  %9915 = vst [vmem:[#allocation7_spill] sm:$0xff] %v6275_v42  ;;  %9923 = vst [vmem:[#allocation15_spill] sm:$0xff] %v6327_v22 }
 0x105   :  { %4803 = vmatprep.subr.mxu0 %v5969_v43  ;;  %4838 = vmatprep.subr.mxu1 %v5974_v44 }
 0x106   :  { %4804 = vmatpush3.msra.mxu0 %v5982_v45  ;;  %4839 = vmatpush3.msra.mxu1 %v5987_v46 }
 0x107   :  { %4805 = vmatprep.subr.mxu0 %v5994_v47  ;;  %4840 = vmatprep.subr.mxu1 %v5999_v48 }
 0x108   :  { %4806 = vmatpush3.msra.mxu0 %v6006_v49  ;;  %4841 = vmatpush3.msra.mxu1 %v6011_v50 }
 0x109   :  { %4807 = vmatprep.subr.mxu0 %v6018_v51  ;;  %4842 = vmatprep.subr.mxu1 %v6023_v52 }
 0x10a   :  { %4808 = vmatpush3.msra.mxu0 %v6030_v53  ;;  %4843 = vmatpush3.msra.mxu1 %v6035_v54 }
 0x10b   :  { %4809 = vmatprep.subr.mxu0 %v6042_v55  ;;  %4844 = vmatprep.subr.mxu1 %v6047_v56 }
 0x10c   :  { %4810 = vmatpush3.msra.mxu0 %v6054_v57  ;;  %4845 = vmatpush3.msra.mxu1 %v6059_v58 }
 0x10d   :  { %4811 = vmatprep.subr.mxu0 %v6066_v59  ;;  %4846 = vmatprep.subr.mxu1 %v6071_v60 }
 0x10e   :  { %4812 = vmatpush3.msra.mxu0 %v6078_v61  ;;  %4847 = vmatpush3.msra.mxu1 %v6083_v62 }
 0x10f   :  { %4813 = vmatprep.subr.mxu0 %v6090_v63  ;;  %4848 = vmatprep.subr.mxu1 %v6095_v0 }
 0x110   :  { %4814 = vmatpush3.msra.mxu0 %v6102_v1  ;;  %4849 = vmatpush3.msra.mxu1 %v6107_v2 }
 0x111   :  { %4815 = vmatprep.subr.mxu0 %v6114_v4  ;;  %4850 = vmatprep.subr.mxu1 %v6119_v5 }
 0x112   :  { %4816 = vmatpush3.msra.mxu0 %v6126_v8  ;;  %4851 = vmatpush3.msra.mxu1 %v6131_v12 }
 0x113   :  { %4817 = vmatprep.subr.mxu0 %v6138_v13  ;;  %4852 = vmatprep.subr.mxu1 %v6143_v14 }
 0x114   :  { %4818 = vmatpush3.msra.mxu0 %v6150_v15  ;;  %4853 = vmatpush3.msra.mxu1 %v6155_v18 }
 0x115   :  { %4819 = vmatprep.subr.mxu0 %v6162_v19  ;;  %4854 = vmatprep.subr.mxu1 %v6167_v21 }
 0x116   :  { %4820 = vmatpush3.msra.mxu0 %v6174_v24  ;;  %4855 = vmatpush3.msra.mxu1 %v6179_v25 }
 0x117   :  { %4821 = vmatprep.subr.mxu0 %v6186_v26  ;;  %4856 = vmatprep.subr.mxu1 %v6191_v27 }
 0x118   :  { %4822 = vmatpush3.msra.mxu0 %v6198_v28  ;;  %4857 = vmatpush3.msra.mxu1 %v6203_v29 }
 0x119   :  { %4823 = vmatprep.subr.mxu0 %v6210_v30  ;;  %4858 = vmatprep.subr.mxu1 %v6215_v31 }
 0x11a   :  { %4824 = vmatpush3.msra.mxu0 %v6222_v32  ;;  %4859 = vmatpush3.msra.mxu1 %v6227_v33 }
 0x11b   :  { %4825 = vmatprep.subr.mxu0 %v6234_v34  ;;  %4860 = vmatprep.subr.mxu1 %v6239_v35 }
 0x11c   :  { %4826 = vmatpush3.msra.mxu0 %v6246_v36  ;;  %4861 = vmatpush3.msra.mxu1 %v6251_v38 }
 0x11d   :  { %4827 = vmatprep.subr.mxu0 %v6258_v39  ;;  %4862 = vmatprep.subr.mxu1 %v6263_v40 }
 0x11e   :  { %4828 = vmatpush3.msra.mxu0 %v6270_v41  ;;  %4863 = vmatpush3.msra.mxu1 %v6275_v42  ;;  %v6664_v42 = vld [vmem:[%s9703_s2 + $0x200] sm:$0xff] }
 0x11f   :  { %4829 = vmatprep.subr.mxu0 %v6282_v9  ;;  %4864 = vmatprep.subr.mxu1 %v6287_v6  ;;  %v6432_v6 = vld [vmem:[%s9703_s2 + $0x260] sm:$0xff]  ;;  %v6451_v9 = vld [vmem:[%s9703_s2 + $0x258] sm:$0xff] }
 0x120   :  { %4830 = vmatpush3.msra.mxu0 %v6294_v20  ;;  %4865 = vmatpush3.msra.mxu1 %v6299_v16  ;;  %v6373_v16 = vld [vmem:[%s9703_s2 + $0x278] sm:$0xff]  ;;  %v6397_v20 = vld [vmem:[%s9703_s2 + $0x370] sm:$0xff]  ;;  %9941 = vst [vmem:[#allocation32_spill] sm:$0xff] %v6432_v6  ;;  %9944 = vst [vmem:[#allocation35_spill] sm:$0xff] %v6451_v9 }
 0x121   :  { %4831 = vmatprep.subr.mxu0 %v6306_v17  ;;  %4866 = vmatprep.subr.mxu1 %v6311_v10  ;;  %9932 = vst [vmem:[#allocation23_spill] sm:$0xff] %v6373_v16  ;;  %9936 = vst [vmem:[#allocation27_spill] sm:$0xff] %v6397_v20 }
 0x122   :  { %4832 = vmatpush3.msra.mxu0 %v6322_v7  ;;  %4867 = vmatpush3.msra.mxu1 %v6327_v22  ;;  %v6356_v22 = vld [vmem:[%s9703_s2 + $0x2f8] sm:$0xff] }
 0x123   :  { %4833 = vmatprep.subr.mxu0 %v6332_v11  ;;  %4868 = vmatprep.subr.mxu1 %v6339_v37  ;;  %9928 = vst [vmem:[#allocation20_spill] sm:$0xff] %v6356_v22  ;;  %v9929_v37 = vmov 0.0  }
 0x124   :  { %4834 = vmatpush3.msra.mxu0 %v6346_v23  ;;  %4869 = vmatpush3.msra.mxu1 %v6351_v3  ;;  %v6378_v3 = vld [vmem:[%s9703_s2 + $0x378] sm:$0xff]  ;;  %v6392_v23 = vld [vmem:[%s9703_s2 + $0x270] sm:$0xff] }
 0x125   :  { %4873 = vmatprep.subr.mxu0 %v6356_v22  ;;  %5318 = vmatprep.subr.mxu1 %v9929_v37  ;;  %9933 = vst [vmem:[#allocation24_spill] sm:$0xff] %v6378_v3  ;;  %v6385_v22 = vld [vmem:[%s9703_s2 + $0x2f0] sm:$0xff]  ;;  %9935 = vst [vmem:[#allocation26_spill] sm:$0xff] %v6392_v23 }
 0x126   :  { %9934 = vst [vmem:[#allocation25_spill] sm:$0xff] %v6385_v22 }
 0x1be   :  { %v6362_v11 = vpop.f32.mrf.mxu0  ;;  %v6364_v7 = vpop.f32.mrf.mxu1 }
 0x1bf   :  { %9930 = vst [vmem:[#allocation21_spill] sm:$0xff] %v6362_v11  ;;  %9931 = vst [vmem:[#allocation22_spill] sm:$0xff] %v6364_v7 }
 0x1c0   :  { %v6366_v10 = vpop.f32.mrf.mxu0  ;;  %v6368_v17 = vpop.f32.mrf.mxu1 }
 0x1c1   :  { %1208 = vmatprep.mubr.f32.mxu0 %v6366_v10  ;;  %1278 = vmatprep.mubr.f32.mxu1 %v6368_v17 }
 0x1c2   :  { %1209 = vmatmul.mubr.f32.vlgmr.msra.gmra.mxu0 %v6362_v11  ;;  %1279 = vmatmul.mubr.f32.vlgmr.msra.gmra.mxu1 %v6364_v7  ;;  %v6404_v11 = vld [vmem:[%s9703_s2 + $0x2e8] sm:$0xff] }
 0x1c3   :  { %4874 = vmatpush3.msra.mxu0 %v6373_v16  ;;  %5319 = vmatpush3.msra.mxu1 %v6378_v3  ;;  %9937 = vst [vmem:[#allocation28_spill] sm:$0xff] %v6404_v11  ;;  %v6411_v7 = vld [vmem:[%s9703_s2 + $0x268] sm:$0xff] }
 0x1c4   :  { %4875 = vmatprep.subr.mxu0 %v6385_v22  ;;  %5320 = vmatprep.subr.mxu1 %v9929_v37  ;;  %9938 = vst [vmem:[#allocation29_spill] sm:$0xff] %v6411_v7  ;;  %v6416_v16 = vld [vmem:[%s9703_s2 + $0x368] sm:$0xff]  ;;  %v6418_v3 = vpop.f32.mrf.mxu1  ;;  %v6425_v22 = vld [vmem:[%s9703_s2 + $0x2e0] sm:$0xff] }
 0x1c5   :  { %9939 = vst [vmem:[#allocation30_spill] sm:$0xff] %v6416_v16  ;;  %4876 = vmatpush3.msra.mxu0 %v6392_v23  ;;  %5321 = vmatpush3.msra.mxu1 %v6397_v20  ;;  %9940 = vst [vmem:[#allocation31_spill] sm:$0xff] %v6425_v22  ;;  %v6437_v23 = vld [vmem:[%s9703_s2 + $0x360] sm:$0xff] }
 0x1c6   :  { %4877 = vmatprep.subr.mxu0 %v6404_v11  ;;  %5322 = vmatprep.subr.mxu1 %v9929_v37  ;;  %9942 = vst [vmem:[#allocation33_spill] sm:$0xff] %v6437_v23  ;;  %v5317_v20 = vpop.f32.mrf.mxu1  ;;  %v6444_v11 = vld [vmem:[%s9703_s2 + $0x2d8] sm:$0xff] }
 0x1c7   :  { %4878 = vmatpush3.msra.mxu0 %v6411_v7  ;;  %5323 = vmatpush3.msra.mxu1 %v6416_v16  ;;  %9943 = vst [vmem:[#allocation34_spill] sm:$0xff] %v6444_v11  ;;  %v6456_v20 = vld [vmem:[%s9703_s2 + $0x358] sm:$0xff]  ;;  %v6470_v16 = vld [vmem:[%s9703_s2 + $0x250] sm:$0xff] }
 0x1c8   :  { %4879 = vmatprep.subr.mxu0 %v6425_v22  ;;  %5324 = vmatprep.subr.mxu1 %v9929_v37  ;;  %9945 = vst [vmem:[#allocation36_spill] sm:$0xff] %v6456_v20  ;;  %v6463_v22 = vld [vmem:[%s9703_s2 + $0x2d0] sm:$0xff]  ;;  %9947 = vst [vmem:[#allocation38_spill] sm:$0xff] %v6470_v16 }
 0x1c9   :  { %4880 = vmatpush3.msra.mxu0 %v6432_v6  ;;  %5325 = vmatpush3.msra.mxu1 %v6437_v23  ;;  %9946 = vst [vmem:[#allocation37_spill] sm:$0xff] %v6463_v22  ;;  %v6475_v6 = vld [vmem:[%s9703_s2 + $0x350] sm:$0xff]  ;;  %v6489_v23 = vld [vmem:[%s9703_s2 + $0x248] sm:$0xff] }
 0x1ca   :  { %4881 = vmatprep.subr.mxu0 %v6444_v11  ;;  %5326 = vmatprep.subr.mxu1 %v9929_v37  ;;  %9948 = vst [vmem:[#allocation39_spill] sm:$0xff] %v6475_v6  ;;  %v6482_v11 = vld [vmem:[%s9703_s2 + $0x2c8] sm:$0xff]  ;;  %9950 = vst [vmem:[#allocation41_spill] sm:$0xff] %v6489_v23  ;;  %v6624_v7 = vld [vmem:[%s9703_s2 + $0x210] sm:$0xff] }
 0x1cb   :  { %4882 = vmatpush3.msra.mxu0 %v6451_v9  ;;  %5327 = vmatpush3.msra.mxu1 %v6456_v20  ;;  %9949 = vst [vmem:[#allocation40_spill] sm:$0xff] %v6482_v11  ;;  %v6494_v9 = vld [vmem:[%s9703_s2 + $0x348] sm:$0xff]  ;;  %v6508_v20 = vld [vmem:[%s9703_s2 + $0x240] sm:$0xff] }
 0x1cc   :  { %4883 = vmatprep.subr.mxu0 %v6463_v22  ;;  %5328 = vmatprep.subr.mxu1 %v9929_v37  ;;  %9951 = vst [vmem:[#allocation42_spill] sm:$0xff] %v6494_v9  ;;  %v6501_v22 = vld [vmem:[%s9703_s2 + $0x2c0] sm:$0xff]  ;;  %9953 = vst [vmem:[#allocation44_spill] sm:$0xff] %v6508_v20 }
 0x1cd   :  { %4884 = vmatpush3.msra.mxu0 %v6470_v16  ;;  %5329 = vmatpush3.msra.mxu1 %v6475_v6  ;;  %9952 = vst [vmem:[#allocation43_spill] sm:$0xff] %v6501_v22  ;;  %v6513_v16 = vld [vmem:[%s9703_s2 + $0x340] sm:$0xff]  ;;  %v6527_v6 = vld [vmem:[%s9703_s2 + $0x238] sm:$0xff] }
 0x1ce   :  { %4885 = vmatprep.subr.mxu0 %v6482_v11  ;;  %5330 = vmatprep.subr.mxu1 %v9929_v37  ;;  %9954 = vst [vmem:[#allocation45_spill] sm:$0xff] %v6513_v16  ;;  %v6520_v11 = vld [vmem:[%s9703_s2 + $0x2b8] sm:$0xff]  ;;  %9956 = vst [vmem:[#allocation47_spill] sm:$0xff] %v6527_v6 }
 0x1cf   :  { %4886 = vmatpush3.msra.mxu0 %v6489_v23  ;;  %5331 = vmatpush3.msra.mxu1 %v6494_v9  ;;  %9955 = vst [vmem:[#allocation46_spill] sm:$0xff] %v6520_v11  ;;  %v6532_v23 = vld [vmem:[%s9703_s2 + $0x338] sm:$0xff]  ;;  %v6546_v9 = vld [vmem:[%s9703_s2 + $0x230] sm:$0xff] }
 0x1d0   :  { %4887 = vmatprep.subr.mxu0 %v6501_v22  ;;  %5332 = vmatprep.subr.mxu1 %v9929_v37  ;;  %9957 = vst [vmem:[#allocation48_spill] sm:$0xff] %v6532_v23  ;;  %v6539_v22 = vld [vmem:[%s9703_s2 + $0x2b0] sm:$0xff]  ;;  %9959 = vst [vmem:[#allocation50_spill] sm:$0xff] %v6546_v9 }
 0x1d1   :  { %4888 = vmatpush3.msra.mxu0 %v6508_v20  ;;  %5333 = vmatpush3.msra.mxu1 %v6513_v16  ;;  %9958 = vst [vmem:[#allocation49_spill] sm:$0xff] %v6539_v22  ;;  %v6551_v20 = vld [vmem:[%s9703_s2 + $0x330] sm:$0xff]  ;;  %v6565_v16 = vld [vmem:[%s9703_s2 + $0x228] sm:$0xff] }
 0x1d2   :  { %4889 = vmatprep.subr.mxu0 %v6520_v11  ;;  %5334 = vmatprep.subr.mxu1 %v9929_v37  ;;  %9960 = vst [vmem:[#allocation51_spill] sm:$0xff] %v6551_v20  ;;  %v6558_v11 = vld [vmem:[%s9703_s2 + $0x2a8] sm:$0xff]  ;;  %9962 = vst [vmem:[#allocation53_spill] sm:$0xff] %v6565_v16 }
 0x1d3   :  { %4890 = vmatpush3.msra.mxu0 %v6527_v6  ;;  %5335 = vmatpush3.msra.mxu1 %v6532_v23  ;;  %9961 = vst [vmem:[#allocation52_spill] sm:$0xff] %v6558_v11  ;;  %v6570_v6 = vld [vmem:[%s9703_s2 + $0x328] sm:$0xff]  ;;  %v6584_v23 = vld [vmem:[%s9703_s2 + $0x220] sm:$0xff] }
 0x1d4   :  { %4891 = vmatprep.subr.mxu0 %v6539_v22  ;;  %5336 = vmatprep.subr.mxu1 %v9929_v37  ;;  %9963 = vst [vmem:[#allocation54_spill] sm:$0xff] %v6570_v6  ;;  %v6577_v22 = vld [vmem:[%s9703_s2 + $0x2a0] sm:$0xff]  ;;  %9965 = vst [vmem:[#allocation56_spill] sm:$0xff] %v6584_v23 }
 0x1d5   :  { %4892 = vmatpush3.msra.mxu0 %v6546_v9  ;;  %5337 = vmatpush3.msra.mxu1 %v6551_v20  ;;  %9964 = vst [vmem:[#allocation55_spill] sm:$0xff] %v6577_v22  ;;  %v6589_v9 = vld [vmem:[%s9703_s2 + $0x320] sm:$0xff]  ;;  %v6603_v20 = vld [vmem:[%s9703_s2 + $0x218] sm:$0xff] }
 0x1d6   :  { %4893 = vmatprep.subr.mxu0 %v6558_v11  ;;  %5338 = vmatprep.subr.mxu1 %v9929_v37  ;;  %9966 = vst [vmem:[#allocation57_spill] sm:$0xff] %v6589_v9  ;;  %v6596_v11 = vld [vmem:[%s9703_s2 + $0x298] sm:$0xff]  ;;  %9968 = vst [vmem:[#allocation59_spill] sm:$0xff] %v6603_v20 }
 0x1d7   :  { %4894 = vmatpush3.msra.mxu0 %v6565_v16  ;;  %5339 = vmatpush3.msra.mxu1 %v6570_v6  ;;  %9967 = vst [vmem:[#allocation58_spill] sm:$0xff] %v6596_v11  ;;  %v6608_v16 = vld [vmem:[%s9703_s2 + $0x318] sm:$0xff]  ;;  %v6617_v6 = vpop.f32.mrf.mxu0 }
 0x1d8   :  { %4895 = vmatprep.subr.mxu0 %v6577_v22  ;;  %5340 = vmatprep.subr.mxu1 %v9929_v37  ;;  %9969 = vst [vmem:[#allocation60_spill] sm:$0xff] %v6608_v16  ;;  %v6615_v22 = vld [vmem:[%s9703_s2 + $0x290] sm:$0xff] }
 0x1d9   :  { %4896 = vmatpush3.msra.mxu0 %v6584_v23  ;;  %5341 = vmatpush3.msra.mxu1 %v6589_v9  ;;  %9970 = vst [vmem:[#allocation61_spill] sm:$0xff] %v6615_v22  ;;  %v6629_v9 = vld [vmem:[%s9703_s2 + $0x310] sm:$0xff]  ;;  %v6643_v23 = vld [vmem:[%s9703_s2 + $0x208] sm:$0xff] }
 0x1da   :  { %4897 = vmatprep.subr.mxu0 %v6596_v11  ;;  %5342 = vmatprep.subr.mxu1 %v9929_v37  ;;  %9971 = vst [vmem:[#allocation62_spill] sm:$0xff] %v6629_v9  ;;  %v6636_v11 = vld [vmem:[%s9703_s2 + $0x288] sm:$0xff] }
 0x1db   :  { %4898 = vmatpush3.msra.mxu0 %v6603_v20  ;;  %5343 = vmatpush3.msra.mxu1 %v6608_v16  ;;  %v6648_v20 = vld [vmem:[%s9703_s2 + $0x308] sm:$0xff]  ;;  %v6652_v16 = vpop.f32.mrf.mxu0 }
 0x1dc   :  { %4899 = vmatprep.subr.mxu0 %v6615_v22  ;;  %5344 = vmatprep.subr.mxu1 %v9929_v37  ;;  %9972 = vst [vmem:[#allocation63_spill] sm:$0xff] %v6648_v20  ;;  %v6657_v22 = vld [vmem:[%s9703_s2 + $0x280] sm:$0xff] }
 0x1dd   :  { %4900 = vmatpush3.msra.mxu0 %v6624_v7  ;;  %5345 = vmatpush3.msra.mxu1 %v6629_v9  ;;  %9973 = vst [vmem:[#allocation64_spill] sm:$0xff] %v6657_v22  ;;  %v6671_v9 = vld [vmem:[%s9703_s2 + $0x300] sm:$0xff] }
 0x1de   :  { %4901 = vmatprep.subr.mxu0 %v6636_v11  ;;  %5346 = vmatprep.subr.mxu1 %v9929_v37 }
 0x1df   :  { %4902 = vmatpush3.msra.mxu0 %v6643_v23  ;;  %5347 = vmatpush3.msra.mxu1 %v6648_v20  ;;  %v1425_v20 = vmul.f32 %v6366_v10, %v6366_v10 }
 0x1e0   :  { %4903 = vmatprep.subr.mxu0 %v6657_v22  ;;  %1348 = vmatprep.mubr.f32.mxu0 %v6652_v16  ;;  %v1427_v22 = vmul.f32 %v6368_v17, %v6368_v17 }
 0x1e1   :  { %5348 = vmatprep.subr.mxu1 %v9929_v37  ;;  %4904 = vmatpush3.msra.mxu0 %v6664_v42 }
 0x1e2   :  { %5349 = vmatpush3.msra.mxu1 %v6671_v9  ;;  %5350 = vmatprep.mubr.msk.f32.mxu1 %vm5516_vm10, %v9929_v37 }
 0x1e3   :  { %1349 = vmatmul.mubr.f32.vlgmr.msra.gmra.mxu0 %v6617_v6  ;;  %5351 = vmatmul.mubr.f32.vlgmr.msra.gmra.mxu1 %v6418_v3 }
 0x1e4   :  { %4925 = vmatprep.subr.mxu0 %v5969_v43  ;;  %4960 = vmatprep.subr.mxu1 %v5974_v44  ;;  %v9975_v43 = vld [vmem:[#allocation8_spill] sm:$0xff]  ;;  %v9976_v44 = vld [vmem:[#allocation9_spill] sm:$0xff] }
 0x1e5   :  { %4926 = vmatpush3.msra.mxu0 %v5982_v45  ;;  %1495 = vmatprep.mubr.f32.mxu0 %v1425_v20  ;;  %v9977_v45 = vld [vmem:[#allocation10_spill] sm:$0xff]  ;;  %v10023_v20 = vld [vmem:[#allocation56_spill] sm:$0xff] }
 0x1e6   :  { %4961 = vmatpush3.msra.mxu1 %v5987_v46  ;;  %1565 = vmatprep.mubr.f32.mxu1 %v1427_v22  ;;  %v9974_v22 = vld [vmem:[#allocation7_spill] sm:$0xff] }
 0x1e7   :  { %4927 = vmatprep.subr.mxu0 %v5994_v47  ;;  %4962 = vmatprep.subr.mxu1 %v5999_v48  ;;  %v9978_v46 = vld [vmem:[#allocation11_spill] sm:$0xff]  ;;  %v9979_v47 = vld [vmem:[#allocation12_spill] sm:$0xff]  ;;  %v9980_v48 = vld [vmem:[#allocation13_spill] sm:$0xff] }
 0x1e8   :  { %4928 = vmatpush3.msra.mxu0 %v6006_v49  ;;  %4963 = vmatpush3.msra.mxu1 %v6011_v50  ;;  %v9981_v49 = vld [vmem:[#allocation14_spill] sm:$0xff]  ;;  %v9982_v50 = vld [vmem:[#allocation15_spill] sm:$0xff] }
 0x1e9   :  { %4929 = vmatprep.subr.mxu0 %v6018_v51  ;;  %4964 = vmatprep.subr.mxu1 %v6023_v52  ;;  %v9983_v51 = vld [vmem:[#allocation21_spill] sm:$0xff] }
 0x1ea   :  { %4930 = vmatpush3.msra.mxu0 %v6030_v53  ;;  %4965 = vmatpush3.msra.mxu1 %v6035_v54  ;;  %v1424_v52 = vmul.f32 %v9983_v51, %v9983_v51  ;;  %v9984_v53 = vld [vmem:[#allocation22_spill] sm:$0xff] }
 0x1eb   :  { %4931 = vmatprep.subr.mxu0 %v6042_v55  ;;  %4966 = vmatprep.subr.mxu1 %v6047_v56  ;;  %v1426_v54 = vmul.f32 %v9984_v53, %v9984_v53  ;;  %v9985_v55 = vld [vmem:[#allocation16_spill] sm:$0xff]  ;;  %v9986_v56 = vld [vmem:[#allocation17_spill] sm:$0xff] }
 0x1ec   :  { %4932 = vmatpush3.msra.mxu0 %v6054_v57  ;;  %4967 = vmatpush3.msra.mxu1 %v6059_v58  ;;  %v9987_v57 = vld [vmem:[#allocation18_spill] sm:$0xff]  ;;  %v9988_v58 = vld [vmem:[#allocation19_spill] sm:$0xff] }
 0x1ed   :  { %4933 = vmatprep.subr.mxu0 %v6066_v59  ;;  %4968 = vmatprep.subr.mxu1 %v6071_v60  ;;  %v1429_v59 = vmul.f32 %v6652_v16, %v6652_v16  ;;  %v9989_v60 = vld [vmem:[#allocation20_spill] sm:$0xff] }
 0x1ee   :  { %4934 = vmatpush3.msra.mxu0 %v6078_v61  ;;  %4969 = vmatpush3.msra.mxu1 %v6083_v62  ;;  %v9990_v61 = vld [vmem:[#allocation23_spill] sm:$0xff]  ;;  %v9991_v62 = vld [vmem:[#allocation24_spill] sm:$0xff] }
 0x1ef   :  { %4935 = vmatprep.subr.mxu0 %v6090_v63  ;;  %4970 = vmatprep.subr.mxu1 %v6095_v0  ;;  %v9992_v63 = vld [vmem:[#allocation25_spill] sm:$0xff]  ;;  %v9993_v0 = vld [vmem:[#allocation26_spill] sm:$0xff] }
 0x1f0   :  { %4936 = vmatpush3.msra.mxu0 %v6102_v1  ;;  %4971 = vmatpush3.msra.mxu1 %v6107_v2  ;;  %v9994_v1 = vld [vmem:[#allocation27_spill] sm:$0xff]  ;;  %v9995_v2 = vld [vmem:[#allocation28_spill] sm:$0xff] }
 0x1f1   :  { %4937 = vmatprep.subr.mxu0 %v6114_v4  ;;  %4972 = vmatprep.subr.mxu1 %v6119_v5  ;;  %v9996_v4 = vld [vmem:[#allocation29_spill] sm:$0xff]  ;;  %v9997_v5 = vld [vmem:[#allocation30_spill] sm:$0xff] }
 0x1f2   :  { %4938 = vmatpush3.msra.mxu0 %v6126_v8  ;;  %4973 = vmatpush3.msra.mxu1 %v6131_v12  ;;  %v9998_v8 = vld [vmem:[#allocation31_spill] sm:$0xff]  ;;  %v9999_v12 = vld [vmem:[#allocation32_spill] sm:$0xff] }
 0x1f3   :  { %4939 = vmatprep.subr.mxu0 %v6138_v13  ;;  %4974 = vmatprep.subr.mxu1 %v6143_v14  ;;  %v10000_v13 = vld [vmem:[#allocation33_spill] sm:$0xff]  ;;  %v10001_v14 = vld [vmem:[#allocation34_spill] sm:$0xff] }
 0x1f4   :  { %4940 = vmatpush3.msra.mxu0 %v6150_v15  ;;  %4975 = vmatpush3.msra.mxu1 %v6155_v18  ;;  %v10002_v15 = vld [vmem:[#allocation35_spill] sm:$0xff]  ;;  %v10003_v18 = vld [vmem:[#allocation36_spill] sm:$0xff] }
 0x1f5   :  { %4941 = vmatprep.subr.mxu0 %v6162_v19  ;;  %4976 = vmatprep.subr.mxu1 %v6167_v21  ;;  %v10004_v19 = vld [vmem:[#allocation37_spill] sm:$0xff]  ;;  %v10005_v21 = vld [vmem:[#allocation38_spill] sm:$0xff] }
 0x1f6   :  { %4942 = vmatpush3.msra.mxu0 %v6174_v24  ;;  %4977 = vmatpush3.msra.mxu1 %v6179_v25  ;;  %v10006_v24 = vld [vmem:[#allocation39_spill] sm:$0xff]  ;;  %v10007_v25 = vld [vmem:[#allocation40_spill] sm:$0xff] }
 0x1f7   :  { %4943 = vmatprep.subr.mxu0 %v6186_v26  ;;  %4978 = vmatprep.subr.mxu1 %v6191_v27  ;;  %v10008_v26 = vld [vmem:[#allocation41_spill] sm:$0xff]  ;;  %v10009_v27 = vld [vmem:[#allocation42_spill] sm:$0xff] }
 0x1f8   :  { %4944 = vmatpush3.msra.mxu0 %v6198_v28  ;;  %4979 = vmatpush3.msra.mxu1 %v6203_v29  ;;  %v10010_v28 = vld [vmem:[#allocation43_spill] sm:$0xff]  ;;  %v10011_v29 = vld [vmem:[#allocation44_spill] sm:$0xff] }
 0x1f9   :  { %4945 = vmatprep.subr.mxu0 %v6210_v30  ;;  %4980 = vmatprep.subr.mxu1 %v6215_v31  ;;  %v10012_v30 = vld [vmem:[#allocation45_spill] sm:$0xff]  ;;  %v10013_v31 = vld [vmem:[#allocation46_spill] sm:$0xff] }
 0x1fa   :  { %4946 = vmatpush3.msra.mxu0 %v6222_v32  ;;  %4981 = vmatpush3.msra.mxu1 %v6227_v33  ;;  %v10014_v32 = vld [vmem:[#allocation47_spill] sm:$0xff]  ;;  %v10015_v33 = vld [vmem:[#allocation48_spill] sm:$0xff] }
 0x1fb   :  { %4947 = vmatprep.subr.mxu0 %v6234_v34  ;;  %4982 = vmatprep.subr.mxu1 %v6239_v35  ;;  %v10016_v34 = vld [vmem:[#allocation49_spill] sm:$0xff]  ;;  %v10017_v35 = vld [vmem:[#allocation50_spill] sm:$0xff] }
 0x1fc   :  { %4948 = vmatpush3.msra.mxu0 %v6246_v36  ;;  %4983 = vmatpush3.msra.mxu1 %v6251_v38  ;;  %v10018_v36 = vld [vmem:[#allocation51_spill] sm:$0xff]  ;;  %v10019_v38 = vld [vmem:[#allocation52_spill] sm:$0xff] }
 0x1fd   :  { %4949 = vmatprep.subr.mxu0 %v6258_v39  ;;  %4984 = vmatprep.subr.mxu1 %v6263_v40  ;;  %v10020_v39 = vld [vmem:[#allocation53_spill] sm:$0xff]  ;;  %v10021_v40 = vld [vmem:[#allocation54_spill] sm:$0xff] }
 0x1fe   :  { %4950 = vmatpush3.msra.mxu0 %v6270_v41  ;;  %4985 = vmatpush3.msra.mxu1 %v9974_v22  ;;  %v10022_v41 = vld [vmem:[#allocation55_spill] sm:$0xff]  ;;  %v10024_v22 = vld [vmem:[#allocation57_spill] sm:$0xff] }
 0x1ff   :  { %4951 = vmatprep.subr.mxu0 %v9975_v43  ;;  %4986 = vmatprep.subr.mxu1 %v9976_v44  ;;  %v10025_v43 = vld [vmem:[#allocation58_spill] sm:$0xff]  ;;  %v10026_v44 = vld [vmem:[#allocation59_spill] sm:$0xff] }
 0x200   :  { %4952 = vmatpush3.msra.mxu0 %v9977_v45  ;;  %4987 = vmatpush3.msra.mxu1 %v9978_v46  ;;  %v10027_v45 = vld [vmem:[#allocation60_spill] sm:$0xff]  ;;  %v10028_v46 = vld [vmem:[#allocation61_spill] sm:$0xff] }
 0x201   :  { %4953 = vmatprep.subr.mxu0 %v9979_v47  ;;  %4988 = vmatprep.subr.mxu1 %v9980_v48  ;;  %v10029_v47 = vld [vmem:[#allocation62_spill] sm:$0xff]  ;;  %v10030_v48 = vld [vmem:[#allocation63_spill] sm:$0xff] }
 0x202   :  { %4954 = vmatpush3.msra.mxu0 %v9981_v49  ;;  %4989 = vmatpush3.msra.mxu1 %v9982_v50  ;;  %v10031_v49 = vld [vmem:[#allocation64_spill] sm:$0xff]  ;;  %v1428_v50 = vmul.f32 %v6617_v6, %v6617_v6 }
 0x203   :  { %4955 = vmatprep.subr.mxu0 %v9985_v55  ;;  %4990 = vmatprep.subr.mxu1 %v9986_v56 }
 0x204   :  { %4956 = vmatpush3.msra.mxu0 %v9987_v57  ;;  %4991 = vmatpush3.msra.mxu1 %v9988_v58 }
 0x205   :  { %1496 = vmatmul.mubr.f32.vlgmr.msra.gmra.mxu0 %v1424_v52  ;;  %1566 = vmatmul.mubr.f32.vlgmr.msra.gmra.mxu1 %v1426_v54  ;;  %v1430_v52 = vmul.f32 %v6418_v3, %v6418_v3 }
 0x206   :  { %4995 = vmatprep.subr.mxu0 %v9989_v60  ;;  %5353 = vmatprep.subr.mxu1 %v9929_v37 }
 0x207   :  { %4996 = vmatpush3.msra.mxu0 %v9990_v61  ;;  %1635 = vmatprep.mubr.f32.mxu0 %v1429_v59 }
 0x208   :  { %5354 = vmatpush3.msra.mxu1 %v9991_v62  ;;  %4997 = vmatprep.subr.mxu0 %v9992_v63 }
 0x209   :  { %5355 = vmatprep.subr.mxu1 %v9929_v37  ;;  %4998 = vmatpush3.msra.mxu0 %v9993_v0 }
 0x20a   :  { %5356 = vmatpush3.msra.mxu1 %v9994_v1  ;;  %4999 = vmatprep.subr.mxu0 %v9995_v2 }
 0x20b   :  { %5357 = vmatprep.subr.mxu1 %v9929_v37  ;;  %5000 = vmatpush3.msra.mxu0 %v9996_v4 }
 0x20c   :  { %5358 = vmatpush3.msra.mxu1 %v9997_v5  ;;  %5001 = vmatprep.subr.mxu0 %v9998_v8 }
 0x20d   :  { %5359 = vmatprep.subr.mxu1 %v9929_v37  ;;  %5002 = vmatpush3.msra.mxu0 %v9999_v12 }
 0x20e   :  { %5360 = vmatpush3.msra.mxu1 %v10000_v13  ;;  %5003 = vmatprep.subr.mxu0 %v10001_v14 }
 0x20f   :  { %5361 = vmatprep.subr.mxu1 %v9929_v37  ;;  %5004 = vmatpush3.msra.mxu0 %v10002_v15 }
 0x210   :  { %5362 = vmatpush3.msra.mxu1 %v10003_v18  ;;  %5005 = vmatprep.subr.mxu0 %v10004_v19 }
 0x211   :  { %5363 = vmatprep.subr.mxu1 %v9929_v37  ;;  %5006 = vmatpush3.msra.mxu0 %v10005_v21 }
 0x212   :  { %5364 = vmatpush3.msra.mxu1 %v10006_v24  ;;  %5007 = vmatprep.subr.mxu0 %v10007_v25 }
 0x213   :  { %5365 = vmatprep.subr.mxu1 %v9929_v37  ;;  %5008 = vmatpush3.msra.mxu0 %v10008_v26 }
 0x214   :  { %5366 = vmatpush3.msra.mxu1 %v10009_v27  ;;  %5009 = vmatprep.subr.mxu0 %v10010_v28 }
 0x215   :  { %5367 = vmatprep.subr.mxu1 %v9929_v37  ;;  %5010 = vmatpush3.msra.mxu0 %v10011_v29 }
 0x216   :  { %5368 = vmatpush3.msra.mxu1 %v10012_v30  ;;  %5011 = vmatprep.subr.mxu0 %v10013_v31  ;;  %v5518_v31 = vmov 1  }
 0x217   :  { %5369 = vmatprep.subr.mxu1 %v9929_v37  ;;  %5012 = vmatpush3.msra.mxu0 %v10014_v32  ;;  %v1716_v32 = vld [vmem:[%s9704_s6] sm:$0xff] }
 0x218   :  { %5370 = vmatpush3.msra.mxu1 %v10015_v33  ;;  %5013 = vmatprep.subr.mxu0 %v10016_v34 }
 0x219   :  { %5371 = vmatprep.subr.mxu1 %v9929_v37  ;;  %5014 = vmatpush3.msra.mxu0 %v10017_v35 }
 0x21a   :  { %5372 = vmatpush3.msra.mxu1 %v10018_v36  ;;  %5015 = vmatprep.subr.mxu0 %v10019_v38 }
 0x21b   :  { %5373 = vmatprep.subr.mxu1 %v9929_v37  ;;  %5016 = vmatpush3.msra.mxu0 %v10020_v39 }
 0x21c   :  { %5374 = vmatpush3.msra.mxu1 %v10021_v40  ;;  %5017 = vmatprep.subr.mxu0 %v10022_v41  ;;  %v5504_v40 = vld [vmem:[%s9701_s1] sm:$0xff]  ;;  %v10032_v41 = vld [vmem:[#allocation3_spill] sm:$0xff]  ;;  %s5519_s1 = smov 110  }
 0x21d   :  { %5375 = vmatprep.subr.mxu1 %v9929_v37  ;;  %5018 = vmatpush3.msra.mxu0 %v10023_v20  ;;  %v10033_v20 = vsub.s32 0, %v10032_v41 }
 0x21e   :  { %5376 = vmatpush3.msra.mxu1 %v10024_v22  ;;  %5019 = vmatprep.subr.mxu0 %v10025_v43 }
 0x21f   :  { %5377 = vmatprep.subr.mxu1 %v9929_v37  ;;  %5020 = vmatpush3.msra.mxu0 %v10026_v44  ;;  %v6835_v22 = vrot.slane %v5504_v40, %v10033_v20 }
 0x220   :  { %5378 = vmatpush3.msra.mxu1 %v10027_v45  ;;  %5021 = vmatprep.subr.mxu0 %v10028_v46  ;;  %v10035_v46 = vsub.s32 1, %v10032_v41 }
 0x221   :  { %5379 = vmatprep.subr.mxu1 %v9929_v37  ;;  %5022 = vmatpush3.msra.mxu0 %v6624_v7  ;;  %v5517_v7 = vmov 0   ;;  %10034 = vst [vmem:[#allocation7_spill] sm:$0xff] %v6835_v22 }
 0x222   :  { %5380 = vmatpush3.msra.mxu1 %v10029_v47  ;;  %5023 = vmatprep.subr.mxu0 %v6636_v11  ;;  %v6842_v47 = vrot.slane %v5504_v40, %v10035_v46 }
 0x223   :  { %5381 = vmatprep.subr.mxu1 %v9929_v37  ;;  %5024 = vmatpush3.msra.mxu0 %v6643_v23 }
 0x224   :  { %5382 = vmatpush3.msra.mxu1 %v10030_v48  ;;  %5025 = vmatprep.subr.mxu0 %v10031_v49  ;;  %10036 = vst [vmem:[#allocation8_spill] sm:$0xff] %v6842_v47 }
 0x225   :  { %5383 = vmatprep.subr.mxu1 %v9929_v37  ;;  %5026 = vmatpush3.msra.mxu0 %v6664_v42 }
 0x226   :  { %5384 = vmatpush3.msra.mxu1 %v6671_v9  ;;  %5385 = vmatprep.mubr.msk.f32.mxu1 %vm5516_vm10, %v9929_v37 }
 0x227   :  { %1636 = vmatmul.mubr.f32.vlgmr.msra.gmra.mxu0 %v1428_v50  ;;  %5386 = vmatmul.mubr.f32.vlgmr.msra.gmra.mxu1 %v1430_v52  ;;  %v10037_v52 = vsub.s32 4, %v10032_v41 }
 0x228   :  { %5491 = vset.pattern.permute.xlu1 %v5517_v7  ;;  %5492 = vset.pattern.permute.xlu0 %v5518_v31 }
 0x229   :  { %v6849_v7 = vrot.slane %v5504_v40, %v10037_v52 }
 0x22b   :  { %10038 = vst [vmem:[#allocation9_spill] sm:$0xff] %v6849_v7 }
 0x282   :  { %v4870_v11 = vpop.f32.mrf.mxu1  ;;  %v4835_v55 = vpop.f32.mrf.mxu0 }
 0x284   :  { %v4871_v23 = vpop.f32.mrf.mxu1  ;;  %v4836_v56 = vpop.f32.mrf.mxu0 }
 0x285   :  { %v4872_v54 = vadd.f32 %v4871_v23, %v4870_v11  ;;  %v4837_v57 = vadd.f32 %v4836_v56, %v4835_v55  ;;  %v10041_v55 = vsub.s32 6, %v10032_v41 }
 0x287   :  { %v1281_v42 = vadd.f32 %v4872_v54, %v4837_v57  ;;  %v6857_v56 = vrot.slane %v5504_v40, %v10041_v55 }
 0x289   :  { %10042 = vst [vmem:[#allocation11_spill] sm:$0xff] %v6857_v56 }
 0x2a3   :  { %v4905_v58 = vpop.f32.mrf.mxu0  ;;  %v1420_v59 = vpop.f32.mrf.mxu1 }
 0x2a5   :  { %v4906_v60 = vpop.f32.mrf.mxu0  ;;  %v5352_v61 = vpop.f32.mrf.mxu1 }
 0x2a6   :  { %v4907_v62 = vadd.f32 %v4906_v60, %v4905_v58 }
 0x2a8   :  { %v1351_v9 = vadd.f32 %v4907_v62, %v1281_v42  ;;  %v10043_v42 = vsub.s32 2, %v10032_v41 }
 0x2aa   :  { %v1421_v63 = vadd.f32 %v1420_v59, %v1351_v9  ;;  %v6861_v62 = vrot.slane %v5504_v40, %v10043_v42 }
 0x2ac   :  { %v1711_v21 = vmul.f32 0.001953125, %v1421_v63  ;;  %10044 = vst [vmem:[#allocation12_spill] sm:$0xff] %v6861_v62 }
 0x2ae   :  { %v1713_v26 = vmul.f32 %v1711_v21, %v1711_v21 }
 0x2c5   :  { %v4957_v0 = vpop.f32.mrf.mxu0  ;;  %v4992_v1 = vpop.f32.mrf.mxu1 }
 0x2c7   :  { %v4958_v2 = vpop.f32.mrf.mxu0  ;;  %v4993_v4 = vpop.f32.mrf.mxu1 }
 0x2c8   :  { %v4959_v5 = vadd.f32 %v4958_v2, %v4957_v0  ;;  %v4994_v8 = vadd.f32 %v4993_v4, %v4992_v1 }
 0x2ca   :  { %v1568_v18 = vadd.f32 %v4994_v8, %v4959_v5 }
 0x2e7   :  { %v5027_v12 = vpop.f32.mrf.mxu0  ;;  %v1707_v13 = vpop.f32.mrf.mxu1 }
 0x2e9   :  { %v5028_v14 = vpop.f32.mrf.mxu0  ;;  %v5387_v15 = vpop.f32.mrf.mxu1 }
 0x2ea   :  { %v5029_v19 = vadd.f32 %v5028_v14, %v5027_v12 }
 0x2ec   :  { %v1638_v24 = vadd.f32 %v5029_v19, %v1568_v18 }
 0x2ee   :  { %v1708_v25 = vadd.f32 %v1707_v13, %v1638_v24  ;;  %v10045_v13 = vsub.s32 3, %v10032_v41 }
 0x2f0   :  { %v1712_v27 = vmul.f32 0.001953125, %v1708_v25  ;;  %v6903_v14 = vrot.slane %v5504_v40, %v10045_v13 }
 0x2f2   :  { %v1714_v28 = vsub.f32 %v1712_v27, %v1713_v26  ;;  %10046 = vst [vmem:[#allocation13_spill] sm:$0xff] %v6903_v14 }
 0x2f4   :  { %v1715_v29 = vmax.f32 %v1714_v28, 0.0 }
 0x2f6   :  { %v1717_v30 = vadd.f32 1e-05, %v1715_v29 }
 0x2f8   :  { %5498 = vrsqrt.f32 %v1717_v30 }
 0x305   :  { %v5499_v33 = vpop.eup %5498 }
 0x306   :  { %v1719_v34 = vmul.f32 %v5499_v33, %v1716_v32 }
 0x308   :  { %1728 = vperm.xlu1 %5491, %v1719_v34   ;;  %v1720_v35 = vmul.f32 %v1719_v34, %v1711_v21  ;;  %v10047_v21 = vld [vmem:[#allocation5_spill] sm:$0xff] }
 0x309   :  { %vm2222_vm11 = vcmp.lt.s32.totalorder %v10047_v21, 110  ;;  %vm2193_vm12 = vcmp.lt.s32.totalorder %v10047_v21, 126  ;;  %vm2101_vm13 = vcmp.lt.s32.totalorder %v10047_v21, 2  ;;  %vm9786_vm14 = vcmp.lt.s32.totalorder %v10047_v21, 18 }
 0x30a   :  { %1722 = vrot.lane.b32.xlu0 %v1720_v35, %s5511_s8  ;;  %vm9789_vm15 = vcmp.lt.s32.totalorder %v10047_v21, 22  ;;  %vm9791_vm10 = vcmp.lt.s32.totalorder %v10047_v21, 38  ;;  %vm9790_vm9 = vcmp.lt.s32.totalorder %v10047_v21, 39 }
 0x37c   :  { %v1723_v36 = vpop.permute.xlu0 %1722 }
 0x37d   :  { %v1725_v38 = vsub.f32 %v1716_v32, %v1723_v36 }
 0x37f   :  { %1740 = vperm.xlu0 %5492, %v1725_v38  }
 0x383   :  { %v1729_v39 = vpop.permute.xlu1 %1728 }
 0x384   :  { %v1731_v43 = vmul.f32 %v1729_v39, %v9983_v51  ;;  %v1732_v44 = vmul.f32 %v1729_v39, %v6366_v10  ;;  %v1733_v45 = vmul.f32 %v1729_v39, %v9984_v53  ;;  %v1735_v48 = vmul.f32 %v1729_v39, %v6617_v6 }
 0x385   :  { %v1736_v49 = vmul.f32 %v1729_v39, %v6652_v16  ;;  %v1737_v50 = vmul.f32 %v1729_v39, %v6418_v3  ;;  %v10039_v51 = vsub.s32 5, %v10032_v41  ;;  %v1734_v8 = vmul.f32 %v1729_v39, %v6368_v17 }
 0x387   :  { %v6853_v10 = vrot.slane %v5504_v40, %v10039_v51 }
 0x389   :  { %10040 = vst [vmem:[#allocation10_spill] sm:$0xff] %v6853_v10 }
 0x3fa   :  { %v1741_v11 = vpop.permute.xlu0 %1740 }
 0x3fb   :  { %v1743_v53 = vadd.f32 %v1741_v11, %v1731_v43  ;;  %v1744_v23 = vadd.f32 %v1741_v11, %v1732_v44  ;;  %v1745_v54 = vadd.f32 %v1741_v11, %v1733_v45  ;;  %v1747_v6 = vadd.f32 %v1741_v11, %v1735_v48 }
 0x3fc   :  { %v1748_v16 = vadd.f32 %v1741_v11, %v1736_v49  ;;  %v1749_v57 = vadd.f32 %v1741_v11, %v1737_v50  ;;  %v1746_v12 = vadd.f32 %v1741_v11, %v1734_v8 }
 0x3fd   :  { %v1750_v3 = vmax.f32 %v1743_v53, 0.0  ;;  %v1751_v58 = vmax.f32 %v1744_v23, 0.0  ;;  %v1754_v59 = vmax.f32 %v1747_v6, 0.0  ;;  %v1752_v9 = vmax.f32 %v1745_v54, 0.0 }
 0x3fe   :  { %v1755_v60 = vmax.f32 %v1748_v16, 0.0  ;;  %v1756_v61 = vmax.f32 %v1749_v57, 0.0  ;;  %v1753_v15 = vmax.f32 %v1746_v12, 0.0 }
 0x3ff   :  { %v6864_v63 = vmul.f32 %v6835_v22, %v1750_v3  ;;  %v6867_v0 = vmul.f32 %v6842_v47, %v1751_v58  ;;  %v6870_v1 = vmul.f32 %v6849_v7, %v1754_v59  ;;  %v6886_v5 = vmul.f32 %v6861_v62, %v1752_v9 }
 0x400   :  { %v6873_v2 = vmul.f32 %v6853_v10, %v1755_v60  ;;  %v6876_v4 = vmul.f32 %v6857_v56, %v1756_v61  ;;  %v6910_v17 = vmul.f32 %v6903_v14, %v1753_v15 }
 0x401   :  { %2210 = vrot.lane.b32.xlu1 %v6867_v0, %s5519_s1  ;;  %2208 = vrot.lane.b32.xlu0 %v6864_v63, %s5519_s1  ;;  %2148 = vst [vmem:[#allocation2 + $0x2c0] sm:$0xff] %v6870_v1 }
 0x402   :  { %2149 = vst [vmem:[#allocation2 + $0x2c8] sm:$0xff] %v6873_v2  ;;  %2150 = vst [vmem:[#allocation2 + $0x2d0] sm:$0xff] %v6876_v4 }
 0x405   :  { %2212 = vrot.lane.b32.xlu1 %v6886_v5, %s5519_s1  ;;  %2183 = vrot.lane.b32.xlu0 %v6886_v5, %s5520_s20 }
 0x409   :  { %2181 = vrot.lane.b32.xlu1 %v6867_v0, %s5520_s20  ;;  %2153 = vrot.lane.b32.xlu0 %v6867_v0, %s5512_s9  ;;  %v5505_v14 = vld [vmem:[#allocation2 + $0x2d0] sm:$0xff] }
 0x40d   :  { %2179 = vrot.lane.b32.xlu1 %v6864_v63, %s5520_s20  ;;  %2151 = vrot.lane.b32.xlu0 %v6864_v63, %s5512_s9 }
 0x411   :  { %2155 = vrot.lane.b32.xlu1 %v6886_v5, %s5512_s9  ;;  %2118 = vrot.lane.b32.xlu0 %v6867_v0, %s5511_s8 }
 0x415   :  { %2116 = vrot.lane.b32.xlu1 %v6864_v63, %s5511_s8  ;;  %2214 = vrot.lane.b32.xlu0 %v6910_v17, %s5519_s1 }
 0x419   :  { %2128 = vrot.lane.b32.xlu1 %v6876_v4, %s5511_s8  ;;  %2087 = vrot.lane.b32.xlu0 %v6864_v63, %s5521_s21 }
 0x41d   :  { %2216 = vrot.lane.b32.xlu1 %v6870_v1, %s5519_s1  ;;  %2099 = vrot.lane.b32.xlu0 %v6876_v4, %s5521_s21 }
 0x421   :  { %2089 = vrot.lane.b32.xlu1 %v6867_v0, %s5521_s21  ;;  %2187 = vrot.lane.b32.xlu0 %v6870_v1, %s5520_s20 }
 0x425   :  { %2185 = vrot.lane.b32.xlu1 %v6910_v17, %s5520_s20  ;;  %2060 = vrot.lane.b32.xlu0 %v6867_v0, %s5522_s22 }
 0x429   :  { %2058 = vrot.lane.b32.xlu1 %v6864_v63, %s5522_s22  ;;  %2157 = vrot.lane.b32.xlu0 %v6910_v17, %s5512_s9 }
 0x42d   :  { %2070 = vrot.lane.b32.xlu1 %v6876_v4, %s5522_s22  ;;  %2030 = vrot.lane.b32.xlu0 %v6864_v63, %s5510_s30 }
 0x431   :  { %2159 = vrot.lane.b32.xlu1 %v6870_v1, %s5512_s9  ;;  %2042 = vrot.lane.b32.xlu0 %v6876_v4, %s5510_s30 }
 0x435   :  { %2032 = vrot.lane.b32.xlu1 %v6867_v0, %s5510_s30  ;;  %2004 = vrot.lane.b32.xlu0 %v6867_v0, %s5509_s29 }
 0x439   :  { %2002 = vrot.lane.b32.xlu1 %v6864_v63, %s5509_s29  ;;  %2120 = vrot.lane.b32.xlu0 %v6886_v5, %s5511_s8 }
 0x43d   :  { %2014 = vrot.lane.b32.xlu1 %v6876_v4, %s5509_s29  ;;  %1974 = vrot.lane.b32.xlu0 %v6864_v63, %s5508_s28 }
 0x441   :  { %2122 = vrot.lane.b32.xlu1 %v6910_v17, %s5511_s8  ;;  %1986 = vrot.lane.b32.xlu0 %v6876_v4, %s5508_s28 }
 0x445   :  { %1976 = vrot.lane.b32.xlu1 %v6867_v0, %s5508_s28  ;;  %2093 = vrot.lane.b32.xlu0 %v6910_v17, %s5521_s21 }
 0x449   :  { %2091 = vrot.lane.b32.xlu1 %v6886_v5, %s5521_s21  ;;  %1947 = vrot.lane.b32.xlu0 %v6867_v0, %s5523_s23 }
 0x44d   :  { %1945 = vrot.lane.b32.xlu1 %v6864_v63, %s5523_s23  ;;  %2062 = vrot.lane.b32.xlu0 %v6886_v5, %s5522_s22 }
 0x451   :  { %1957 = vrot.lane.b32.xlu1 %v6876_v4, %s5523_s23  ;;  %1916 = vrot.lane.b32.xlu0 %v6864_v63, %s5524_s24 }
 0x455   :  { %2064 = vrot.lane.b32.xlu1 %v6910_v17, %s5522_s22  ;;  %1928 = vrot.lane.b32.xlu0 %v6876_v4, %s5524_s24 }
 0x459   :  { %1918 = vrot.lane.b32.xlu1 %v6867_v0, %s5524_s24  ;;  %2036 = vrot.lane.b32.xlu0 %v6910_v17, %s5510_s30 }
 0x45d   :  { %2034 = vrot.lane.b32.xlu1 %v6886_v5, %s5510_s30  ;;  %1889 = vrot.lane.b32.xlu0 %v6867_v0, %s5525_s25 }
 0x461   :  { %1887 = vrot.lane.b32.xlu1 %v6864_v63, %s5525_s25  ;;  %2006 = vrot.lane.b32.xlu0 %v6886_v5, %s5509_s29 }
 0x465   :  { %1899 = vrot.lane.b32.xlu1 %v6876_v4, %s5525_s25  ;;  %1858 = vrot.lane.b32.xlu0 %v6864_v63, %s5526_s26 }
 0x469   :  { %2008 = vrot.lane.b32.xlu1 %v6910_v17, %s5509_s29  ;;  %1870 = vrot.lane.b32.xlu0 %v6876_v4, %s5526_s26 }
 0x46d   :  { %1860 = vrot.lane.b32.xlu1 %v6867_v0, %s5526_s26  ;;  %1980 = vrot.lane.b32.xlu0 %v6910_v17, %s5508_s28 }
 0x471   :  { %1978 = vrot.lane.b32.xlu1 %v6886_v5, %s5508_s28  ;;  %1831 = vrot.lane.b32.xlu0 %v6867_v0, %s5527_s27 }
 0x473   :  { %v2211_v18 = vpop.permute.xlu1 %2210  ;;  %v7008_v19 = vpop.permute.xlu0 %2208 }
 0x474   :  { %v2228_v27 = vsel %vm2222_vm11, %v7008_v19, %v2211_v18 }
 0x475   :  { %1829 = vrot.lane.b32.xlu1 %v6864_v63, %s5527_s27  ;;  %1949 = vrot.lane.b32.xlu0 %v6886_v5, %s5523_s23 }
 0x477   :  { %v2213_v24 = vpop.permute.xlu1 %2212  ;;  %v7015_v25 = vpop.permute.xlu0 %2183 }
 0x478   :  { %v2227_v26 = vsel %vm2222_vm11, %v2211_v18, %v2213_v24 }
 0x479   :  { %1841 = vrot.lane.b32.xlu1 %v6876_v4, %s5527_s27  ;;  %1800 = vrot.lane.b32.xlu0 %v6864_v63, %s5528_s12 }
 0x47a   :  { %2681 = vmatprep.subr.mxu0 %v2227_v26 }
 0x47b   :  { %v2182_v28 = vpop.permute.xlu1 %2181  ;;  %v2154_v29 = vpop.permute.xlu0 %2153  ;;  %2682 = vmatpush1.msra.mxu0 %v2228_v27 }
 0x47c   :  { %v2198_v30 = vsel %vm2193_vm12, %v2182_v28, %v7015_v25 }
 0x47d   :  { %1951 = vrot.lane.b32.xlu1 %v6910_v17, %s5523_s23  ;;  %1812 = vrot.lane.b32.xlu0 %v6876_v4, %s5528_s12 }
 0x47e   :  { %2683 = vmatprep.subr.mxu0 %v2198_v30 }
 0x47f   :  { %v7034_v31 = vpop.permute.xlu1 %2179  ;;  %v7036_v32 = vpop.permute.xlu0 %2151 }
 0x480   :  { %v2199_v33 = vsel %vm2193_vm12, %v7034_v31, %v2182_v28  ;;  %v2170_v38 = vsel %vm413_vm6, %v7036_v32, %v2154_v29 }
 0x481   :  { %1802 = vrot.lane.b32.xlu1 %v6867_v0, %s5528_s12  ;;  %1922 = vrot.lane.b32.xlu0 %v6910_v17, %s5524_s24 }
 0x482   :  { %2684 = vmatpush1.msra.mxu0 %v2199_v33 }
 0x483   :  { %v7045_v34 = vpop.permute.xlu1 %2155  ;;  %v7047_v35 = vpop.permute.xlu0 %2118 }
 0x484   :  { %v2169_v36 = vsel %vm413_vm6, %v2154_v29, %v7045_v34 }
 0x485   :  { %1920 = vrot.lane.b32.xlu1 %v6886_v5, %s5524_s24  ;;  %2470 = vrot.lane.b32.xlu0 %v6886_v5, %s5529_s13 }
 0x486   :  { %2685 = vmatprep.subr.mxu0 %v2169_v36 }
 0x487   :  { %v2117_v39 = vpop.permute.xlu1 %2116  ;;  %v2215_v40 = vpop.permute.xlu0 %2214  ;;  %2686 = vmatpush1.msra.mxu0 %v2170_v38 }
 0x488   :  { %v2135_v41 = vsel %vm9812_vm5, %v2117_v39, %v7047_v35  ;;  %2687 = vmatprep.subr.mxu0 %v6867_v0  ;;  %v2226_v49 = vsel %vm2222_vm11, %v2213_v24, %v2215_v40 }
 0x489   :  { %2468 = vrot.lane.b32.xlu1 %v6867_v0, %s5529_s13  ;;  %1893 = vrot.lane.b32.xlu0 %v6910_v17, %s5525_s25 }
 0x48a   :  { %2688 = vmatpush1.msra.mxu0 %v6864_v63 }
 0x48b   :  { %v7068_v20 = vpop.permute.xlu1 %2128  ;;  %v2088_v43 = vpop.permute.xlu0 %2087  ;;  %2689 = vmatprep.subr.mxu0 %v2135_v41 }
 0x48c   :  { %v2136_v44 = vsel %vm9812_vm5, %v7068_v20, %v2117_v39 }
 0x48d   :  { %1891 = vrot.lane.b32.xlu1 %v6886_v5, %s5525_s25  ;;  %2439 = vrot.lane.b32.xlu0 %v6867_v0, %s5530_s3 }
 0x48e   :  { %2690 = vmatpush1.msra.mxu0 %v2136_v44 }
 0x48f   :  { %v7077_v45 = vpop.permute.xlu1 %2216  ;;  %v7079_v46 = vpop.permute.xlu0 %2099 }
 0x490   :  { %v2225_v48 = vsel %vm2222_vm11, %v2215_v40, %v7077_v45  ;;  %v2108_v51 = vsel %vm2101_vm13, %v7079_v46, %v2088_v43 }
 0x491   :  { %2466 = vrot.lane.b32.xlu1 %v6864_v63, %s5529_s13  ;;  %1862 = vrot.lane.b32.xlu0 %v6886_v5, %s5526_s26 }
 0x492   :  { %2758 = vmatprep.subr.mxu1 %v2225_v48 }
 0x493   :  { %v7091_v50 = vpop.permute.xlu1 %2089  ;;  %v7093_v52 = vpop.permute.xlu0 %2187  ;;  %2759 = vmatpush1.msra.mxu1 %v2226_v49 }
 0x494   :  { %v2107_v11 = vsel %vm2101_vm13, %v2088_v43, %v7091_v50 }
 0x495   :  { %2441 = vrot.lane.b32.xlu1 %v6886_v5, %s5530_s3  ;;  %2437 = vrot.lane.b32.xlu0 %v6864_v63, %s5530_s3 }
 0x496   :  { %2691 = vmatprep.subr.mxu0 %v2107_v11 }
 0x497   :  { %v2186_v53 = vpop.permute.xlu1 %2185  ;;  %v7105_v23 = vpop.permute.xlu0 %2060  ;;  %2692 = vmatpush1.msra.mxu0 %v2108_v51 }
 0x498   :  { %v2196_v54 = vsel %vm2193_vm12, %v2186_v53, %v7093_v52  ;;  %v2197_v55 = vsel %vm2193_vm12, %v7015_v25, %v2186_v53 }
 0x499   :  { %1864 = vrot.lane.b32.xlu1 %v6910_v17, %s5526_s26  ;;  %2412 = vrot.lane.b32.xlu0 %v6886_v5, %s5531_s14 }
 0x49a   :  { %2760 = vmatprep.subr.mxu1 %v2196_v54 }
 0x49b   :  { %v2059_v6 = vpop.permute.xlu1 %2058  ;;  %v2158_v16 = vpop.permute.xlu0 %2157  ;;  %2761 = vmatpush1.msra.mxu1 %v2197_v55 }
 0x49c   :  { %v2078_v57 = vsel %vm9786_vm14, %v2059_v6, %v7105_v23  ;;  %v2168_v9 = vsel %vm413_vm6, %v7045_v34, %v2158_v16 }
 0x49d   :  { %2410 = vrot.lane.b32.xlu1 %v6867_v0, %s5531_s14  ;;  %1835 = vrot.lane.b32.xlu0 %v6910_v17, %s5527_s27 }
 0x49e   :  { %2693 = vmatprep.subr.mxu0 %v2078_v57 }
 0x49f   :  { %v7125_v3 = vpop.permute.xlu1 %2070  ;;  %v2031_v58 = vpop.permute.xlu0 %2030 }
 0x4a0   :  { %v2079_v59 = vsel %vm9786_vm14, %v7125_v3, %v2059_v6 }
 0x4a1   :  { %1833 = vrot.lane.b32.xlu1 %v6886_v5, %s5527_s27  ;;  %2381 = vrot.lane.b32.xlu0 %v6867_v0, %s5532_s15 }
 0x4a2   :  { %2694 = vmatpush1.msra.mxu0 %v2079_v59 }
 0x4a3   :  { %v7134_v60 = vpop.permute.xlu1 %2159  ;;  %v7136_v61 = vpop.permute.xlu0 %2042 }
 0x4a4   :  { %v2167_v42 = vsel %vm413_vm6, %v2158_v16, %v7134_v60  ;;  %v2050_v15 = vsel %vm9785_vm4, %v7136_v61, %v2031_v58 }
 0x4a5   :  { %2408 = vrot.lane.b32.xlu1 %v6864_v63, %s5531_s14  ;;  %1804 = vrot.lane.b32.xlu0 %v6886_v5, %s5528_s12 }
 0x4a6   :  { %2762 = vmatprep.subr.mxu1 %v2167_v42 }
 0x4a7   :  { %v7148_v8 = vpop.permute.xlu1 %2032  ;;  %v7150_v12 = vpop.permute.xlu0 %2004  ;;  %2763 = vmatpush1.msra.mxu1 %v2168_v9 }
 0x4a8   :  { %v2049_v13 = vsel %vm9785_vm4, %v2031_v58, %v7148_v8  ;;  %2764 = vmatprep.subr.mxu1 %v6910_v17 }
 0x4a9   :  { %2383 = vrot.lane.b32.xlu1 %v6886_v5, %s5532_s15  ;;  %2379 = vrot.lane.b32.xlu0 %v6864_v63, %s5532_s15 }
 0x4aa   :  { %2765 = vmatpush1.msra.mxu1 %v6886_v5  ;;  %2695 = vmatprep.subr.mxu0 %v2049_v13 }
 0x4ab   :  { %v2003_v18 = vpop.permute.xlu1 %2002  ;;  %v2121_v24 = vpop.permute.xlu0 %2120  ;;  %2696 = vmatpush1.msra.mxu0 %v2050_v15 }
 0x4ac   :  { %v2021_v25 = vsel %vm9787_vm3, %v2003_v18, %v7150_v12  ;;  %v2134_v34 = vsel %vm9812_vm5, %v7047_v35, %v2121_v24 }
 0x4ad   :  { %1806 = vrot.lane.b32.xlu1 %v6910_v17, %s5528_s12  ;;  %2354 = vrot.lane.b32.xlu0 %v6886_v5, %s5533_s16 }
 0x4ae   :  { %2697 = vmatprep.subr.mxu0 %v2021_v25 }
 0x4af   :  { %v7171_v26 = vpop.permute.xlu1 %2014  ;;  %v1975_v27 = vpop.permute.xlu0 %1974 }
 0x4b0   :  { %v2022_v28 = vsel %vm9787_vm3, %v7171_v26, %v2003_v18 }
 0x4b1   :  { %2352 = vrot.lane.b32.xlu1 %v6867_v0, %s5533_s16  ;;  %2472 = vrot.lane.b32.xlu0 %v6910_v17, %s5529_s13 }
 0x4b2   :  { %2698 = vmatpush1.msra.mxu0 %v2022_v28 }
 0x4b3   :  { %v7180_v29 = vpop.permute.xlu1 %2122  ;;  %v7182_v30 = vpop.permute.xlu0 %1986 }
 0x4b4   :  { %v2133_v33 = vsel %vm9812_vm5, %v2121_v24, %v7180_v29  ;;  %v1994_v35 = vsel %vm9788_vm2, %v7182_v30, %v1975_v27 }
 0x4b5   :  { %2350 = vrot.lane.b32.xlu1 %v6864_v63, %s5533_s16  ;;  %2323 = vrot.lane.b32.xlu0 %v6867_v0, %s5534_s17 }
 0x4b6   :  { %2766 = vmatprep.subr.mxu1 %v2133_v33  ;;  %v7298_v33 = vld [vmem:[%s9705_s4 + $0x8] sm:$0xff] }
 0x4b7   :  { %v7194_v36 = vpop.permute.xlu1 %1976  ;;  %v7196_v38 = vpop.permute.xlu0 %2093  ;;  %2767 = vmatpush1.msra.mxu1 %v2134_v34 }
 0x4b8   :  { %v1993_v39 = vsel %vm9788_vm2, %v1975_v27, %v7194_v36 }
 0x4b9   :  { %2474 = vrot.lane.b32.xlu1 %v6870_v1, %s5529_s13  ;;  %2321 = vrot.lane.b32.xlu0 %v6864_v63, %s5534_s17 }
 0x4ba   :  { %2699 = vmatprep.subr.mxu0 %v1993_v39 }
 0x4bb   :  { %v2092_v40 = vpop.permute.xlu1 %2091  ;;  %v7208_v41 = vpop.permute.xlu0 %1947  ;;  %2700 = vmatpush1.msra.mxu0 %v1994_v35 }
 0x4bc   :  { %v2105_v43 = vsel %vm2101_vm13, %v2092_v40, %v7196_v38  ;;  %v2106_v44 = vsel %vm2101_vm13, %v7091_v50, %v2092_v40 }
 0x4bd   :  { %2325 = vrot.lane.b32.xlu1 %v6886_v5, %s5534_s17  ;;  %2445 = vrot.lane.b32.xlu0 %v6870_v1, %s5530_s3 }
 0x4be   :  { %2768 = vmatprep.subr.mxu1 %v2105_v43 }
 0x4bf   :  { %v1946_v48 = vpop.permute.xlu1 %1945  ;;  %v2063_v49 = vpop.permute.xlu0 %2062  ;;  %2769 = vmatpush1.msra.mxu1 %v2106_v44 }
 0x4c0   :  { %v1965_v11 = vsel %vm9789_vm15, %v1946_v48, %v7208_v41  ;;  %v2077_v16 = vsel %vm9786_vm14, %v7105_v23, %v2063_v49 }
 0x4c1   :  { %2443 = vrot.lane.b32.xlu1 %v6910_v17, %s5530_s3  ;;  %2297 = vrot.lane.b32.xlu0 %v6886_v5, %s5506_s0 }
 0x4c2   :  { %2701 = vmatprep.subr.mxu0 %v1965_v11 }
 0x4c3   :  { %v7228_v50 = vpop.permute.xlu1 %1957  ;;  %v1917_v51 = vpop.permute.xlu0 %1916 }
 0x4c4   :  { %v1966_v53 = vsel %vm9789_vm15, %v7228_v50, %v1946_v48 }
 0x4c5   :  { %2295 = vrot.lane.b32.xlu1 %v6867_v0, %s5506_s0  ;;  %2414 = vrot.lane.b32.xlu0 %v6910_v17, %s5531_s14 }
 0x4c6   :  { %2702 = vmatpush1.msra.mxu0 %v1966_v53 }
 0x4c7   :  { %v7237_v54 = vpop.permute.xlu1 %2064  ;;  %v7239_v55 = vpop.permute.xlu0 %1928 }
 0x4c8   :  { %v2076_v6 = vsel %vm9786_vm14, %v2063_v49, %v7237_v54  ;;  %v1937_v23 = vsel %vm9791_vm10, %v7239_v55, %v1917_v51  ;;  %vm9793_vm14 = vcmp.lt.s32.totalorder %v10047_v21, 40 }
 0x4c9   :  { %2293 = vrot.lane.b32.xlu1 %v6864_v63, %s5506_s0  ;;  %2267 = vrot.lane.b32.xlu0 %v6867_v0, %s5514_s11 }
 0x4ca   :  { %2770 = vmatprep.subr.mxu1 %v2076_v6 }
 0x4cb   :  { %v7252_v57 = vpop.permute.xlu1 %1918  ;;  %v7254_v58 = vpop.permute.xlu0 %2036  ;;  %2771 = vmatpush1.msra.mxu1 %v2077_v16 }
 0x4cc   :  { %v1936_v59 = vsel %vm9791_vm10, %v1917_v51, %v7252_v57 }
 0x4cd   :  { %2416 = vrot.lane.b32.xlu1 %v6870_v1, %s5531_s14  ;;  %2265 = vrot.lane.b32.xlu0 %v6864_v63, %s5514_s11 }
 0x4ce   :  { %2703 = vmatprep.subr.mxu0 %v1936_v59 }
 0x4cf   :  { %v2035_v42 = vpop.permute.xlu1 %2034  ;;  %v7266_v9 = vpop.permute.xlu0 %1889  ;;  %2704 = vmatpush1.msra.mxu0 %v1937_v23 }
 0x4d0   :  { %v2047_v13 = vsel %vm9785_vm4, %v2035_v42, %v7254_v58  ;;  %v2048_v15 = vsel %vm9785_vm4, %v7148_v8, %v2035_v42  ;;  %vm2674_vm4 = vcmask 588800  }
 0x4d1   :  { %2269 = vrot.lane.b32.xlu1 %v6886_v5, %s5514_s11  ;;  %2387 = vrot.lane.b32.xlu0 %v6870_v1, %s5532_s15 }
 0x4d2   :  { %2772 = vmatprep.subr.mxu1 %v2047_v13  ;;  %4788 = vmatprep.mubr.msk.f32.mxu0 %vm2674_vm4, %v7298_v33 }
 0x4d3   :  { %v1888_v18 = vpop.permute.xlu1 %1887  ;;  %v2007_v24 = vpop.permute.xlu0 %2006  ;;  %2773 = vmatpush1.msra.mxu1 %v2048_v15  ;;  %4790 = vmatprep.mubr.msk.f32.mxu1 %vm2674_vm4, %v7298_v33 }
 0x4d4   :  { %v1907_v25 = vsel %vm9790_vm9, %v1888_v18, %v7266_v9  ;;  %v2020_v39 = vsel %vm9787_vm3, %v7150_v12, %v2007_v24 }
 0x4d5   :  { %2385 = vrot.lane.b32.xlu1 %v6910_v17, %s5532_s15  ;;  %2241 = vrot.lane.b32.xlu0 %v6886_v5, %s5513_s10 }
 0x4d6   :  { %2705 = vmatprep.subr.mxu0 %v1907_v25 }
 0x4d7   :  { %v7286_v8 = vpop.permute.xlu1 %1899  ;;  %v1859_v27 = vpop.permute.xlu0 %1858 }
 0x4d8   :  { %v1908_v28 = vsel %vm9790_vm9, %v7286_v8, %v1888_v18 }
 0x4d9   :  { %2239 = vrot.lane.b32.xlu1 %v6867_v0, %s5513_s10  ;;  %2356 = vrot.lane.b32.xlu0 %v6910_v17, %s5533_s16 }
 0x4da   :  { %2706 = vmatpush1.msra.mxu0 %v1908_v28 }
 0x4db   :  { %v7300_v5 = vpop.permute.xlu1 %2008  ;;  %v7302_v34 = vpop.permute.xlu0 %1870 }
 0x4dc   :  { %v2019_v0 = vsel %vm9787_vm3, %v2007_v24, %v7300_v5  ;;  %vm9792_vm3 = vcmp.lt.s32.totalorder %v10047_v21, 41 }
 0x4dd   :  { %2237 = vrot.lane.b32.xlu1 %v6864_v63, %s5513_s10  ;;  %2218 = vrot.lane.b32.xlu0 %v6873_v2, %s5519_s1  ;;  %v1879_v63 = vsel %vm9793_vm14, %v7302_v34, %v1859_v27 }
 0x4de   :  { %2774 = vmatprep.subr.mxu1 %v2019_v0 }
 0x4df   :  { %v7319_v35 = vpop.permute.xlu1 %1860  ;;  %v7321_v40 = vpop.permute.xlu0 %1980  ;;  %2775 = vmatpush1.msra.mxu1 %v2020_v39 }
 0x4e0   :  { %v1878_v43 = vsel %vm9793_vm14, %v1859_v27, %v7319_v35 }
 0x4e1   :  { %2358 = vrot.lane.b32.xlu1 %v6870_v1, %s5533_s16  ;;  %2327 = vrot.lane.b32.xlu0 %v6910_v17, %s5534_s17 }
 0x4e2   :  { %2707 = vmatprep.subr.mxu0 %v1878_v43 }
 0x4e3   :  { %v1979_v12 = vpop.permute.xlu1 %1978  ;;  %v7333_v44 = vpop.permute.xlu0 %1831  ;;  %2708 = vmatpush1.msra.mxu0 %v1879_v63 }
 0x4e4   :  { %v1991_v48 = vsel %vm9788_vm2, %v1979_v12, %v7321_v40  ;;  %v1992_v49 = vsel %vm9788_vm2, %v7194_v36, %v1979_v12  ;;  %vm9794_vm2 = vcmp.lt.s32.totalorder %v10047_v21, 42 }
 0x4e5   :  { %2220 = vrot.lane.b32.xlu1 %v6876_v4, %s5519_s1  ;;  %2189 = vrot.lane.b32.xlu0 %v6873_v2, %s5520_s20 }
 0x4e6   :  { %2776 = vmatprep.subr.mxu1 %v1991_v48 }
 0x4e7   :  { %v1830_v11 = vpop.permute.xlu1 %1829  ;;  %v1950_v51 = vpop.permute.xlu0 %1949  ;;  %2777 = vmatpush1.msra.mxu1 %v1992_v49 }
 0x4e8   :  { %v1849_v53 = vsel %vm9792_vm3, %v1830_v11, %v7333_v44  ;;  %v1964_v13 = vsel %vm9789_vm15, %v7208_v41, %v1950_v51 }
 0x4e9   :  { %2329 = vrot.lane.b32.xlu1 %v6870_v1, %s5534_s17  ;;  %2299 = vrot.lane.b32.xlu0 %v6910_v17, %s5506_s0 }
 0x4ea   :  { %2709 = vmatprep.subr.mxu0 %v1849_v53 }
 0x4eb   :  { %v7353_v36 = vpop.permute.xlu1 %1841  ;;  %v1801_v6 = vpop.permute.xlu0 %1800 }
 0x4ec   :  { %v1850_v16 = vsel %vm9792_vm3, %v7353_v36, %v1830_v11 }
 0x4ed   :  { %2191 = vrot.lane.b32.xlu1 %v6876_v4, %s5520_s20  ;;  %2161 = vrot.lane.b32.xlu0 %v6873_v2, %s5512_s9 }
 0x4ee   :  { %2710 = vmatpush1.msra.mxu0 %v1850_v16 }
 0x4ef   :  { %v7362_v59 = vpop.permute.xlu1 %1951  ;;  %v7364_v23 = vpop.permute.xlu0 %1812 }
 0x4f0   :  { %v1963_v42 = vsel %vm9789_vm15, %v1950_v51, %v7362_v59  ;;  %v1821_v41 = vsel %vm9794_vm2, %v7364_v23, %v1801_v6  ;;  %vm2480_vm15 = vcmp.lt.s32.totalorder %v10047_v21, 86 }
 0x4f1   :  { %2301 = vrot.lane.b32.xlu1 %v6870_v1, %s5506_s0  ;;  %2271 = vrot.lane.b32.xlu0 %v6910_v17, %s5514_s11 }
 0x4f2   :  { %2778 = vmatprep.subr.mxu1 %v1963_v42 }
 0x4f3   :  { %v7377_v15 = vpop.permute.xlu1 %1802  ;;  %v7379_v18 = vpop.permute.xlu0 %1922  ;;  %2779 = vmatpush1.msra.mxu1 %v1964_v13 }
 0x4f4   :  { %v1820_v24 = vsel %vm9794_vm2, %v1801_v6, %v7377_v15 }
 0x4f5   :  { %2163 = vrot.lane.b32.xlu1 %v6876_v4, %s5512_s9  ;;  %2243 = vrot.lane.b32.xlu0 %v6910_v17, %s5513_s10 }
 0x4f6   :  { %2711 = vmatprep.subr.mxu0 %v1820_v24 }
 0x4f7   :  { %v1921_v25 = vpop.permute.xlu1 %1920  ;;  %v7391_v27 = vpop.permute.xlu0 %2470  ;;  %2712 = vmatpush1.msra.mxu0 %v1821_v41 }
 0x4f8   :  { %v1934_v28 = vsel %vm9791_vm10, %v1921_v25, %v7379_v18  ;;  %v1935_v0 = vsel %vm9791_vm10, %v7252_v57, %v1921_v25  ;;  %vm2422_vm10 = vcmp.lt.s32.totalorder %v10047_v21, 88 }
 0x4f9   :  { %2273 = vrot.lane.b32.xlu1 %v6870_v1, %s5514_s11  ;;  %2124 = vrot.lane.b32.xlu0 %v6870_v1, %s5511_s8 }
 0x4fa   :  { %2780 = vmatprep.subr.mxu1 %v1934_v28 }
 0x4fb   :  { %v2469_v17 = vpop.permute.xlu1 %2468  ;;  %v7404_v39 = vpop.permute.xlu0 %1893  ;;  %2781 = vmatpush1.msra.mxu1 %v1935_v0 }
 0x4fc   :  { %v2485_v43 = vsel %vm2480_vm15, %v2469_v17, %v7391_v27 }
 0x4fd   :  { %2245 = vrot.lane.b32.xlu1 %v6870_v1, %s5513_s10  ;;  %2095 = vrot.lane.b32.xlu0 %v6870_v1, %s5521_s21 }
 0x4fe   :  { %2727 = vmatprep.subr.mxu0 %v2485_v43 }
 0x4ff   :  { %v1892_v57 = vpop.permute.xlu1 %1891  ;;  %v2440_v63 = vpop.permute.xlu0 %2439 }
 0x500   :  { %v1905_v12 = vsel %vm9790_vm9, %v1892_v57, %v7404_v39  ;;  %v1906_v48 = vsel %vm9790_vm9, %v7266_v9, %v1892_v57  ;;  %vm2451_vm9 = vcmp.lt.s32.totalorder %v10047_v21, 87 }
 0x501   :  { %2126 = vrot.lane.b32.xlu1 %v6873_v2, %s5511_s8  ;;  %2066 = vrot.lane.b32.xlu0 %v6870_v1, %s5522_s22 }
 0x502   :  { %2782 = vmatprep.subr.mxu1 %v1905_v12 }
 0x503   :  { %v7423_v49 = vpop.permute.xlu1 %2466  ;;  %v1863_v11 = vpop.permute.xlu0 %1862  ;;  %2783 = vmatpush1.msra.mxu1 %v1906_v48 }
 0x504   :  { %v2486_v51 = vsel %vm2480_vm15, %v7423_v49, %v2469_v17  ;;  %v1877_v41 = vsel %vm9793_vm14, %v7319_v35, %v1863_v11 }
 0x505   :  { %2097 = vrot.lane.b32.xlu1 %v6873_v2, %s5521_s21  ;;  %2038 = vrot.lane.b32.xlu0 %v6870_v1, %s5510_s30 }
 0x506   :  { %2728 = vmatpush2.msra.mxu0 %v2486_v51 }
 0x507   :  { %v7433_v9 = vpop.permute.xlu1 %2441  ;;  %v7435_v53 = vpop.permute.xlu0 %2437 }
 0x508   :  { %v2456_v6 = vsel %vm2451_vm9, %v2440_v63, %v7433_v9  ;;  %v2457_v16 = vsel %vm2451_vm9, %v7435_v53, %v2440_v63 }
 0x509   :  { %2068 = vrot.lane.b32.xlu1 %v6873_v2, %s5522_s22  ;;  %2010 = vrot.lane.b32.xlu0 %v6870_v1, %s5509_s29 }
 0x50a   :  { %2729 = vmatprep.subr.mxu0 %v2456_v6 }
 0x50b   :  { %v7447_v42 = vpop.permute.xlu1 %1864  ;;  %v7449_v13 = vpop.permute.xlu0 %2412  ;;  %2730 = vmatpush2.msra.mxu0 %v2457_v16 }
 0x50c   :  { %v1876_v24 = vsel %vm9793_vm14, %v1863_v11, %v7447_v42  ;;  %vm2364_vm14 = vcmp.lt.s32.totalorder %v10047_v21, 90 }
 0x50d   :  { %2040 = vrot.lane.b32.xlu1 %v6873_v2, %s5510_s30  ;;  %1982 = vrot.lane.b32.xlu0 %v6870_v1, %s5508_s28 }
 0x50e   :  { %2784 = vmatprep.subr.mxu1 %v1876_v24 }
 0x50f   :  { %v2411_v25 = vpop.permute.xlu1 %2410  ;;  %v7462_v28 = vpop.permute.xlu0 %1835  ;;  %2785 = vmatpush1.msra.mxu1 %v1877_v41 }
 0x510   :  { %v2427_v0 = vsel %vm2422_vm10, %v2411_v25, %v7449_v13 }
 0x511   :  { %2012 = vrot.lane.b32.xlu1 %v6873_v2, %s5509_s29  ;;  %1953 = vrot.lane.b32.xlu0 %v6870_v1, %s5523_s23 }
 0x512   :  { %2731 = vmatprep.subr.mxu0 %v2427_v0 }
 0x513   :  { %v1834_v17 = vpop.permute.xlu1 %1833  ;;  %v2382_v43 = vpop.permute.xlu0 %2381 }
 0x514   :  { %v1847_v35 = vsel %vm9792_vm3, %v1834_v17, %v7462_v28  ;;  %v1848_v57 = vsel %vm9792_vm3, %v7333_v44, %v1834_v17  ;;  %vm2393_vm3 = vcmp.lt.s32.totalorder %v10047_v21, 89 }
 0x515   :  { %1984 = vrot.lane.b32.xlu1 %v6873_v2, %s5508_s28  ;;  %1924 = vrot.lane.b32.xlu0 %v6870_v1, %s5524_s24 }
 0x516   :  { %2786 = vmatprep.subr.mxu1 %v1847_v35 }
 0x517   :  { %v7481_v63 = vpop.permute.xlu1 %2408  ;;  %v1805_v12 = vpop.permute.xlu0 %1804  ;;  %2787 = vmatpush1.msra.mxu1 %v1848_v57 }
 0x518   :  { %v2428_v48 = vsel %vm2422_vm10, %v7481_v63, %v2411_v25  ;;  %v1819_v25 = vsel %vm9794_vm2, %v7377_v15, %v1805_v12 }
 0x519   :  { %1955 = vrot.lane.b32.xlu1 %v6873_v2, %s5523_s23  ;;  %1895 = vrot.lane.b32.xlu0 %v6870_v1, %s5525_s25 }
 0x51a   :  { %2732 = vmatpush2.msra.mxu0 %v2428_v48 }
 0x51b   :  { %v7491_v44 = vpop.permute.xlu1 %2383  ;;  %v7493_v11 = vpop.permute.xlu0 %2379 }
 0x51c   :  { %v2398_v51 = vsel %vm2393_vm3, %v2382_v43, %v7491_v44  ;;  %v2399_v6 = vsel %vm2393_vm3, %v7493_v11, %v2382_v43 }
 0x51d   :  { %1926 = vrot.lane.b32.xlu1 %v6873_v2, %s5524_s24  ;;  %1866 = vrot.lane.b32.xlu0 %v6870_v1, %s5526_s26 }
 0x51e   :  { %2733 = vmatprep.subr.mxu0 %v2398_v51 }
 0x51f   :  { %v7505_v16 = vpop.permute.xlu1 %1806  ;;  %v7507_v24 = vpop.permute.xlu0 %2354  ;;  %2734 = vmatpush2.msra.mxu0 %v2399_v6 }
 0x520   :  { %v1818_v41 = vsel %vm9794_vm2, %v1805_v12, %v7505_v16  ;;  %vm2335_vm2 = vcmp.lt.s32.totalorder %v10047_v21, 106 }
 0x521   :  { %1897 = vrot.lane.b32.xlu1 %v6873_v2, %s5525_s25  ;;  %1837 = vrot.lane.b32.xlu0 %v6870_v1, %s5527_s27 }
 0x522   :  { %2788 = vmatprep.subr.mxu1 %v1818_v41 }
 0x523   :  { %v2353_v0 = vpop.permute.xlu1 %2352  ;;  %v2473_v17 = vpop.permute.xlu0 %2472  ;;  %2789 = vmatpush1.msra.mxu1 %v1819_v25 }
 0x524   :  { %v2369_v43 = vsel %vm2364_vm14, %v2353_v0, %v7507_v24  ;;  %v2484_v35 = vsel %vm2480_vm15, %v7391_v27, %v2473_v17 }
 0x525   :  { %1868 = vrot.lane.b32.xlu1 %v6873_v2, %s5526_s26  ;;  %1808 = vrot.lane.b32.xlu0 %v6870_v1, %s5528_s12 }
 0x526   :  { %2735 = vmatprep.subr.mxu0 %v2369_v43 }
 0x527   :  { %v7530_v15 = vpop.permute.xlu1 %2350  ;;  %v2324_v57 = vpop.permute.xlu0 %2323 }
 0x528   :  { %v2370_v12 = vsel %vm2364_vm14, %v7530_v15, %v2353_v0 }
 0x529   :  { %1839 = vrot.lane.b32.xlu1 %v6873_v2, %s5527_s27  ;;  %2476 = vrot.lane.b32.xlu0 %v6873_v2, %s5529_s13 }
 0x52a   :  { %2736 = vmatpush2.msra.mxu0 %v2370_v12 }
 0x52b   :  { %v7540_v27 = vpop.permute.xlu1 %2474  ;;  %v7542_v1 = vpop.permute.xlu0 %2321 }
 0x52c   :  { %v2483_v48 = vsel %vm2480_vm15, %v2473_v17, %v7540_v27  ;;  %v2341_v51 = vsel %vm2335_vm2, %v7542_v1, %v2324_v57 }
 0x52d   :  { %1810 = vrot.lane.b32.xlu1 %v6873_v2, %s5528_s12  ;;  %2447 = vrot.lane.b32.xlu0 %v6873_v2, %s5530_s3 }
 0x52e   :  { %2804 = vmatprep.subr.mxu1 %v2483_v48 }
 0x52f   :  { %v7554_v6 = vpop.permute.xlu1 %2325  ;;  %v7556_v41 = vpop.permute.xlu0 %2445  ;;  %2805 = vmatpush2.msra.mxu1 %v2484_v35 }
 0x530   :  { %v2340_v25 = vsel %vm2335_vm2, %v2324_v57, %v7554_v6 }
 0x531   :  { %2478 = vrot.lane.b32.xlu1 %v6876_v4, %s5529_s13  ;;  %2418 = vrot.lane.b32.xlu0 %v6873_v2, %s5531_s14 }
 0x532   :  { %2737 = vmatprep.subr.mxu0 %v2340_v25 }
 0x533   :  { %v2444_v0 = vpop.permute.xlu1 %2443  ;;  %v7565_v17 = vpop.permute.xlu0 %2297  ;;  %2738 = vmatpush2.msra.mxu0 %v2341_v51 }
 0x534   :  { %v2454_v43 = vsel %vm2451_vm9, %v2444_v0, %v7556_v41  ;;  %v2455_v35 = vsel %vm2451_vm9, %v7433_v9, %v2444_v0 }
 0x535   :  { %2449 = vrot.lane.b32.xlu1 %v6876_v4, %s5530_s3  ;;  %2389 = vrot.lane.b32.xlu0 %v6873_v2, %s5532_s15 }
 0x536   :  { %2806 = vmatprep.subr.mxu1 %v2454_v43 }
 0x537   :  { %v2296_v57 = vpop.permute.xlu1 %2295  ;;  %v2415_v12 = vpop.permute.xlu0 %2414  ;;  %2807 = vmatpush2.msra.mxu1 %v2455_v35 }
 0x538   :  { %v2311_v48 = vsel %vm656_vm1, %v2296_v57, %v7565_v17  ;;  %v2426_v51 = vsel %vm2422_vm10, %v7449_v13, %v2415_v12 }
 0x539   :  { %2420 = vrot.lane.b32.xlu1 %v6876_v4, %s5531_s14  ;;  %2360 = vrot.lane.b32.xlu0 %v6873_v2, %s5533_s16 }
 0x53a   :  { %2739 = vmatprep.subr.mxu0 %v2311_v48 }
 0x53b   :  { %v7587_v9 = vpop.permute.xlu1 %2293  ;;  %v2268_v25 = vpop.permute.xlu0 %2267 }
 0x53c   :  { %10048 = vst [vmem:[#allocation14_spill] sm:$0xff] %v7587_v9  ;;  %v2312_v0 = vsel %vm656_vm1, %v7587_v9, %v2296_v57  ;;  %v2587_v9 = vld [vmem:[#allocation2 + $0x2c0] sm:$0xff] }
 0x53d   :  { %2391 = vrot.lane.b32.xlu1 %v6876_v4, %s5532_s15  ;;  %2331 = vrot.lane.b32.xlu0 %v6873_v2, %s5534_s17 }
 0x53e   :  { %2740 = vmatpush2.msra.mxu0 %v2312_v0 }
 0x53f   :  { %v7596_v13 = vpop.permute.xlu1 %2416  ;;  %v7598_v43 = vpop.permute.xlu0 %2265 }
 0x540   :  { %10049 = vst [vmem:[#allocation15_spill] sm:$0xff] %v7598_v43  ;;  %v2425_v35 = vsel %vm2422_vm10, %v2415_v12, %v7596_v13  ;;  %v2284_v12 = vsel %vm575_vm8, %v7598_v43, %v2268_v25 }
 0x541   :  { %2362 = vrot.lane.b32.xlu1 %v6876_v4, %s5533_s16  ;;  %2303 = vrot.lane.b32.xlu0 %v6873_v2, %s5506_s0 }
 0x542   :  { %2808 = vmatprep.subr.mxu1 %v2425_v35 }
 0x543   :  { %v7607_v57 = vpop.permute.xlu1 %2269  ;;  %v7609_v48 = vpop.permute.xlu0 %2387  ;;  %2809 = vmatpush2.msra.mxu1 %v2426_v51 }
 0x544   :  { %v2283_v0 = vsel %vm575_vm8, %v2268_v25, %v7607_v57 }
 0x545   :  { %2333 = vrot.lane.b32.xlu1 %v6876_v4, %s5534_s17  ;;  %2275 = vrot.lane.b32.xlu0 %v6873_v2, %s5514_s11 }
 0x546   :  { %2741 = vmatprep.subr.mxu0 %v2283_v0 }
 0x547   :  { %v2386_v35 = vpop.permute.xlu1 %2385  ;;  %v7621_v56 = vpop.permute.xlu0 %2241  ;;  %2742 = vmatpush2.msra.mxu0 %v2284_v12 }
 0x548   :  { %v2396_v51 = vsel %vm2393_vm3, %v2386_v35, %v7609_v48  ;;  %v2397_v10 = vsel %vm2393_vm3, %v7491_v44, %v2386_v35 }
 0x549   :  { %2305 = vrot.lane.b32.xlu1 %v6876_v4, %s5506_s0  ;;  %2247 = vrot.lane.b32.xlu0 %v6873_v2, %s5513_s10  ;;  %v7645_v2 = vld [vmem:[%s9705_s4] sm:$0xff] }
 0x54a   :  { %2810 = vmatprep.subr.mxu1 %v2396_v51 }
 0x54b   :  { %v2240_v25 = vpop.permute.xlu1 %2239  ;;  %v2357_v0 = vpop.permute.xlu0 %2356  ;;  %2811 = vmatpush2.msra.mxu1 %v2397_v10 }
 0x54c   :  { %v2255_v12 = vsel %vm494_vm7, %v2240_v25, %v7621_v56  ;;  %v2368_v7 = vsel %vm2364_vm14, %v7507_v24, %v2357_v0  ;;  %v7653_v24 = vld [vmem:[%s9705_s4 + $0x18] sm:$0xff] }
 0x54d   :  { %2277 = vrot.lane.b32.xlu1 %v5505_v14, %s5514_s11  ;;  %2743 = vmatprep.subr.mxu0 %v2255_v12 }
 0x54f   :  { %v7640_v4 = vpop.permute.xlu1 %2237  ;;  %v2219_v44 = vpop.permute.xlu0 %2218 }
 0x550   :  { %10050 = vst [vmem:[#allocation21_spill] sm:$0xff] %v7640_v4  ;;  %v2256_v10 = vsel %vm494_vm7, %v7640_v4, %v2240_v25  ;;  %v7664_v25 = vld [vmem:[%s9705_s4 + $0x10] sm:$0xff] }
 0x551   :  { %2249 = vrot.lane.b32.xlu1 %v5505_v14, %s5513_s10  ;;  %2744 = vmatpush2.msra.mxu0 %v2256_v10 }
 0x552   :  { %2746 = vmatmul.mubr.f32.vlgmr.msra.gmra.mxu0 %v7645_v2 }
 0x553   :  { %v7657_v35 = vpop.permute.xlu1 %2358  ;;  %v2328_v51 = vpop.permute.xlu0 %2327  ;;  %4789 = vmatprep.mubr.msk.f32.mxu0 %vm2674_vm4, %v7653_v24 }
 0x554   :  { %v2367_v12 = vsel %vm2364_vm14, %v2357_v0, %v7657_v35  ;;  %v2339_v14 = vsel %vm2335_vm2, %v7554_v6, %v2328_v51  ;;  %v2224_v0 = vsel %vm2222_vm11, %v7077_v45, %v2219_v44 }
 0x555   :  { %2812 = vmatprep.subr.mxu1 %v2367_v12 }
 0x556   :  { %2813 = vmatpush2.msra.mxu1 %v2368_v7  ;;  %2752 = vmatmul.mubr.f32.gmra.mxu0 %v7664_v25 }
 0x557   :  { %v2221_v10 = vpop.permute.xlu1 %2220  ;;  %v2190_v62 = vpop.permute.xlu0 %2189  ;;  %4792 = vmatprep.mubr.msk.f32.mxu0 %vm2674_vm4, %v7298_v33 }
 0x558   :  { %v2223_v47 = vsel %vm2222_vm11, %v2219_v44, %v2221_v10 }
 0x559   :  { %2835 = vmatprep.subr.mxu0 %v2223_v47  ;;  %v2195_v47 = vsel %vm2193_vm12, %v7093_v52, %v2190_v62  ;;  %v2588_v52 = vld [vmem:[#allocation2 + $0x2c8] sm:$0xff] }
 0x55a   :  { %2836 = vmatpush1.msra.mxu0 %v2224_v0 }
 0x55b   :  { %v7680_v22 = vpop.permute.xlu1 %2329  ;;  %v2300_v6 = vpop.permute.xlu0 %2299 }
 0x55c   :  { %v2338_v7 = vsel %vm2335_vm2, %v2328_v51, %v7680_v22  ;;  %v2310_v12 = vsel %vm656_vm1, %v7565_v17, %v2300_v6 }
 0x55d   :  { %2814 = vmatprep.subr.mxu1 %v2338_v7 }
 0x55e   :  { %2815 = vmatpush2.msra.mxu1 %v2339_v14 }
 0x55f   :  { %v2192_v4 = vpop.permute.xlu1 %2191  ;;  %v2162_v43 = vpop.permute.xlu0 %2161 }
 0x560   :  { %v2194_v45 = vsel %vm2193_vm12, %v2190_v62, %v2192_v4  ;;  %v2166_v62 = vsel %vm413_vm6, %v7134_v60, %v2162_v43 }
 0x561   :  { %2837 = vmatprep.subr.mxu0 %v2194_v45 }
 0x562   :  { %2838 = vmatpush1.msra.mxu0 %v2195_v47 }
 0x563   :  { %v7693_v44 = vpop.permute.xlu1 %2301  ;;  %v2272_v51 = vpop.permute.xlu0 %2271 }
 0x564   :  { %v2309_v17 = vsel %vm656_vm1, %v2300_v6, %v7693_v44 }
 0x565   :  { %2816 = vmatprep.subr.mxu1 %v2309_v17 }
 0x566   :  { %2817 = vmatpush2.msra.mxu1 %v2310_v12  ;;  %v2282_v12 = vsel %vm575_vm8, %v7607_v57, %v2272_v51 }
 0x567   :  { %v2164_v14 = vpop.permute.xlu1 %2163  ;;  %v2244_v0 = vpop.permute.xlu0 %2243 }
 0x568   :  { %v2165_v7 = vsel %vm413_vm6, %v2162_v43, %v2164_v14 }
 0x569   :  { %2839 = vmatprep.subr.mxu0 %v2165_v7  ;;  %v2254_v7 = vsel %vm494_vm7, %v7621_v56, %v2244_v0  ;;  %v2200_v56 = vsel %vm2193_vm12, %v2192_v4, %v7034_v31 }
 0x56a   :  { %2840 = vmatpush1.msra.mxu0 %v2166_v62 }
 0x56b   :  { %v7703_v45 = vpop.permute.xlu1 %2273  ;;  %v2125_v47 = vpop.permute.xlu0 %2124  ;;  %2841 = vmatprep.subr.mxu0 %v2588_v52 }
 0x56c   :  { %v2281_v6 = vsel %vm575_vm8, %v2272_v51, %v7703_v45  ;;  %2842 = vmatpush1.msra.mxu0 %v2587_v9  ;;  %v2229_v9 = vsel %vm2222_vm11, %v2221_v10, %v7008_v19  ;;  %v2132_v19 = vsel %vm9812_vm5, %v7180_v29, %v2125_v47  ;;  %v2171_v10 = vsel %vm413_vm6, %v2164_v14, %v7036_v32  ;;  %v2589_v32 = vld [vmem:[#allocation2 + $0x2d0] sm:$0xff] }
 0x56d   :  { %2818 = vmatprep.subr.mxu1 %v2281_v6  ;;  %vm10051_vm11 = vcmp.lt.s32.totalorder %v10047_v21, 18 }
 0x56e   :  { %2819 = vmatpush2.msra.mxu1 %v2282_v12  ;;  %vm10052_vm12 = vmmov %vm10051_vm11 }
 0x56f   :  { %v7711_v60 = vpop.permute.xlu1 %2245  ;;  %v2096_v43 = vpop.permute.xlu0 %2095 }
 0x570   :  { %v2253_v17 = vsel %vm494_vm7, %v2244_v0, %v7711_v60  ;;  %v2104_v29 = vsel %vm2101_vm13, %v7196_v38, %v2096_v43 }
 0x571   :  { %2820 = vmatprep.subr.mxu1 %v2253_v17 }
 0x572   :  { %2821 = vmatpush2.msra.mxu1 %v2254_v7 }
 0x573   :  { %v2127_v57 = vpop.permute.xlu1 %2126  ;;  %v2067_v51 = vpop.permute.xlu0 %2066  ;;  %2912 = vmatprep.subr.mxu1 %v9929_v37  ;;  %2823 = vmatmul.mubr.f32.vlgmr.msra.gmra.mxu1 %v7645_v2 }
 0x574   :  { %v2131_v62 = vsel %vm9812_vm5, %v2125_v47, %v2127_v57  ;;  %2913 = vmatpush1.msra.mxu1 %v2229_v9  ;;  %4791 = vmatprep.mubr.msk.f32.mxu1 %vm2674_vm4, %v7653_v24  ;;  %v2130_v4 = vsel %vm9812_vm5, %v2127_v57, %v7068_v20  ;;  %v2075_v38 = vsel %vm10052_vm12, %v7237_v54, %v2067_v51  ;;  %vm10053_vm5 = vmmov %vm10051_vm11 }
 0x575   :  { %2843 = vmatprep.subr.mxu0 %v2131_v62  ;;  %2914 = vmatprep.subr.mxu1 %v9929_v37 }
 0x576   :  { %2844 = vmatpush1.msra.mxu0 %v2132_v19  ;;  %2915 = vmatpush1.msra.mxu1 %v2200_v56 }
 0x577   :  { %v2098_v0 = vpop.permute.xlu1 %2097  ;;  %v2039_v52 = vpop.permute.xlu0 %2038  ;;  %2916 = vmatprep.subr.mxu1 %v9929_v37  ;;  %2829 = vmatmul.mubr.f32.gmra.mxu1 %v7664_v25 }
 0x578   :  { %v2103_v31 = vsel %vm2101_vm13, %v2096_v43, %v2098_v0  ;;  %2917 = vmatpush1.msra.mxu1 %v2171_v10  ;;  %4794 = vmatprep.mubr.msk.f32.mxu1 %vm2674_vm4, %v7298_v33  ;;  %v2102_v6 = vsel %vm2101_vm13, %v2098_v0, %v7079_v46 }
 0x579   :  { %2845 = vmatprep.subr.mxu0 %v2103_v31  ;;  %2918 = vmatprep.subr.mxu1 %v9929_v37 }
 0x57a   :  { %2846 = vmatpush1.msra.mxu0 %v2104_v29  ;;  %2919 = vmatpush1.msra.mxu1 %v2589_v32 }
 0x57b   :  { %v2069_v14 = vpop.permute.xlu1 %2068  ;;  %v2011_v47 = vpop.permute.xlu0 %2010  ;;  %2920 = vmatprep.subr.mxu1 %v9929_v37 }
 0x57c   :  { %v2074_v33 = vsel %vm10051_vm11, %v2067_v51, %v2069_v14  ;;  %2921 = vmatpush1.msra.mxu1 %v2130_v4  ;;  %v2073_v20 = vsel %vm10053_vm5, %v2069_v14, %v7125_v3  ;;  %vm10054_vm11 = vcmp.lt.s32.totalorder %v10047_v21, 19  ;;  %vm10057_vm5 = vcmp.lt.s32.totalorder %v10047_v21, 20 }
 0x57d   :  { %2847 = vmatprep.subr.mxu0 %v2074_v33  ;;  %2922 = vmatprep.subr.mxu1 %v9929_v37  ;;  %vm10055_vm12 = vmmov %vm10054_vm11 }
 0x57e   :  { %2848 = vmatpush1.msra.mxu0 %v2075_v38  ;;  %2923 = vmatpush1.msra.mxu1 %v2102_v6  ;;  %vm10056_vm13 = vmmov %vm10054_vm11 }
 0x57f   :  { %v2041_v12 = vpop.permute.xlu1 %2040  ;;  %v1983_v43 = vpop.permute.xlu0 %1982  ;;  %2924 = vmatprep.subr.mxu1 %v9929_v37  ;;  %v2046_v17 = vsel %vm10056_vm13, %v7254_v58, %v2039_v52  ;;  %vm10060_vm13 = vcmp.lt.s32.totalorder %v10047_v21, 21 }
 0x580   :  { %v2044_v54 = vsel %vm10054_vm11, %v2041_v12, %v7136_v61  ;;  %v2045_v46 = vsel %vm10055_vm12, %v2039_v52, %v2041_v12  ;;  %2925 = vmatpush1.msra.mxu1 %v2073_v20  ;;  %vm10058_vm11 = vmmov %vm10057_vm5 }
 0x581   :  { %2849 = vmatprep.subr.mxu0 %v2045_v46  ;;  %2926 = vmatprep.subr.mxu1 %v9929_v37  ;;  %vm10059_vm12 = vmmov %vm10057_vm5 }
 0x582   :  { %2850 = vmatpush1.msra.mxu0 %v2046_v17  ;;  %2927 = vmatpush1.msra.mxu1 %v2044_v54  ;;  %v2018_v58 = vsel %vm10059_vm12, %v7300_v5, %v2011_v47  ;;  %vm10063_vm12 = vcmp.lt.s32.totalorder %v10047_v21, 22 }
 0x583   :  { %v2013_v3 = vpop.permute.xlu1 %2012  ;;  %v1954_v7 = vpop.permute.xlu0 %1953  ;;  %2928 = vmatprep.subr.mxu1 %v9929_v37 }
 0x584   :  { %v2016_v61 = vsel %vm10057_vm5, %v2013_v3, %v7171_v26  ;;  %v2017_v9 = vsel %vm10058_vm11, %v2011_v47, %v2013_v3  ;;  %vm10061_vm5 = vmmov %vm10060_vm13 }
 0x585   :  { %2851 = vmatprep.subr.mxu0 %v2017_v9  ;;  %2929 = vmatpush1.msra.mxu1 %v2016_v61  ;;  %vm10062_vm11 = vmmov %vm10061_vm5 }
 0x586   :  { %2852 = vmatpush1.msra.mxu0 %v2018_v58  ;;  %2930 = vmatprep.subr.mxu1 %v9929_v37  ;;  %v1990_v56 = vsel %vm10062_vm11, %v7321_v40, %v1983_v43  ;;  %vm10066_vm11 = vcmp.lt.s32.totalorder %v10047_v21, 38 }
 0x587   :  { %v1985_v57 = vpop.permute.xlu1 %1984  ;;  %v1925_v51 = vpop.permute.xlu0 %1924 }
 0x588   :  { %v1988_v62 = vsel %vm10060_vm13, %v1985_v57, %v7182_v30  ;;  %v1989_v26 = vsel %vm10061_vm5, %v1983_v43, %v1985_v57  ;;  %vm10064_vm13 = vmmov %vm10063_vm12 }
 0x589   :  { %2853 = vmatprep.subr.mxu0 %v1989_v26  ;;  %2931 = vmatpush1.msra.mxu1 %v1988_v62  ;;  %vm10065_vm5 = vmmov %vm10063_vm12 }
 0x58a   :  { %2854 = vmatpush1.msra.mxu0 %v1990_v56  ;;  %2932 = vmatprep.subr.mxu1 %v9929_v37  ;;  %v1962_v0 = vsel %vm10065_vm5, %v7362_v59, %v1954_v7  ;;  %vm10069_vm5 = vcmp.lt.s32.totalorder %v10047_v21, 39 }
 0x58b   :  { %v1956_v5 = vpop.permute.xlu1 %1955  ;;  %v1896_v19 = vpop.permute.xlu0 %1895 }
 0x58c   :  { %v1960_v10 = vsel %vm10063_vm12, %v1956_v5, %v7228_v50  ;;  %v1961_v30 = vsel %vm10064_vm13, %v1954_v7, %v1956_v5  ;;  %vm10067_vm12 = vmmov %vm10066_vm11 }
 0x58d   :  { %2855 = vmatprep.subr.mxu0 %v1961_v30  ;;  %2933 = vmatpush1.msra.mxu1 %v1960_v10  ;;  %vm10068_vm13 = vmmov %vm10066_vm11 }
 0x58e   :  { %2856 = vmatpush1.msra.mxu0 %v1962_v0  ;;  %2934 = vmatprep.subr.mxu1 %v9929_v37  ;;  %v1933_v29 = vsel %vm10068_vm13, %v7379_v18, %v1925_v51  ;;  %vm10072_vm13 = vcmp.lt.s32.totalorder %v10047_v21, 40 }
 0x58f   :  { %v1927_v40 = vpop.permute.xlu1 %1926  ;;  %v1867_v52 = vpop.permute.xlu0 %1866 }
 0x590   :  { %v1931_v31 = vsel %vm10066_vm11, %v1927_v40, %v7239_v55  ;;  %v1932_v50 = vsel %vm10067_vm12, %v1925_v51, %v1927_v40  ;;  %vm10070_vm11 = vmmov %vm10069_vm5 }
 0x591   :  { %2857 = vmatprep.subr.mxu0 %v1932_v50  ;;  %2935 = vmatpush1.msra.mxu1 %v1931_v31  ;;  %vm10071_vm12 = vmmov %vm10069_vm5  ;;  %v10081_v31 = vld [vmem:[#allocation14_spill] sm:$0xff] }
 0x592   :  { %2858 = vmatpush1.msra.mxu0 %v1933_v29  ;;  %2936 = vmatprep.subr.mxu1 %v9929_v37  ;;  %v1904_v14 = vsel %vm10071_vm12, %v7404_v39, %v1896_v19  ;;  %vm10075_vm12 = vcmp.lt.s32.totalorder %v10047_v21, 41 }
 0x593   :  { %v1898_v59 = vpop.permute.xlu1 %1897  ;;  %v1838_v32 = vpop.permute.xlu0 %1837 }
 0x594   :  { %v1902_v4 = vsel %vm10069_vm5, %v1898_v59, %v7286_v8  ;;  %v1903_v55 = vsel %vm10070_vm11, %v1896_v19, %v1898_v59  ;;  %vm10073_vm5 = vmmov %vm10072_vm13  ;;  %v10082_v59 = vld [vmem:[#allocation15_spill] sm:$0xff] }
 0x595   :  { %2859 = vmatprep.subr.mxu0 %v1903_v55  ;;  %2937 = vmatpush1.msra.mxu1 %v1902_v4  ;;  %vm10074_vm11 = vmmov %vm10073_vm5 }
 0x596   :  { %2860 = vmatpush1.msra.mxu0 %v1904_v14  ;;  %2938 = vmatprep.subr.mxu1 %v9929_v37  ;;  %v1875_v38 = vsel %vm10074_vm11, %v7447_v42, %v1867_v52  ;;  %vm10078_vm11 = vcmp.lt.s32.totalorder %v10047_v21, 42  ;;  %v8312_v21 = vld [vmem:[%s9703_s2 + $0x100] sm:$0xff] }
 0x597   :  { %v1869_v18 = vpop.permute.xlu1 %1868  ;;  %v1809_v47 = vpop.permute.xlu0 %1808  ;;  %10092 = vst [vmem:[#allocation25_spill] sm:$0xff] %v8312_v21 }
 0x598   :  { %v1873_v33 = vsel %vm10072_vm13, %v1869_v18, %v7302_v34  ;;  %v1874_v8 = vsel %vm10073_vm5, %v1867_v52, %v1869_v18  ;;  %vm10076_vm13 = vmmov %vm10075_vm12 }
 0x599   :  { %2861 = vmatprep.subr.mxu0 %v1874_v8  ;;  %2939 = vmatpush1.msra.mxu1 %v1873_v33  ;;  %vm10077_vm5 = vmmov %vm10075_vm12 }
 0x59a   :  { %2862 = vmatpush1.msra.mxu0 %v1875_v38  ;;  %2940 = vmatprep.subr.mxu1 %v9929_v37  ;;  %v1846_v42 = vsel %vm10077_vm5, %v7462_v28, %v1838_v32  ;;  %v7936_v38 = vld [vmem:[%s9703_s2 + $0x1f8] sm:$0xff]  ;;  %vm10228_vm5 = vcmask 130048  }
 0x59b   :  { %v1840_v39 = vpop.permute.xlu1 %1839  ;;  %v2477_v6 = vpop.permute.xlu0 %2476 }
 0x59c   :  { %v1844_v20 = vsel %vm10075_vm12, %v1840_v39, %v7353_v36  ;;  %v1845_v34 = vsel %vm10076_vm13, %v1838_v32, %v1840_v39  ;;  %v2482_v12 = vsel %vm2480_vm15, %v7540_v27, %v2477_v6  ;;  %vm10079_vm12 = vmmov %vm10078_vm11  ;;  %v7941_v39 = vld [vmem:[%s9703_s2 + $0x78] sm:$0xff] }
 0x59d   :  { %2863 = vmatprep.subr.mxu0 %v1845_v34  ;;  %2941 = vmatpush1.msra.mxu1 %v1844_v20  ;;  %vm10080_vm13 = vmmov %vm10078_vm11  ;;  %v7976_v20 = vld [vmem:[%s9703_s2 + $0x170] sm:$0xff]  ;;  %v7981_v34 = vld [vmem:[%s9703_s2 + $0xe8] sm:$0xff] }
 0x59e   :  { %2864 = vmatpush1.msra.mxu0 %v1846_v42  ;;  %2942 = vmatprep.subr.mxu1 %v9929_v37  ;;  %v1817_v28 = vsel %vm10080_vm13, %v7505_v16, %v1809_v47  ;;  %v7993_v42 = vld [vmem:[%s9703_s2 + $0x68] sm:$0xff] }
 0x59f   :  { %v1811_v43 = vpop.permute.xlu1 %1810  ;;  %v2448_v54 = vpop.permute.xlu0 %2447 }
 0x5a0   :  { %v1815_v36 = vsel %vm10078_vm11, %v1811_v43, %v7364_v23  ;;  %v1816_v46 = vsel %vm10079_vm12, %v1809_v47, %v1811_v43  ;;  %v2453_v27 = vsel %vm2451_vm9, %v7556_v41, %v2448_v54  ;;  %v10083_v47 = vld [vmem:[#allocation21_spill] sm:$0xff]  ;;  %v8005_v43 = vld [vmem:[%s9703_s2 + $0xe0] sm:$0xff]  ;;  %vm10229_vm11 = vmmov %vm10228_vm5 }
 0x5a1   :  { %2865 = vmatprep.subr.mxu0 %v1816_v46  ;;  %2943 = vmatpush1.msra.mxu1 %v1815_v36  ;;  %v8017_v36 = vld [vmem:[%s9703_s2 + $0x60] sm:$0xff] }
 0x5a2   :  { %2866 = vmatpush1.msra.mxu0 %v1817_v28  ;;  %2958 = vmatprep.subr.mxu1 %v9929_v37  ;;  %v8024_v46 = vld [vmem:[%s9703_s2 + $0x160] sm:$0xff]  ;;  %v8036_v28 = vld [vmem:[%s9703_s2 + $0x1d8] sm:$0xff] }
 0x5a3   :  { %v2479_v17 = vpop.permute.xlu1 %2478  ;;  %v2419_v3 = vpop.permute.xlu0 %2418 }
 0x5a4   :  { %v2481_v23 = vsel %vm2480_vm15, %v2477_v6, %v2479_v17  ;;  %v2487_v7 = vsel %vm2480_vm15, %v2479_v17, %v7423_v49  ;;  %v2424_v41 = vsel %vm2422_vm10, %v7596_v13, %v2419_v3  ;;  %v7957_v6 = vld [vmem:[%s9703_s2 + $0x178] sm:$0xff] }
 0x5a5   :  { %2881 = vmatprep.subr.mxu0 %v2481_v23  ;;  %2959 = vmatpush2.msra.mxu1 %v2487_v7  ;;  %v8041_v17 = vld [vmem:[%s9703_s2 + $0x58] sm:$0xff]  ;;  %v8053_v23 = vld [vmem:[%s9703_s2 + $0xd0] sm:$0xff] }
 0x5a6   :  { %2882 = vmatpush2.msra.mxu0 %v2482_v12  ;;  %2960 = vmatprep.subr.mxu1 %v9929_v37  ;;  %v7988_v12 = vld [vmem:[%s9703_s2 + $0x1e8] sm:$0xff]  ;;  %v8060_v7 = vld [vmem:[%s9703_s2 + $0x1d0] sm:$0xff] }
 0x5a7   :  { %v2450_v16 = vpop.permute.xlu1 %2449  ;;  %v2390_v61 = vpop.permute.xlu0 %2389 }
 0x5a8   :  { %v2452_v9 = vsel %vm2451_vm9, %v2448_v54, %v2450_v16  ;;  %v2458_v58 = vsel %vm2451_vm9, %v2450_v16, %v7435_v53  ;;  %v2395_v49 = vsel %vm2393_vm3, %v7609_v48, %v2390_v61  ;;  %v8012_v54 = vld [vmem:[%s9703_s2 + $0x1e0] sm:$0xff]  ;;  %v8072_v16 = vld [vmem:[%s9703_s2 + $0x150] sm:$0xff] }
 0x5a9   :  { %2883 = vmatprep.subr.mxu0 %v2452_v9  ;;  %2961 = vmatpush2.msra.mxu1 %v2458_v58  ;;  %v8084_v9 = vld [vmem:[%s9703_s2 + $0x1c8] sm:$0xff] }
 0x5aa   :  { %2884 = vmatpush2.msra.mxu0 %v2453_v27  ;;  %2962 = vmatprep.subr.mxu1 %v9929_v37  ;;  %v8029_v27 = vld [vmem:[%s9703_s2 + $0xd8] sm:$0xff]  ;;  %v8089_v58 = vld [vmem:[%s9703_s2 + $0x48] sm:$0xff] }
 0x5ab   :  { %v2421_v13 = vpop.permute.xlu1 %2420  ;;  %v2361_v57 = vpop.permute.xlu0 %2360 }
 0x5ac   :  { %v2423_v51 = vsel %vm2422_vm10, %v2419_v3, %v2421_v13  ;;  %v2429_v62 = vsel %vm2422_vm10, %v2421_v13, %v7481_v63  ;;  %v2366_v53 = vsel %vm2364_vm14, %v7657_v35, %v2361_v57  ;;  %v8048_v3 = vld [vmem:[%s9703_s2 + $0x158] sm:$0xff]  ;;  %v8101_v13 = vld [vmem:[%s9703_s2 + $0xc0] sm:$0xff] }
 0x5ad   :  { %2885 = vmatprep.subr.mxu0 %v2423_v51  ;;  %2963 = vmatpush2.msra.mxu1 %v2429_v62  ;;  %v8113_v51 = vld [vmem:[%s9703_s2 + $0x40] sm:$0xff] }
 0x5ae   :  { %2886 = vmatpush2.msra.mxu0 %v2424_v41  ;;  %2964 = vmatprep.subr.mxu1 %v9929_v37  ;;  %v8065_v41 = vld [vmem:[%s9703_s2 + $0x50] sm:$0xff]  ;;  %v8120_v62 = vld [vmem:[%s9703_s2 + $0x140] sm:$0xff] }
 0x5af   :  { %v2392_v48 = vpop.permute.xlu1 %2391  ;;  %v2332_v26 = vpop.permute.xlu0 %2331 }
 0x5b0   :  { %v2394_v56 = vsel %vm2393_vm3, %v2390_v61, %v2392_v48  ;;  %v2400_v5 = vsel %vm2393_vm3, %v2392_v48, %v7493_v11  ;;  %v2337_v63 = vsel %vm2335_vm2, %v7680_v22, %v2332_v26  ;;  %v8077_v61 = vld [vmem:[%s9703_s2 + $0xc8] sm:$0xff]  ;;  %v8132_v48 = vld [vmem:[%s9703_s2 + $0x1b8] sm:$0xff] }
 0x5b1   :  { %2887 = vmatprep.subr.mxu0 %v2394_v56  ;;  %2965 = vmatpush2.msra.mxu1 %v2400_v5  ;;  %v8144_v56 = vld [vmem:[%s9703_s2 + $0x138] sm:$0xff]  ;;  %v8149_v5 = vld [vmem:[%s9703_s2 + $0xb0] sm:$0xff] }
 0x5b2   :  { %2888 = vmatpush2.msra.mxu0 %v2395_v49  ;;  %2966 = vmatprep.subr.mxu1 %v9929_v37  ;;  %v8096_v49 = vld [vmem:[%s9703_s2 + $0x148] sm:$0xff] }
 0x5b3   :  { %v2363_v35 = vpop.permute.xlu1 %2362  ;;  %v2304_v19 = vpop.permute.xlu0 %2303 }
 0x5b4   :  { %v2365_v10 = vsel %vm2364_vm14, %v2361_v57, %v2363_v35  ;;  %v2371_v30 = vsel %vm2364_vm14, %v2363_v35, %v7530_v15  ;;  %v2308_v11 = vsel %vm656_vm1, %v7693_v44, %v2304_v19  ;;  %v8108_v57 = vld [vmem:[%s9703_s2 + $0x1c0] sm:$0xff]  ;;  %v8161_v35 = vld [vmem:[%s9703_s2 + $0x30] sm:$0xff] }
 0x5b5   :  { %2889 = vmatprep.subr.mxu0 %v2365_v10  ;;  %2967 = vmatpush2.msra.mxu1 %v2371_v30  ;;  %v8173_v10 = vld [vmem:[%s9703_s2 + $0xa8] sm:$0xff] }
 0x5b6   :  { %2890 = vmatpush2.msra.mxu0 %v2366_v53  ;;  %2968 = vmatprep.subr.mxu1 %v9929_v37  ;;  %v8125_v53 = vld [vmem:[%s9703_s2 + $0xb8] sm:$0xff]  ;;  %v8180_v30 = vld [vmem:[%s9703_s2 + $0x1a8] sm:$0xff] }
 0x5b7   :  { %v2334_v22 = vpop.permute.xlu1 %2333  ;;  %v2276_v44 = vpop.permute.xlu0 %2275 }
 0x5b8   :  { %v2336_v0 = vsel %vm2335_vm2, %v2332_v26, %v2334_v22  ;;  %v2342_v40 = vsel %vm2335_vm2, %v2334_v22, %v7542_v1  ;;  %v2280_v4 = vsel %vm575_vm8, %v7703_v45, %v2276_v44  ;;  %v7930_v45 = vld [vmem:[%s9703_s2 + $0xf8] sm:$0xff]  ;;  %v8192_v22 = vld [vmem:[%s9703_s2 + $0x128] sm:$0xff] }
 0x5b9   :  { %2891 = vmatprep.subr.mxu0 %v2336_v0  ;;  %2969 = vmatpush2.msra.mxu1 %v2342_v40  ;;  %v8137_v26 = vld [vmem:[%s9703_s2 + $0x38] sm:$0xff]  ;;  %v8197_v0 = vld [vmem:[%s9703_s2 + $0xa0] sm:$0xff] }
 0x5ba   :  { %2892 = vmatpush2.msra.mxu0 %v2337_v63  ;;  %2970 = vmatprep.subr.mxu1 %v9929_v37  ;;  %v8156_v63 = vld [vmem:[%s9703_s2 + $0x1b0] sm:$0xff]  ;;  %v8204_v40 = vld [vmem:[%s9703_s2 + $0x1a0] sm:$0xff] }
 0x5bb   :  { %v2306_v15 = vpop.permute.xlu1 %2305  ;;  %v2248_v55 = vpop.permute.xlu0 %2247 }
 0x5bc   :  { %v2307_v52 = vsel %vm656_vm1, %v2304_v19, %v2306_v15  ;;  %v2313_v50 = vsel %vm656_vm1, %v2306_v15, %v10081_v31  ;;  %v2252_v8 = vsel %vm494_vm7, %v7711_v60, %v2248_v55  ;;  %v7949_v60 = vld [vmem:[%s9703_s2 + $0xf0] sm:$0xff]  ;;  %v8209_v15 = vld [vmem:[%s9703_s2 + $0x20] sm:$0xff]  ;;  %v8228_v31 = vld [vmem:[%s9703_s2 + $0x198] sm:$0xff] }
 0x5bd   :  { %2893 = vmatprep.subr.mxu0 %v2307_v52  ;;  %2971 = vmatpush2.msra.mxu1 %v2313_v50  ;;  %v8168_v19 = vld [vmem:[%s9703_s2 + $0x130] sm:$0xff]  ;;  %v8221_v52 = vld [vmem:[%s9703_s2 + $0x98] sm:$0xff] }
 0x5be   :  { %2894 = vmatpush2.msra.mxu0 %v2308_v11  ;;  %2972 = vmatprep.subr.mxu1 %v9929_v37  ;;  %v8185_v11 = vld [vmem:[%s9703_s2 + $0x28] sm:$0xff]  ;;  %v8233_v50 = vld [vmem:[%s9703_s2 + $0x18] sm:$0xff] }
 0x5bf   :  { %v2278_v1 = vpop.permute.xlu1 %2277 }
 0x5c0   :  { %v2279_v29 = vsel %vm575_vm8, %v2276_v44, %v2278_v1  ;;  %v2285_v32 = vsel %vm575_vm8, %v2278_v1, %v10082_v59  ;;  %v8216_v44 = vld [vmem:[%s9703_s2 + $0x120] sm:$0xff]  ;;  %v8240_v1 = vld [vmem:[%s9703_s2 + $0x118] sm:$0xff]  ;;  %v8252_v59 = vld [vmem:[%s9703_s2 + $0x190] sm:$0xff] }
 0x5c1   :  { %2895 = vmatprep.subr.mxu0 %v2279_v29  ;;  %2973 = vmatpush2.msra.mxu1 %v2285_v32  ;;  %v8245_v29 = vld [vmem:[%s9703_s2 + $0x90] sm:$0xff] }
 0x5c2   :  { %2896 = vmatpush2.msra.mxu0 %v2280_v4  ;;  %2974 = vmatprep.subr.mxu1 %v9929_v37  ;;  %v8257_v32 = vld [vmem:[%s9703_s2 + $0x10] sm:$0xff]  ;;  %v8305_v37 = vld [vmem:[%s9703_s2] sm:$0xff] }
 0x5c3   :  { %v2250_v14 = vpop.permute.xlu1 %2249  ;;  %v8264_v4 = vld [vmem:[%s9703_s2 + $0x110] sm:$0xff]  ;;  %10091 = vst [vmem:[#allocation24_spill] sm:$0xff] %v8305_v37 }
 0x5c4   :  { %v2251_v18 = vsel %vm494_vm7, %v2248_v55, %v2250_v14  ;;  %v2257_v33 = vsel %vm494_vm7, %v2250_v14, %v10083_v47  ;;  %10084 = vst [vmem:[#allocation22_spill] sm:$0xff] %v8264_v4  ;;  %v8269_v55 = vld [vmem:[%s9703_s2 + $0x88] sm:$0xff] }
 0x5c5   :  { %2897 = vmatprep.subr.mxu0 %v2251_v18  ;;  %2975 = vmatpush2.msra.mxu1 %v2257_v33  ;;  %10085 = vst [vmem:[#allocation16_spill] sm:$0xff] %v8269_v55  ;;  %v8276_v14 = vld [vmem:[%s9703_s2 + $0x188] sm:$0xff]  ;;  %v8293_v33 = vld [vmem:[%s9703_s2 + $0x80] sm:$0xff] }
 0x5c6   :  { %2898 = vmatpush2.msra.mxu0 %v2252_v8  ;;  %2977 = vmatmul.mubr.f32.vlgmr.msra.gmra.mxu1 %v7645_v2  ;;  %10086 = vst [vmem:[#allocation17_spill] sm:$0xff] %v8276_v14  ;;  %v8281_v18 = vld [vmem:[%s9703_s2 + $0x8] sm:$0xff]  ;;  %10089 = vst [vmem:[#allocation20_spill] sm:$0xff] %v8293_v33  ;;  %v8300_v8 = vld [vmem:[%s9703_s2 + $0x180] sm:$0xff] }
 0x5c7   :  { %2900 = vmatmul.mubr.f32.vlgmr.msra.gmra.mxu0 %v7645_v2  ;;  %4795 = vmatprep.mubr.msk.f32.mxu1 %vm2674_vm4, %v7653_v24  ;;  %v7964_v2 = vld [vmem:[%s9703_s2 + $0x1f0] sm:$0xff]  ;;  %10087 = vst [vmem:[#allocation18_spill] sm:$0xff] %v8281_v18  ;;  %v8288_v47 = vld [vmem:[%s9703_s2 + $0x108] sm:$0xff]  ;;  %10090 = vst [vmem:[#allocation23_spill] sm:$0xff] %v8300_v8 }
 0x5c8   :  { %4793 = vmatprep.mubr.msk.f32.mxu0 %vm2674_vm4, %v7653_v24  ;;  %5047 = vmatprep.subr.mxu0 %v7930_v45  ;;  %v7969_v24 = vld [vmem:[%s9703_s2 + $0x70] sm:$0xff]  ;;  %10088 = vst [vmem:[#allocation19_spill] sm:$0xff] %v8288_v47 }
 0x5c9   :  { %5085 = vmatprep.subr.mxu1 %v7936_v38  ;;  %5048 = vmatpush3.msra.mxu0 %v7941_v39 }
 0x5ca   :  { %2982 = vmatmul.mubr.f32.gmra.mxu1 %v7664_v25  ;;  %5049 = vmatprep.subr.mxu0 %v7949_v60 }
 0x5cb   :  { %2906 = vmatmul.mubr.f32.gmra.mxu0 %v7664_v25  ;;  %5086 = vmatpush3.msra.mxu1 %v7957_v6  ;;  %v8000_v25 = vld [vmem:[%s9703_s2 + $0x168] sm:$0xff] }
 0x5cc   :  { %5087 = vmatprep.subr.mxu1 %v7964_v2  ;;  %5050 = vmatpush3.msra.mxu0 %v7969_v24 }
 0x5cd   :  { %5088 = vmatpush3.msra.mxu1 %v7976_v20  ;;  %5051 = vmatprep.subr.mxu0 %v7981_v34 }
 0x5ce   :  { %5089 = vmatprep.subr.mxu1 %v7988_v12  ;;  %5052 = vmatpush3.msra.mxu0 %v7993_v42 }
 0x5cf   :  { %5090 = vmatpush3.msra.mxu1 %v8000_v25  ;;  %5053 = vmatprep.subr.mxu0 %v8005_v43 }
 0x5d0   :  { %5091 = vmatprep.subr.mxu1 %v8012_v54  ;;  %5054 = vmatpush3.msra.mxu0 %v8017_v36 }
 0x5d1   :  { %5092 = vmatpush3.msra.mxu1 %v8024_v46  ;;  %5055 = vmatprep.subr.mxu0 %v8029_v27 }
 0x5d2   :  { %5093 = vmatprep.subr.mxu1 %v8036_v28  ;;  %5056 = vmatpush3.msra.mxu0 %v8041_v17 }
 0x5d3   :  { %5094 = vmatpush3.msra.mxu1 %v8048_v3  ;;  %5057 = vmatprep.subr.mxu0 %v8053_v23 }
 0x5d4   :  { %5095 = vmatprep.subr.mxu1 %v8060_v7  ;;  %5058 = vmatpush3.msra.mxu0 %v8065_v41 }
 0x5d5   :  { %5096 = vmatpush3.msra.mxu1 %v8072_v16  ;;  %5059 = vmatprep.subr.mxu0 %v8077_v61 }
 0x5d6   :  { %5097 = vmatprep.subr.mxu1 %v8084_v9  ;;  %5060 = vmatpush3.msra.mxu0 %v8089_v58 }
 0x5d7   :  { %5098 = vmatpush3.msra.mxu1 %v8096_v49  ;;  %5061 = vmatprep.subr.mxu0 %v8101_v13 }
 0x5d8   :  { %5099 = vmatprep.subr.mxu1 %v8108_v57  ;;  %5062 = vmatpush3.msra.mxu0 %v8113_v51 }
 0x5d9   :  { %5100 = vmatpush3.msra.mxu1 %v8120_v62  ;;  %5063 = vmatprep.subr.mxu0 %v8125_v53 }
 0x5da   :  { %5101 = vmatprep.subr.mxu1 %v8132_v48  ;;  %5064 = vmatpush3.msra.mxu0 %v8137_v26 }
 0x5db   :  { %5102 = vmatpush3.msra.mxu1 %v8144_v56  ;;  %5065 = vmatprep.subr.mxu0 %v8149_v5 }
 0x5dc   :  { %5103 = vmatprep.subr.mxu1 %v8156_v63  ;;  %5066 = vmatpush3.msra.mxu0 %v8161_v35 }
 0x5dd   :  { %5104 = vmatpush3.msra.mxu1 %v8168_v19  ;;  %5067 = vmatprep.subr.mxu0 %v8173_v10 }
 0x5de   :  { %5105 = vmatprep.subr.mxu1 %v8180_v30  ;;  %5068 = vmatpush3.msra.mxu0 %v8185_v11 }
 0x5df   :  { %5106 = vmatpush3.msra.mxu1 %v8192_v22  ;;  %5069 = vmatprep.subr.mxu0 %v8197_v0 }
 0x5e0   :  { %5107 = vmatprep.subr.mxu1 %v8204_v40  ;;  %5070 = vmatpush3.msra.mxu0 %v8209_v15 }
 0x5e1   :  { %5108 = vmatpush3.msra.mxu1 %v8216_v44  ;;  %5071 = vmatprep.subr.mxu0 %v8221_v52 }
 0x5e2   :  { %5109 = vmatprep.subr.mxu1 %v8228_v31  ;;  %5072 = vmatpush3.msra.mxu0 %v8233_v50 }
 0x5e3   :  { %5110 = vmatpush3.msra.mxu1 %v8240_v1  ;;  %5073 = vmatprep.subr.mxu0 %v8245_v29 }
 0x5e4   :  { %5111 = vmatprep.subr.mxu1 %v8252_v59  ;;  %5074 = vmatpush3.msra.mxu0 %v8257_v32 }
 0x5e5   :  { %5112 = vmatpush3.msra.mxu1 %v8264_v4  ;;  %5075 = vmatprep.subr.mxu0 %v8269_v55  ;;  %v8317_v55 = vld [vmem:[%s9703_s2 + $0x2f8] sm:$0xff] }
 0x5e6   :  { %5113 = vmatprep.subr.mxu1 %v8276_v14  ;;  %5076 = vmatpush3.msra.mxu0 %v8281_v18  ;;  %10093 = vst [vmem:[#allocation26_spill] sm:$0xff] %v8317_v55  ;;  %v8324_v14 = vld [vmem:[%s9703_s2 + $0x378] sm:$0xff] }
 0x5e7   :  { %5114 = vmatpush3.msra.mxu1 %v8288_v47  ;;  %5077 = vmatprep.subr.mxu0 %v8293_v33  ;;  %10094 = vst [vmem:[#allocation27_spill] sm:$0xff] %v8324_v14  ;;  %v8338_v33 = vld [vmem:[%s9703_s2 + $0x278] sm:$0xff] }
 0x5e8   :  { %5115 = vmatprep.subr.mxu1 %v8300_v8  ;;  %5078 = vmatpush3.msra.mxu0 %v8305_v37  ;;  %10096 = vst [vmem:[#allocation29_spill] sm:$0xff] %v8338_v33  ;;  %v8344_v37 = vld [vmem:[%s9703_s2 + $0x2f0] sm:$0xff]  ;;  %v8358_v8 = vld [vmem:[%s9703_s2 + $0x2e8] sm:$0xff] }
 0x5e9   :  { %5116 = vmatpush3.msra.mxu1 %v8312_v21  ;;  %5123 = vmatprep.subr.mxu0 %v8317_v55  ;;  %10097 = vst [vmem:[#allocation30_spill] sm:$0xff] %v8344_v37  ;;  %v8350_v55 = vld [vmem:[%s9703_s2 + $0x270] sm:$0xff]  ;;  %10100 = vst [vmem:[#allocation33_spill] sm:$0xff] %v8358_v8 }
 0x5ea   :  { %5388 = vmatprep.subr.mxu1 %v8324_v14  ;;  %10098 = vst [vmem:[#allocation31_spill] sm:$0xff] %v8350_v55 }
 0x612   :  { %v8331_v18 = vpop.f32.mrf.mxu0 }
 0x613   :  { %10095 = vst [vmem:[#allocation28_spill] sm:$0xff] %v8331_v18 }
 0x614   :  { %v8333_v47 = vpop.f32.mrf.mxu0 }
 0x615   :  { %3163 = vmatprep.mubr.f32.mxu0 %v8333_v47 }
 0x616   :  { %3164 = vmatmul.mubr.f32.vlgmr.msra.gmra.mxu0 %v8331_v18  ;;  %v8352_v21 = vpop.f32.mrf.mxu0  ;;  %v8364_v18 = vld [vmem:[%s9703_s2 + $0x268] sm:$0xff] }
 0x617   :  { %10099 = vst [vmem:[#allocation32_spill] sm:$0xff] %v8352_v21  ;;  %5124 = vmatpush3.msra.mxu0 %v8338_v33  ;;  %10101 = vst [vmem:[#allocation34_spill] sm:$0xff] %v8364_v18  ;;  %v8372_v33 = vld [vmem:[%s9703_s2 + $0x2e0] sm:$0xff] }
 0x618   :  { %5125 = vmatprep.subr.mxu0 %v8344_v37  ;;  %v8366_v4 = vpop.f32.mrf.mxu0  ;;  %10103 = vst [vmem:[#allocation36_spill] sm:$0xff] %v8372_v33  ;;  %v8379_v37 = vld [vmem:[%s9703_s2 + $0x260] sm:$0xff] }
 0x619   :  { %10102 = vst [vmem:[#allocation35_spill] sm:$0xff] %v8366_v4  ;;  %5126 = vmatpush3.msra.mxu0 %v8350_v55  ;;  %3168 = vmatprep.mubr.f32.mxu0 %v8366_v4  ;;  %10104 = vst [vmem:[#allocation37_spill] sm:$0xff] %v8379_v37  ;;  %v8386_v55 = vld [vmem:[%s9703_s2 + $0x2d8] sm:$0xff] }
 0x61a   :  { %5127 = vmatprep.subr.mxu0 %v8358_v8  ;;  %3169 = vmatmul.mubr.f32.gmra.mxu0 %v8352_v21  ;;  %10105 = vst [vmem:[#allocation38_spill] sm:$0xff] %v8386_v55  ;;  %v8392_v8 = vld [vmem:[%s9703_s2 + $0x258] sm:$0xff]  ;;  %v8398_v21 = vld [vmem:[%s9703_s2 + $0x2d0] sm:$0xff] }
 0x61b   :  { %5128 = vmatpush3.msra.mxu0 %v8364_v18  ;;  %10106 = vst [vmem:[#allocation39_spill] sm:$0xff] %v8392_v8  ;;  %10107 = vst [vmem:[#allocation40_spill] sm:$0xff] %v8398_v21  ;;  %v8404_v18 = vld [vmem:[%s9703_s2 + $0x250] sm:$0xff] }
 0x61c   :  { %5129 = vmatprep.subr.mxu0 %v8372_v33  ;;  %10108 = vst [vmem:[#allocation41_spill] sm:$0xff] %v8404_v18  ;;  %v8410_v33 = vld [vmem:[%s9703_s2 + $0x2c8] sm:$0xff] }
 0x61d   :  { %5130 = vmatpush3.msra.mxu0 %v8379_v37  ;;  %10109 = vst [vmem:[#allocation42_spill] sm:$0xff] %v8410_v33  ;;  %v8416_v37 = vld [vmem:[%s9703_s2 + $0x248] sm:$0xff] }
 0x61e   :  { %5131 = vmatprep.subr.mxu0 %v8386_v55  ;;  %10110 = vst [vmem:[#allocation43_spill] sm:$0xff] %v8416_v37  ;;  %v8422_v55 = vld [vmem:[%s9703_s2 + $0x2c0] sm:$0xff] }
 0x61f   :  { %5132 = vmatpush3.msra.mxu0 %v8392_v8  ;;  %10111 = vst [vmem:[#allocation44_spill] sm:$0xff] %v8422_v55  ;;  %v8428_v8 = vld [vmem:[%s9703_s2 + $0x240] sm:$0xff] }
 0x620   :  { %5133 = vmatprep.subr.mxu0 %v8398_v21  ;;  %10112 = vst [vmem:[#allocation45_spill] sm:$0xff] %v8428_v8  ;;  %v8434_v21 = vld [vmem:[%s9703_s2 + $0x2b8] sm:$0xff] }
 0x621   :  { %5134 = vmatpush3.msra.mxu0 %v8404_v18  ;;  %10113 = vst [vmem:[#allocation46_spill] sm:$0xff] %v8434_v21  ;;  %v8440_v18 = vld [vmem:[%s9703_s2 + $0x238] sm:$0xff] }
 0x622   :  { %5135 = vmatprep.subr.mxu0 %v8410_v33  ;;  %10114 = vst [vmem:[#allocation47_spill] sm:$0xff] %v8440_v18  ;;  %v8446_v33 = vld [vmem:[%s9703_s2 + $0x2b0] sm:$0xff] }
 0x623   :  { %5136 = vmatpush3.msra.mxu0 %v8416_v37  ;;  %10115 = vst [vmem:[#allocation48_spill] sm:$0xff] %v8446_v33  ;;  %v8452_v37 = vld [vmem:[%s9703_s2 + $0x230] sm:$0xff] }
 0x624   :  { %5137 = vmatprep.subr.mxu0 %v8422_v55  ;;  %10116 = vst [vmem:[#allocation49_spill] sm:$0xff] %v8452_v37  ;;  %v8458_v55 = vld [vmem:[%s9703_s2 + $0x2a8] sm:$0xff] }
 0x625   :  { %5138 = vmatpush3.msra.mxu0 %v8428_v8  ;;  %10117 = vst [vmem:[#allocation50_spill] sm:$0xff] %v8458_v55  ;;  %v8464_v8 = vld [vmem:[%s9703_s2 + $0x228] sm:$0xff] }
 0x626   :  { %5139 = vmatprep.subr.mxu0 %v8434_v21  ;;  %10118 = vst [vmem:[#allocation51_spill] sm:$0xff] %v8464_v8  ;;  %v8470_v21 = vld [vmem:[%s9703_s2 + $0x2a0] sm:$0xff] }
 0x627   :  { %5140 = vmatpush3.msra.mxu0 %v8440_v18  ;;  %10119 = vst [vmem:[#allocation52_spill] sm:$0xff] %v8470_v21  ;;  %v8476_v18 = vld [vmem:[%s9703_s2 + $0x220] sm:$0xff] }
 0x628   :  { %5141 = vmatprep.subr.mxu0 %v8446_v33  ;;  %10120 = vst [vmem:[#allocation53_spill] sm:$0xff] %v8476_v18  ;;  %v8482_v33 = vld [vmem:[%s9703_s2 + $0x298] sm:$0xff] }
 0x629   :  { %5142 = vmatpush3.msra.mxu0 %v8452_v37  ;;  %10121 = vst [vmem:[#allocation54_spill] sm:$0xff] %v8482_v33  ;;  %v8488_v37 = vld [vmem:[%s9703_s2 + $0x218] sm:$0xff] }
 0x62a   :  { %5143 = vmatprep.subr.mxu0 %v8458_v55  ;;  %10122 = vst [vmem:[#allocation55_spill] sm:$0xff] %v8488_v37  ;;  %v8494_v55 = vld [vmem:[%s9703_s2 + $0x290] sm:$0xff] }
 0x62b   :  { %5144 = vmatpush3.msra.mxu0 %v8464_v8  ;;  %10123 = vst [vmem:[#allocation56_spill] sm:$0xff] %v8494_v55  ;;  %v8500_v8 = vld [vmem:[%s9703_s2 + $0x210] sm:$0xff] }
 0x62c   :  { %5145 = vmatprep.subr.mxu0 %v8470_v21  ;;  %10124 = vst [vmem:[#allocation57_spill] sm:$0xff] %v8500_v8  ;;  %v8506_v21 = vld [vmem:[%s9703_s2 + $0x288] sm:$0xff] }
 0x62d   :  { %5146 = vmatpush3.msra.mxu0 %v8476_v18  ;;  %10125 = vst [vmem:[#allocation58_spill] sm:$0xff] %v8506_v21  ;;  %v8512_v18 = vld [vmem:[%s9703_s2 + $0x208] sm:$0xff] }
 0x62e   :  { %5147 = vmatprep.subr.mxu0 %v8482_v33  ;;  %10126 = vst [vmem:[#allocation59_spill] sm:$0xff] %v8512_v18  ;;  %v8518_v33 = vld [vmem:[%s9703_s2 + $0x280] sm:$0xff] }
 0x62f   :  { %5148 = vmatpush3.msra.mxu0 %v8488_v37  ;;  %10127 = vst [vmem:[#allocation60_spill] sm:$0xff] %v8518_v33  ;;  %v8524_v37 = vld [vmem:[%s9703_s2 + $0x200] sm:$0xff] }
 0x630   :  { %5149 = vmatprep.subr.mxu0 %v8494_v55  ;;  %10128 = vst [vmem:[#allocation61_spill] sm:$0xff] %v8524_v37 }
 0x631   :  { %5150 = vmatpush3.msra.mxu0 %v8500_v8 }
 0x632   :  { %5151 = vmatprep.subr.mxu0 %v8506_v21  ;;  %v8537_v21 = vld [vmem:[%s9703_s2 + $0x370] sm:$0xff] }
 0x633   :  { %v8526_v55 = vpop.f32.mrf.mxu1  ;;  %5152 = vmatpush3.msra.mxu0 %v8512_v18  ;;  %10130 = vst [vmem:[#allocation63_spill] sm:$0xff] %v8537_v21  ;;  %v8565_v18 = vld [vmem:[%s9703_s2 + $0x358] sm:$0xff] }
 0x634   :  { %5153 = vmatprep.subr.mxu0 %v8518_v33  ;;  %v8547_v33 = vld [vmem:[%s9703_s2 + $0x368] sm:$0xff]  ;;  %10135 = vst [vmem:[#allocation21_spill] sm:$0xff] %v8565_v18 }
 0x635   :  { %v8530_v4 = vpop.f32.mrf.mxu1  ;;  %5154 = vmatpush3.msra.mxu0 %v8524_v37  ;;  %10132 = vst [vmem:[#allocation3_spill] sm:$0xff] %v8547_v33 }
 0x636   :  { %10129 = vst [vmem:[#allocation62_spill] sm:$0xff] %v8530_v4  ;;  %3238 = vmatprep.mubr.f32.mxu1 %v8530_v4  ;;  %5179 = vmatprep.subr.mxu0 %v7930_v45  ;;  %v8556_v45 = vld [vmem:[%s9703_s2 + $0x360] sm:$0xff] }
 0x637   :  { %3239 = vmatmul.mubr.f32.vlgmr.msra.gmra.mxu1 %v8526_v55  ;;  %v8541_v8 = vpop.f32.mrf.mxu1  ;;  %10134 = vst [vmem:[#allocation15_spill] sm:$0xff] %v8556_v45 }
 0x638   :  { %10131 = vst [vmem:[#allocation64_spill] sm:$0xff] %v8541_v8  ;;  %5389 = vmatpush3.msra.mxu1 %v8324_v14 }
 0x639   :  { %5390 = vmatprep.subr.mxu1 %v8537_v21  ;;  %v8550_v37 = vpop.f32.mrf.mxu1 }
 0x63a   :  { %10133 = vst [vmem:[#allocation14_spill] sm:$0xff] %v8550_v37  ;;  %5391 = vmatpush3.msra.mxu1 %v8537_v21  ;;  %3243 = vmatprep.mubr.f32.mxu1 %v8550_v37  ;;  %v8572_v21 = vld [vmem:[%s9703_s2 + $0x350] sm:$0xff] }
 0x63b   :  { %5392 = vmatprep.subr.mxu1 %v8547_v33  ;;  %3244 = vmatmul.mubr.f32.gmra.mxu1 %v8541_v8  ;;  %10136 = vst [vmem:[#allocation65_spill] sm:$0xff] %v8572_v21 }
 0x63c   :  { %5393 = vmatpush3.msra.mxu1 %v8547_v33  ;;  %v8579_v33 = vld [vmem:[%s9703_s2 + $0x348] sm:$0xff] }
 0x63d   :  { %5394 = vmatprep.subr.mxu1 %v8556_v45  ;;  %10137 = vst [vmem:[#allocation66_spill] sm:$0xff] %v8579_v33 }
 0x63e   :  { %5395 = vmatpush3.msra.mxu1 %v8556_v45  ;;  %v8586_v45 = vld [vmem:[%s9703_s2 + $0x340] sm:$0xff] }
 0x63f   :  { %5396 = vmatprep.subr.mxu1 %v8565_v18  ;;  %10138 = vst [vmem:[#allocation67_spill] sm:$0xff] %v8586_v45 }
 0x640   :  { %5397 = vmatpush3.msra.mxu1 %v8565_v18  ;;  %v8593_v18 = vld [vmem:[%s9703_s2 + $0x338] sm:$0xff] }
 0x641   :  { %5398 = vmatprep.subr.mxu1 %v8572_v21  ;;  %10139 = vst [vmem:[#allocation68_spill] sm:$0xff] %v8593_v18 }
 0x642   :  { %5399 = vmatpush3.msra.mxu1 %v8572_v21  ;;  %v8600_v21 = vld [vmem:[%s9703_s2 + $0x330] sm:$0xff] }
 0x643   :  { %5400 = vmatprep.subr.mxu1 %v8579_v33  ;;  %10140 = vst [vmem:[#allocation69_spill] sm:$0xff] %v8600_v21 }
 0x644   :  { %5401 = vmatpush3.msra.mxu1 %v8579_v33  ;;  %v8607_v33 = vld [vmem:[%s9703_s2 + $0x328] sm:$0xff] }
 0x645   :  { %5402 = vmatprep.subr.mxu1 %v8586_v45  ;;  %10141 = vst [vmem:[#allocation70_spill] sm:$0xff] %v8607_v33 }
 0x646   :  { %5403 = vmatpush3.msra.mxu1 %v8586_v45  ;;  %v8614_v45 = vld [vmem:[%s9703_s2 + $0x320] sm:$0xff] }
 0x647   :  { %5404 = vmatprep.subr.mxu1 %v8593_v18  ;;  %10142 = vst [vmem:[#allocation71_spill] sm:$0xff] %v8614_v45 }
 0x648   :  { %5405 = vmatpush3.msra.mxu1 %v8593_v18  ;;  %v8621_v18 = vld [vmem:[%s9703_s2 + $0x318] sm:$0xff] }
 0x649   :  { %5406 = vmatprep.subr.mxu1 %v8600_v21  ;;  %10143 = vst [vmem:[#allocation72_spill] sm:$0xff] %v8621_v18 }
 0x64a   :  { %5407 = vmatpush3.msra.mxu1 %v8600_v21  ;;  %v8628_v21 = vld [vmem:[%s9703_s2 + $0x310] sm:$0xff] }
 0x64b   :  { %5408 = vmatprep.subr.mxu1 %v8607_v33  ;;  %10144 = vst [vmem:[#allocation73_spill] sm:$0xff] %v8628_v21 }
 0x64c   :  { %5409 = vmatpush3.msra.mxu1 %v8607_v33  ;;  %v8635_v33 = vld [vmem:[%s9703_s2 + $0x308] sm:$0xff] }
 0x64d   :  { %5410 = vmatprep.subr.mxu1 %v8614_v45  ;;  %10145 = vst [vmem:[#allocation74_spill] sm:$0xff] %v8635_v33 }
 0x64e   :  { %5411 = vmatpush3.msra.mxu1 %v8614_v45  ;;  %v8642_v45 = vld [vmem:[%s9703_s2 + $0x300] sm:$0xff] }
 0x64f   :  { %5412 = vmatprep.subr.mxu1 %v8621_v18  ;;  %10146 = vst [vmem:[#allocation75_spill] sm:$0xff] %v8642_v45 }
 0x650   :  { %5413 = vmatpush3.msra.mxu1 %v8621_v18 }
 0x651   :  { %5414 = vmatprep.subr.mxu1 %v8628_v21 }
 0x652   :  { %5415 = vmatpush3.msra.mxu1 %v8628_v21 }
 0x653   :  { %5416 = vmatprep.subr.mxu1 %v8635_v33 }
 0x654   :  { %5417 = vmatpush3.msra.mxu1 %v8635_v33 }
 0x655   :  { %5418 = vmatprep.subr.mxu1 %v8642_v45 }
 0x656   :  { %5419 = vmatpush3.msra.mxu1 %v8642_v45 }
 0x657   :  { %5217 = vmatprep.subr.mxu1 %v7936_v38  ;;  %v3402_v38 = vmul.f32 %v8530_v4, %v8530_v4  ;;  %v3400_v4 = vmul.f32 %v8333_v47, %v8333_v47 }
 0x686   :  { %v8649_v18 = vpop.f32.mrf.mxu1 }
 0x687   :  { %v8651_v8 = vpop.f32.mrf.mxu0  ;;  %5420 = vmatprep.mubr.f32.mxu1 %v8649_v18 }
 0x688   :  { %v2980_v21 = vpop.f32.mrf.mxu1 }
 0x689   :  { %v8654_v14 = vpop.f32.mrf.mxu0 }
 0x68a   :  { %v8656_v37 = vpop.f32.mrf.mxu1  ;;  %3313 = vmatprep.mubr.f32.mxu0 %v8654_v14 }
 0x68b   :  { %v8659_v33 = vpop.f32.mrf.mxu0  ;;  %3314 = vmatmul.mubr.f32.vlgmr.msra.gmra.mxu0 %v8651_v8  ;;  %5421 = vmatmul.mubr.f32.vlgmr.msra.gmra.mxu1 %v8656_v37 }
 0x68c   :  { %5180 = vmatpush3.msra.mxu0 %v7941_v39  ;;  %5218 = vmatpush3.msra.mxu1 %v7957_v6  ;;  %v2985_v21 = vpop.f32.mrf.mxu1  ;;  %v10147_v39 = vld [vmem:[#allocation22_spill] sm:$0xff]  ;;  %v10149_v6 = vld [vmem:[#allocation17_spill] sm:$0xff] }
 0x68d   :  { %5181 = vmatprep.subr.mxu0 %v7949_v60  ;;  %5219 = vmatprep.subr.mxu1 %v7964_v2  ;;  %v8669_v45 = vpop.f32.mrf.mxu0  ;;  %v10148_v60 = vld [vmem:[#allocation16_spill] sm:$0xff]  ;;  %v10150_v2 = vld [vmem:[#allocation18_spill] sm:$0xff] }
 0x68e   :  { %3552 = vmatprep.mubr.f32.mxu1 %v3402_v38  ;;  %5182 = vmatpush3.msra.mxu0 %v7969_v24  ;;  %v10151_v24 = vld [vmem:[#allocation19_spill] sm:$0xff]  ;;  %v10194_v21 = vld [vmem:[#allocation52_spill] sm:$0xff] }
 0x68f   :  { %5220 = vmatpush3.msra.mxu1 %v7976_v20  ;;  %3318 = vmatprep.mubr.f32.mxu0 %v8669_v45  ;;  %v10152_v20 = vld [vmem:[#allocation28_spill] sm:$0xff]  ;;  %v10193_v38 = vld [vmem:[#allocation51_spill] sm:$0xff] }
 0x690   :  { %5183 = vmatprep.subr.mxu0 %v7981_v34  ;;  %5221 = vmatprep.subr.mxu1 %v7988_v12  ;;  %v3399_v34 = vmul.f32 %v10152_v20, %v10152_v20  ;;  %v3401_v12 = vmul.f32 %v8526_v55, %v8526_v55 }
 0x691   :  { %3319 = vmatmul.mubr.f32.gmra.mxu0 %v8659_v33  ;;  %5222 = vmatpush3.msra.mxu1 %v8000_v25  ;;  %v10154_v25 = vld [vmem:[#allocation23_spill] sm:$0xff] }
 0x692   :  { %5184 = vmatpush3.msra.mxu0 %v7993_v42  ;;  %3477 = vmatprep.mubr.f32.mxu0 %v3400_v4  ;;  %v10153_v42 = vld [vmem:[#allocation20_spill] sm:$0xff]  ;;  %v10192_v4 = vld [vmem:[#allocation70_spill] sm:$0xff] }
 0x693   :  { %5185 = vmatprep.subr.mxu0 %v8005_v43  ;;  %5223 = vmatprep.subr.mxu1 %v8012_v54  ;;  %v10155_v43 = vld [vmem:[#allocation24_spill] sm:$0xff]  ;;  %v10156_v54 = vld [vmem:[#allocation25_spill] sm:$0xff] }
 0x694   :  { %5186 = vmatpush3.msra.mxu0 %v8017_v36  ;;  %5224 = vmatpush3.msra.mxu1 %v8024_v46  ;;  %v10157_v36 = vld [vmem:[#allocation35_spill] sm:$0xff] }
 0x695   :  { %5187 = vmatprep.subr.mxu0 %v8029_v27  ;;  %5225 = vmatprep.subr.mxu1 %v8036_v28  ;;  %v3407_v46 = vmul.f32 %v10157_v36, %v10157_v36  ;;  %v10158_v27 = vld [vmem:[#allocation14_spill] sm:$0xff] }
 0x696   :  { %5188 = vmatpush3.msra.mxu0 %v8041_v17  ;;  %5226 = vmatpush3.msra.mxu1 %v8048_v3  ;;  %v3409_v28 = vmul.f32 %v10158_v27, %v10158_v27  ;;  %v10159_v17 = vld [vmem:[#allocation26_spill] sm:$0xff]  ;;  %v10160_v3 = vld [vmem:[#allocation27_spill] sm:$0xff] }
 0x697   :  { %5189 = vmatprep.subr.mxu0 %v8053_v23  ;;  %5227 = vmatprep.subr.mxu1 %v8060_v7  ;;  %v10161_v23 = vld [vmem:[#allocation29_spill] sm:$0xff]  ;;  %v10162_v7 = vld [vmem:[#allocation32_spill] sm:$0xff] }
 0x698   :  { %5190 = vmatpush3.msra.mxu0 %v8065_v41  ;;  %5228 = vmatpush3.msra.mxu1 %v8072_v16  ;;  %v3406_v41 = vmul.f32 %v10162_v7, %v10162_v7  ;;  %v10163_v16 = vld [vmem:[#allocation64_spill] sm:$0xff] }
 0x699   :  { %5191 = vmatprep.subr.mxu0 %v8077_v61  ;;  %5229 = vmatprep.subr.mxu1 %v8084_v9  ;;  %v3408_v61 = vmul.f32 %v10163_v16, %v10163_v16  ;;  %v10164_v9 = vld [vmem:[#allocation30_spill] sm:$0xff] }
 0x69a   :  { %5192 = vmatpush3.msra.mxu0 %v8089_v58  ;;  %5230 = vmatpush3.msra.mxu1 %v8096_v49  ;;  %v10165_v58 = vld [vmem:[#allocation63_spill] sm:$0xff] }
 0x69b   :  { %5193 = vmatprep.subr.mxu0 %v8101_v13  ;;  %5231 = vmatprep.subr.mxu1 %v8108_v57  ;;  %v10166_v49 = vld [vmem:[#allocation31_spill] sm:$0xff]  ;;  %v3404_v13 = vmul.f32 %v8654_v14, %v8654_v14  ;;  %v3405_v57 = vmul.f32 %v8649_v18, %v8649_v18 }
 0x69c   :  { %5194 = vmatpush3.msra.mxu0 %v8113_v51  ;;  %5232 = vmatpush3.msra.mxu1 %v8120_v62  ;;  %v10167_v51 = vld [vmem:[#allocation33_spill] sm:$0xff]  ;;  %v10168_v62 = vld [vmem:[#allocation3_spill] sm:$0xff] }
 0x69d   :  { %5195 = vmatprep.subr.mxu0 %v8125_v53  ;;  %5233 = vmatprep.subr.mxu1 %v8132_v48  ;;  %v10169_v53 = vld [vmem:[#allocation34_spill] sm:$0xff]  ;;  %v10170_v48 = vld [vmem:[#allocation36_spill] sm:$0xff] }
 0x69e   :  { %5196 = vmatpush3.msra.mxu0 %v8137_v26  ;;  %5234 = vmatpush3.msra.mxu1 %v8144_v56  ;;  %v10171_v26 = vld [vmem:[#allocation15_spill] sm:$0xff]  ;;  %v10172_v56 = vld [vmem:[#allocation37_spill] sm:$0xff] }
 0x69f   :  { %5197 = vmatprep.subr.mxu0 %v8149_v5  ;;  %5235 = vmatprep.subr.mxu1 %v8156_v63  ;;  %v10173_v5 = vld [vmem:[#allocation38_spill] sm:$0xff]  ;;  %v10174_v63 = vld [vmem:[#allocation21_spill] sm:$0xff] }
 0x6a0   :  { %5198 = vmatpush3.msra.mxu0 %v8161_v35  ;;  %5236 = vmatpush3.msra.mxu1 %v8168_v19  ;;  %v10175_v35 = vld [vmem:[#allocation39_spill] sm:$0xff]  ;;  %v10176_v19 = vld [vmem:[#allocation40_spill] sm:$0xff] }
 0x6a1   :  { %5199 = vmatprep.subr.mxu0 %v8173_v10  ;;  %5237 = vmatprep.subr.mxu1 %v8180_v30  ;;  %v10177_v10 = vld [vmem:[#allocation65_spill] sm:$0xff] }
 0x6a2   :  { %5200 = vmatpush3.msra.mxu0 %v8185_v11  ;;  %5238 = vmatpush3.msra.mxu1 %v8192_v22  ;;  %v10178_v30 = vld [vmem:[#allocation41_spill] sm:$0xff]  ;;  %v10179_v11 = vld [vmem:[#allocation42_spill] sm:$0xff] }
 0x6a3   :  { %5201 = vmatprep.subr.mxu0 %v8197_v0  ;;  %5239 = vmatprep.subr.mxu1 %v8204_v40  ;;  %v10180_v22 = vld [vmem:[#allocation66_spill] sm:$0xff]  ;;  %v10181_v0 = vld [vmem:[#allocation43_spill] sm:$0xff]  ;;  %v10182_v40 = vld [vmem:[#allocation44_spill] sm:$0xff] }
 0x6a4   :  { %5202 = vmatpush3.msra.mxu0 %v8209_v15  ;;  %5240 = vmatpush3.msra.mxu1 %v8216_v44  ;;  %v10183_v15 = vld [vmem:[#allocation67_spill] sm:$0xff]  ;;  %v10184_v44 = vld [vmem:[#allocation45_spill] sm:$0xff] }
 0x6a5   :  { %5203 = vmatprep.subr.mxu0 %v8221_v52  ;;  %5241 = vmatprep.subr.mxu1 %v8228_v31  ;;  %v10185_v52 = vld [vmem:[#allocation46_spill] sm:$0xff]  ;;  %v10186_v31 = vld [vmem:[#allocation68_spill] sm:$0xff] }
 0x6a6   :  { %5204 = vmatpush3.msra.mxu0 %v8233_v50  ;;  %5242 = vmatpush3.msra.mxu1 %v8240_v1  ;;  %v10187_v50 = vld [vmem:[#allocation47_spill] sm:$0xff]  ;;  %v10188_v1 = vld [vmem:[#allocation48_spill] sm:$0xff] }
 0x6a7   :  { %5205 = vmatprep.subr.mxu0 %v8245_v29  ;;  %5243 = vmatprep.subr.mxu1 %v8252_v59  ;;  %v10189_v29 = vld [vmem:[#allocation69_spill] sm:$0xff] }
 0x6a8   :  { %5206 = vmatpush3.msra.mxu0 %v8257_v32  ;;  %5244 = vmatpush3.msra.mxu1 %v10147_v39  ;;  %v10190_v59 = vld [vmem:[#allocation49_spill] sm:$0xff]  ;;  %v10191_v32 = vld [vmem:[#allocation50_spill] sm:$0xff]  ;;  %v10195_v39 = vld [vmem:[#allocation71_spill] sm:$0xff] }
 0x6a9   :  { %5207 = vmatprep.subr.mxu0 %v10148_v60  ;;  %5245 = vmatprep.subr.mxu1 %v10149_v6  ;;  %v10196_v60 = vld [vmem:[#allocation53_spill] sm:$0xff]  ;;  %v10197_v6 = vld [vmem:[#allocation54_spill] sm:$0xff] }
 0x6aa   :  { %5208 = vmatpush3.msra.mxu0 %v10150_v2  ;;  %5246 = vmatpush3.msra.mxu1 %v10151_v24  ;;  %v10198_v2 = vld [vmem:[#allocation72_spill] sm:$0xff]  ;;  %v10199_v24 = vld [vmem:[#allocation55_spill] sm:$0xff] }
 0x6ab   :  { %5209 = vmatprep.subr.mxu0 %v10153_v42  ;;  %5247 = vmatprep.subr.mxu1 %v10154_v25  ;;  %v10202_v42 = vld [vmem:[#allocation57_spill] sm:$0xff]  ;;  %v10203_v25 = vld [vmem:[#allocation58_spill] sm:$0xff] }
 0x6ac   :  { %5210 = vmatpush3.msra.mxu0 %v10155_v43  ;;  %5248 = vmatpush3.msra.mxu1 %v10156_v54  ;;  %v10204_v43 = vld [vmem:[#allocation74_spill] sm:$0xff]  ;;  %v10205_v54 = vld [vmem:[#allocation59_spill] sm:$0xff] }
 0x6ad   :  { %3478 = vmatmul.mubr.f32.vlgmr.msra.gmra.mxu0 %v3399_v34  ;;  %3553 = vmatmul.mubr.f32.vlgmr.msra.gmra.mxu1 %v3401_v12  ;;  %v10200_v34 = vld [vmem:[#allocation56_spill] sm:$0xff]  ;;  %v10201_v12 = vld [vmem:[#allocation73_spill] sm:$0xff] }
 0x6ae   :  { %5255 = vmatprep.subr.mxu0 %v10159_v17  ;;  %5423 = vmatprep.subr.mxu1 %v10160_v3  ;;  %v10206_v17 = vld [vmem:[#allocation60_spill] sm:$0xff] }
 0x6af   :  { %3482 = vmatprep.mubr.f32.mxu0 %v3407_v46  ;;  %3557 = vmatprep.mubr.f32.mxu1 %v3409_v28  ;;  %v3403_v46 = vmul.f32 %v8651_v8, %v8651_v8  ;;  %v3412_v28 = vmul.f32 %v8656_v37, %v8656_v37 }
 0x6b0   :  { %5256 = vmatpush3.msra.mxu0 %v10161_v23  ;;  %5424 = vmatpush3.msra.mxu1 %v10160_v3  ;;  %v10207_v3 = vld [vmem:[#allocation75_spill] sm:$0xff]  ;;  %v3411_v23 = vmul.f32 %v8669_v45, %v8669_v45 }
 0x6b1   :  { %5257 = vmatprep.subr.mxu0 %v10164_v9  ;;  %5425 = vmatprep.subr.mxu1 %v10165_v58 }
 0x6b2   :  { %5258 = vmatpush3.msra.mxu0 %v10166_v49  ;;  %5426 = vmatpush3.msra.mxu1 %v10165_v58 }
 0x6b3   :  { %3483 = vmatmul.mubr.f32.gmra.mxu0 %v3406_v41  ;;  %3558 = vmatmul.mubr.f32.gmra.mxu1 %v3408_v61  ;;  %v10208_v41 = vld [vmem:[#allocation61_spill] sm:$0xff]  ;;  %v3410_v61 = vmul.f32 %v8659_v33, %v8659_v33 }
 0x6b4   :  { %5259 = vmatprep.subr.mxu0 %v10167_v51  ;;  %5427 = vmatprep.subr.mxu1 %v10168_v62 }
 0x6b5   :  { %5260 = vmatpush3.msra.mxu0 %v10169_v53  ;;  %3627 = vmatprep.mubr.f32.mxu0 %v3404_v13 }
 0x6b6   :  { %5428 = vmatpush3.msra.mxu1 %v10168_v62  ;;  %5455 = vmatprep.mubr.f32.mxu1 %v3405_v57 }
 0x6b7   :  { %5261 = vmatprep.subr.mxu0 %v10170_v48  ;;  %5429 = vmatprep.subr.mxu1 %v10171_v26 }
 0x6b8   :  { %5262 = vmatpush3.msra.mxu0 %v10172_v56  ;;  %5430 = vmatpush3.msra.mxu1 %v10171_v26 }
 0x6b9   :  { %5263 = vmatprep.subr.mxu0 %v10173_v5  ;;  %5431 = vmatprep.subr.mxu1 %v10174_v63 }
 0x6ba   :  { %5264 = vmatpush3.msra.mxu0 %v10175_v35  ;;  %5432 = vmatpush3.msra.mxu1 %v10174_v63 }
 0x6bb   :  { %5265 = vmatprep.subr.mxu0 %v10176_v19  ;;  %5433 = vmatprep.subr.mxu1 %v10177_v10 }
 0x6bc   :  { %5266 = vmatpush3.msra.mxu0 %v10178_v30  ;;  %5434 = vmatpush3.msra.mxu1 %v10177_v10 }
 0x6bd   :  { %5267 = vmatprep.subr.mxu0 %v10179_v11  ;;  %5435 = vmatprep.subr.mxu1 %v10180_v22 }
 0x6be   :  { %5268 = vmatpush3.msra.mxu0 %v10181_v0  ;;  %5436 = vmatpush3.msra.mxu1 %v10180_v22 }
 0x6bf   :  { %5269 = vmatprep.subr.mxu0 %v10182_v40  ;;  %5437 = vmatprep.subr.mxu1 %v10183_v15 }
 0x6c0   :  { %5270 = vmatpush3.msra.mxu0 %v10184_v44  ;;  %5438 = vmatpush3.msra.mxu1 %v10183_v15 }
 0x6c1   :  { %5271 = vmatprep.subr.mxu0 %v10185_v52  ;;  %5439 = vmatprep.subr.mxu1 %v10186_v31 }
 0x6c2   :  { %5272 = vmatpush3.msra.mxu0 %v10187_v50  ;;  %5440 = vmatpush3.msra.mxu1 %v10186_v31 }
 0x6c3   :  { %5273 = vmatprep.subr.mxu0 %v10188_v1  ;;  %5441 = vmatprep.subr.mxu1 %v10189_v29 }
 0x6c4   :  { %5274 = vmatpush3.msra.mxu0 %v10190_v59  ;;  %5442 = vmatpush3.msra.mxu1 %v10189_v29 }
 0x6c5   :  { %5275 = vmatprep.subr.mxu0 %v10191_v32  ;;  %5443 = vmatprep.subr.mxu1 %v10192_v4 }
 0x6c6   :  { %5276 = vmatpush3.msra.mxu0 %v10193_v38  ;;  %5444 = vmatpush3.msra.mxu1 %v10192_v4 }
 0x6c7   :  { %5277 = vmatprep.subr.mxu0 %v10194_v21  ;;  %5445 = vmatprep.subr.mxu1 %v10195_v39 }
 0x6c8   :  { %5278 = vmatpush3.msra.mxu0 %v10196_v60  ;;  %5446 = vmatpush3.msra.mxu1 %v10195_v39 }
 0x6c9   :  { %5279 = vmatprep.subr.mxu0 %v10197_v6  ;;  %5447 = vmatprep.subr.mxu1 %v10198_v2 }
 0x6ca   :  { %5280 = vmatpush3.msra.mxu0 %v10199_v24  ;;  %5448 = vmatpush3.msra.mxu1 %v10198_v2 }
 0x6cb   :  { %5281 = vmatprep.subr.mxu0 %v10200_v34  ;;  %5449 = vmatprep.subr.mxu1 %v10201_v12 }
 0x6cc   :  { %5282 = vmatpush3.msra.mxu0 %v10202_v42  ;;  %5450 = vmatpush3.msra.mxu1 %v10201_v12 }
 0x6cd   :  { %5283 = vmatprep.subr.mxu0 %v10203_v25  ;;  %5451 = vmatprep.subr.mxu1 %v10204_v43 }
 0x6ce   :  { %5284 = vmatpush3.msra.mxu0 %v10205_v54  ;;  %5452 = vmatpush3.msra.mxu1 %v10204_v43 }
 0x6cf   :  { %5285 = vmatprep.subr.mxu0 %v10206_v17  ;;  %5453 = vmatprep.subr.mxu1 %v10207_v3 }
 0x6d0   :  { %5286 = vmatpush3.msra.mxu0 %v10208_v41  ;;  %5454 = vmatpush3.msra.mxu1 %v10207_v3 }
 0x6d1   :  { %3628 = vmatmul.mubr.f32.vlgmr.msra.gmra.mxu0 %v3403_v46  ;;  %5456 = vmatmul.mubr.f32.vlgmr.msra.gmra.mxu1 %v3412_v28 }
 0x6d2   :  { %3632 = vmatprep.mubr.f32.mxu0 %v3411_v23 }
 0x6d5   :  { %3633 = vmatmul.mubr.f32.gmra.mxu0 %v3410_v61 }
 0x6d6   :  { %v5079_v9 = vpop.f32.mrf.mxu0 }
 0x6d8   :  { %v5080_v58 = vpop.f32.mrf.mxu0 }
 0x6d9   :  { %v5081_v11 = vadd.f32 %v5080_v58, %v5079_v9 }
 0x6da   :  { %v5082_v49 = vpop.f32.mrf.mxu0 }
 0x6dc   :  { %v5083_v57 = vpop.f32.mrf.mxu0 }
 0x6dd   :  { %v5084_v52 = vadd.f32 %v5083_v57, %v5082_v49 }
 0x6f7   :  { %v5117_v13 = vpop.f32.mrf.mxu1 }
 0x6f9   :  { %v5118_v62 = vpop.f32.mrf.mxu1 }
 0x6fa   :  { %v5119_v22 = vadd.f32 %v5118_v62, %v5117_v13 }
 0x6fb   :  { %v5120_v53 = vpop.f32.mrf.mxu1 }
 0x6fc   :  { %v3241_v44 = vadd.f32 %v5119_v22, %v5081_v11 }
 0x6fd   :  { %v5121_v26 = vpop.f32.mrf.mxu1 }
 0x6fe   :  { %v5122_v31 = vadd.f32 %v5121_v26, %v5120_v53 }
 0x700   :  { %v3246_v32 = vadd.f32 %v5122_v31, %v5084_v52 }
 0x74b   :  { %v5155_v51 = vpop.f32.mrf.mxu0  ;;  %v5422_v5 = vpop.f32.mrf.mxu1 }
 0x74d   :  { %v5156_v48 = vpop.f32.mrf.mxu0  ;;  %v3390_v35 = vpop.f32.mrf.mxu1 }
 0x74e   :  { %v5157_v40 = vadd.f32 %v5156_v48, %v5155_v51 }
 0x750   :  { %v3316_v1 = vadd.f32 %v5157_v40, %v3241_v44  ;;  %v5536_v44 = vmov 3  }
 0x751   :  { %v5158_v56 = vpop.f32.mrf.mxu0 }
 0x752   :  { %v3391_v60 = vadd.f32 %v3390_v35, %v3316_v1  ;;  %v5535_v35 = vmov 2  }
 0x753   :  { %v5159_v63 = vpop.f32.mrf.mxu0  ;;  %5493 = vset.pattern.permute.xlu1 %v5535_v35  ;;  %5494 = vset.pattern.permute.xlu0 %v5535_v35 }
 0x754   :  { %v5160_v29 = vadd.f32 %v5159_v63, %v5158_v56  ;;  %v3713_v54 = vmul.f32 0.001953125, %v3391_v60 }
 0x756   :  { %v3321_v6 = vadd.f32 %v5160_v29, %v3246_v32  ;;  %v3717_v9 = vmul.f32 %v3713_v54, %v3713_v54 }
 0x758   :  { %v3396_v46 = vadd.f32 %v5422_v5, %v3321_v6 }
 0x75a   :  { %v3714_v58 = vmul.f32 0.001953125, %v3396_v46 }
 0x75c   :  { %v3718_v62 = vmul.f32 %v3714_v58, %v3714_v58 }
 0x76d   :  { %v5211_v19 = vpop.f32.mrf.mxu0  ;;  %v5249_v10 = vpop.f32.mrf.mxu1 }
 0x76f   :  { %v5212_v30 = vpop.f32.mrf.mxu0  ;;  %v5250_v0 = vpop.f32.mrf.mxu1 }
 0x770   :  { %v5213_v4 = vadd.f32 %v5212_v30, %v5211_v19  ;;  %v5251_v38 = vadd.f32 %v5250_v0, %v5249_v10  ;;  %v3723_v30 = vld [vmem:[%s9704_s6] sm:$0xff]  ;;  %v3724_v0 = vld [vmem:[%s9704_s6 + $0x8] sm:$0xff] }
 0x772   :  { %v3555_v34 = vadd.f32 %v5251_v38, %v5213_v4 }
 0x773   :  { %v5214_v15 = vpop.f32.mrf.mxu0  ;;  %v5252_v50 = vpop.f32.mrf.mxu1 }
 0x775   :  { %v5215_v59 = vpop.f32.mrf.mxu0  ;;  %v5253_v21 = vpop.f32.mrf.mxu1 }
 0x776   :  { %v5216_v12 = vadd.f32 %v5215_v59, %v5214_v15  ;;  %v5254_v42 = vadd.f32 %v5253_v21, %v5252_v50 }
 0x778   :  { %v3560_v23 = vadd.f32 %v5254_v42, %v5216_v12 }
 0x791   :  { %v5287_v39 = vpop.f32.mrf.mxu0  ;;  %v5457_v2 = vpop.f32.mrf.mxu1 }
 0x793   :  { %v5288_v24 = vpop.f32.mrf.mxu0  ;;  %v3704_v17 = vpop.f32.mrf.mxu1 }
 0x794   :  { %v5289_v25 = vadd.f32 %v5288_v24, %v5287_v39 }
 0x795   :  { %v5290_v43 = vpop.f32.mrf.mxu0 }
 0x796   :  { %v3630_v28 = vadd.f32 %v5289_v25, %v3555_v34 }
 0x797   :  { %v5291_v3 = vpop.f32.mrf.mxu0 }
 0x798   :  { %v3705_v41 = vadd.f32 %v3704_v17, %v3630_v28  ;;  %v5292_v61 = vadd.f32 %v5291_v3, %v5290_v43 }
 0x79a   :  { %v3715_v49 = vmul.f32 0.001953125, %v3705_v41  ;;  %v3635_v13 = vadd.f32 %v5292_v61, %v3560_v23 }
 0x79c   :  { %v3719_v57 = vsub.f32 %v3715_v49, %v3717_v9  ;;  %v3710_v51 = vadd.f32 %v5457_v2, %v3635_v13  ;;  %v10209_v2 = vld [vmem:[#allocation62_spill] sm:$0xff]  ;;  %v10210_v49 = vld [vmem:[#allocation7_spill] sm:$0xff] }
 0x79e   :  { %v3721_v53 = vmax.f32 %v3719_v57, 0.0  ;;  %v3716_v48 = vmul.f32 0.001953125, %v3710_v51  ;;  %v10211_v57 = vld [vmem:[#allocation8_spill] sm:$0xff] }
 0x7a0   :  { %v3725_v26 = vadd.f32 1e-05, %v3721_v53  ;;  %v3720_v56 = vsub.f32 %v3716_v48, %v3718_v62  ;;  %v10213_v53 = vld [vmem:[#allocation13_spill] sm:$0xff] }
 0x7a2   :  { %5500 = vrsqrt.f32 %v3725_v26  ;;  %v3722_v63 = vmax.f32 %v3720_v56, 0.0  ;;  %v10214_v26 = vld [vmem:[#allocation9_spill] sm:$0xff] }
 0x7a4   :  { %v3726_v5 = vadd.f32 1e-05, %v3722_v63 }
 0x7a6   :  { %5502 = vrsqrt.f32 %v3726_v5  ;;  %v10216_v5 = vld [vmem:[#allocation11_spill] sm:$0xff] }
 0x7af   :  { %v5501_v19 = vpop.eup %5500 }
 0x7b0   :  { %3731 = vrot.lane.b32.xlu1 %v5501_v19, %s5521_s21 }
 0x7b3   :  { %v5503_v10 = vpop.eup %5502 }
 0x7b4   :  { %3733 = vrot.lane.b32.xlu0 %v5503_v10, %s5521_s21  ;;  %s5537_s21 = smov 3  }
 0x822   :  { %v3732_v11 = vpop.permute.xlu1 %3731 }
 0x823   :  { %v3737_v22 = vmul.f32 %v3732_v11, %v3723_v30 }
 0x825   :  { %3741 = vrot.lane.b32.xlu1 %v3737_v22, %s5520_s20 }
 0x826   :  { %v3734_v40 = vpop.permute.xlu0 %3733 }
 0x827   :  { %v3738_v15 = vmul.f32 %v3734_v40, %v3724_v0 }
 0x829   :  { %3743 = vrot.lane.b32.xlu0 %v3738_v15, %s5520_s20  ;;  %3760 = vperm.xlu1 %5493, %v3737_v22  }
 0x82d   :  { %3764 = vperm.xlu0 %5494, %v3738_v15   ;;  %5496 = vset.pattern.permute.xlu1 %v5536_v44 }
 0x831   :  { %5495 = vset.pattern.permute.xlu0 %v5536_v44 }
 0x897   :  { %v3742_v52 = vpop.permute.xlu1 %3741 }
 0x898   :  { %v3747_v31 = vmul.f32 %v3742_v52, %v3713_v54 }
 0x89a   :  { %3751 = vrot.lane.b32.xlu1 %v3747_v31, %s5537_s21 }
 0x89b   :  { %v3744_v50 = vpop.permute.xlu0 %3743 }
 0x89c   :  { %v3748_v1 = vmul.f32 %v3744_v50, %v3714_v58 }
 0x89e   :  { %3753 = vrot.lane.b32.xlu0 %v3748_v1, %s5537_s21 }
 0x8a4   :  { %v3761_v29 = vpop.permute.xlu1 %3760 }
 0x8a5   :  { %v3767_v39 = vmul.f32 %v3761_v29, %v10152_v20  ;;  %v3768_v60 = vmul.f32 %v3761_v29, %v8333_v47  ;;  %v3769_v6 = vmul.f32 %v3761_v29, %v8526_v55  ;;  %v3770_v24 = vmul.f32 %v3761_v29, %v10209_v2 }
 0x8a6   :  { %v3771_v34 = vmul.f32 %v3761_v29, %v8651_v8  ;;  %v3772_v12 = vmul.f32 %v3761_v29, %v8654_v14  ;;  %v3773_v42 = vmul.f32 %v3761_v29, %v8649_v18 }
 0x8a8   :  { %v3765_v59 = vpop.permute.xlu0 %3764 }
 0x8a9   :  { %v3774_v25 = vmul.f32 %v3765_v59, %v10162_v7  ;;  %v3775_v43 = vmul.f32 %v3765_v59, %v10157_v36  ;;  %v3776_v54 = vmul.f32 %v3765_v59, %v10163_v16  ;;  %v3777_v20 = vmul.f32 %v3765_v59, %v10158_v27 }
 0x8aa   :  { %v3778_v47 = vmul.f32 %v3765_v59, %v8659_v33  ;;  %v3779_v8 = vmul.f32 %v3765_v59, %v8669_v45  ;;  %v3780_v16 = vmul.f32 %v3765_v59, %v8656_v37  ;;  %v10212_v45 = vld [vmem:[#allocation12_spill] sm:$0xff]  ;;  %v10215_v37 = vld [vmem:[#allocation10_spill] sm:$0xff] }
 0x90c   :  { %v3752_v32 = vpop.permute.xlu1 %3751 }
 0x90d   :  { %v3757_v4 = vsub.f32 %v3723_v30, %v3752_v32 }
 0x90f   :  { %3783 = vperm.xlu0 %5495, %v3757_v4  }
 0x910   :  { %v3754_v38 = vpop.permute.xlu0 %3753 }
 0x911   :  { %v3758_v21 = vsub.f32 %v3724_v0, %v3754_v38 }
 0x913   :  { %3788 = vperm.xlu1 %5496, %v3758_v21  }
 0x98a   :  { %v3784_v46 = vpop.permute.xlu0 %3783 }
 0x98b   :  { %v3791_v55 = vadd.f32 %v3784_v46, %v3767_v39  ;;  %v3792_v28 = vadd.f32 %v3784_v46, %v3768_v60  ;;  %v3793_v17 = vadd.f32 %v3784_v46, %v3769_v6  ;;  %v3794_v3 = vadd.f32 %v3784_v46, %v3770_v24  ;;  %v10217_v24 = vld [vmem:[#allocation5_spill] sm:$0xff] }
 0x98c   :  { %v3795_v14 = vadd.f32 %v3784_v46, %v3771_v34  ;;  %v3796_v23 = vadd.f32 %v3784_v46, %v3772_v12  ;;  %v3797_v18 = vadd.f32 %v3784_v46, %v3773_v42  ;;  %vm10218_vm2 = vcmp.lt.s32.totalorder %v10217_v24, 1 }
 0x98d   :  { %v3805_v41 = vmax.f32 %v3791_v55, 0.0  ;;  %v3806_v7 = vmax.f32 %v3792_v28, 0.0  ;;  %v3807_v61 = vmax.f32 %v3793_v17, 0.0  ;;  %v3808_v36 = vmax.f32 %v3794_v3, 0.0  ;;  %vm10219_vm3 = vmmov %vm10218_vm2 }
 0x98e   :  { %v3809_v9 = vmax.f32 %v3795_v14, 0.0  ;;  %v3810_v27 = vmax.f32 %v3796_v23, 0.0  ;;  %v3811_v58 = vmax.f32 %v3797_v18, 0.0  ;;  %v3789_v33 = vpop.permute.xlu1 %3788  ;;  %vm10220_vm4 = vcmp.lt.s32.totalorder %v10217_v24, 19  ;;  %vm10221_vm9 = vmmov %vm10218_vm2 }
 0x98f   :  { %v8846_v13 = vmul.f32 %v3805_v41, %v10210_v49  ;;  %v8849_v51 = vmul.f32 %v3806_v7, %v10211_v57  ;;  %v8852_v62 = vmul.f32 %v3807_v61, %v10212_v45  ;;  %v8855_v48 = vmul.f32 %v3808_v36, %v10213_v53  ;;  %vm10222_vm14 = vmmov %vm10218_vm2 }
 0x990   :  { %v8858_v56 = vmul.f32 %v3809_v9, %v10214_v26  ;;  %v8861_v63 = vmul.f32 %v3810_v27, %v10215_v37  ;;  %v8864_v35 = vmul.f32 %v3811_v58, %v10216_v5  ;;  %v3798_v19 = vadd.f32 %v3789_v33, %v3774_v25  ;;  %vm10224_vm15 = vmmov %vm10220_vm4 }
 0x991   :  { %v3799_v10 = vadd.f32 %v3789_v33, %v3775_v43  ;;  %v3800_v30 = vadd.f32 %v3789_v33, %v3776_v54  ;;  %v3801_v11 = vadd.f32 %v3789_v33, %v3777_v20  ;;  %v3802_v22 = vadd.f32 %v3789_v33, %v3778_v47  ;;  %4191 = vrot.lane.b32.xlu0 %v8852_v62, %s5514_s11  ;;  %vm10230_vm12 = vmmov %vm10220_vm4 }
 0x992   :  { %4061 = vst [vmem:[#allocation2 + $0x1e0] sm:$0xff] %v8858_v56  ;;  %4062 = vst [vmem:[#allocation2 + $0x1e8] sm:$0xff] %v8861_v63  ;;  %v3803_v0 = vadd.f32 %v3789_v33, %v3779_v8  ;;  %v3804_v40 = vadd.f32 %v3789_v33, %v3780_v16  ;;  %v3812_v15 = vmax.f32 %v3798_v19, 0.0  ;;  %4187 = vrot.lane.b32.xlu1 %v8849_v51, %s5514_s11  ;;  %vm10225_vm10 = vcmp.lt.s32.totalorder %v10217_v24, 20 }
 0x993   :  { %4063 = vst [vmem:[#allocation2 + $0x1f0] sm:$0xff] %v8864_v35  ;;  %v3813_v44 = vmax.f32 %v3799_v10, 0.0  ;;  %v3814_v52 = vmax.f32 %v3800_v30, 0.0  ;;  %v3815_v31 = vmax.f32 %v3801_v11, 0.0  ;;  %v3816_v50 = vmax.f32 %v3802_v22, 0.0  ;;  %vm10231_vm13 = vmmov %vm10220_vm4 }
 0x994   :  { %v3817_v1 = vmax.f32 %v3803_v0, 0.0  ;;  %v3818_v29 = vmax.f32 %v3804_v40, 0.0  ;;  %v8874_v59 = vmul.f32 %v3812_v15, %v10210_v49 }
 0x995   :  { %v8877_v32 = vmul.f32 %v3813_v44, %v10211_v57  ;;  %v8880_v4 = vmul.f32 %v3814_v52, %v10212_v45  ;;  %v8883_v38 = vmul.f32 %v3815_v31, %v10213_v53  ;;  %v8886_v21 = vmul.f32 %v3816_v50, %v10214_v26  ;;  %4135 = vrot.lane.b32.xlu0 %v8852_v62, %s5513_s10 }
 0x996   :  { %v8891_v39 = vmul.f32 %v3817_v1, %v10215_v37  ;;  %v8894_v60 = vmul.f32 %v3818_v29, %v10216_v5  ;;  %4183 = vrot.lane.b32.xlu1 %v8846_v13, %s5514_s11 }
 0x997   :  { %4068 = vst [vmem:[#allocation2 + $0x218] sm:$0xff] %v8886_v21 }
 0x998   :  { %4069 = vst [vmem:[#allocation2 + $0x220] sm:$0xff] %v8891_v39  ;;  %4070 = vst [vmem:[#allocation2 + $0x228] sm:$0xff] %v8894_v60 }
 0x999   :  { %4199 = vrot.lane.b32.xlu0 %v8858_v56, %s5514_s11 }
 0x99a   :  { %4131 = vrot.lane.b32.xlu1 %v8849_v51, %s5513_s10 }
 0x99d   :  { %4079 = vrot.lane.b32.xlu0 %v8852_v62, %s5512_s9 }
 0x99e   :  { %4195 = vrot.lane.b32.xlu1 %v8855_v48, %s5514_s11 }
 0x9a1   :  { %4143 = vrot.lane.b32.xlu0 %v8858_v56, %s5513_s10 }
 0x9a2   :  { %4127 = vrot.lane.b32.xlu1 %v8846_v13, %s5513_s10 }
 0x9a5   :  { %4083 = vrot.lane.b32.xlu0 %v8855_v48, %s5512_s9 }
 0x9a6   :  { %4075 = vrot.lane.b32.xlu1 %v8849_v51, %s5512_s9 }
 0x9a9   :  { %4005 = vrot.lane.b32.xlu0 %v8849_v51, %s5511_s8 }
 0x9aa   :  { %4139 = vrot.lane.b32.xlu1 %v8855_v48, %s5513_s10 }
 0x9ad   :  { %3949 = vrot.lane.b32.xlu0 %v8849_v51, %s5510_s30 }
 0x9ae   :  { %4071 = vrot.lane.b32.xlu1 %v8846_v13, %s5512_s9 }
 0x9b1   :  { %4013 = vrot.lane.b32.xlu0 %v8855_v48, %s5511_s8 }
 0x9b2   :  { %4087 = vrot.lane.b32.xlu1 %v8858_v56, %s5512_s9 }
 0x9b5   :  { %3893 = vrot.lane.b32.xlu0 %v8849_v51, %s5509_s29 }
 0x9b6   :  { %4001 = vrot.lane.b32.xlu1 %v8846_v13, %s5511_s8 }
 0x9b9   :  { %3957 = vrot.lane.b32.xlu0 %v8855_v48, %s5510_s30 }
 0x9ba   :  { %4025 = vrot.lane.b32.xlu1 %v8864_v35, %s5511_s8 }
 0x9bd   :  { %3837 = vrot.lane.b32.xlu0 %v8849_v51, %s5508_s28 }
 0x9be   :  { %3945 = vrot.lane.b32.xlu1 %v8846_v13, %s5510_s30 }
 0x9c1   :  { %3901 = vrot.lane.b32.xlu0 %v8855_v48, %s5509_s29 }
 0x9c2   :  { %4009 = vrot.lane.b32.xlu1 %v8852_v62, %s5511_s8 }
 0x9c5   :  { %3845 = vrot.lane.b32.xlu0 %v8855_v48, %s5508_s28 }
 0x9c6   :  { %3969 = vrot.lane.b32.xlu1 %v8864_v35, %s5510_s30 }
 0x9c9   :  { %4247 = vrot.lane.b32.xlu0 %v8852_v62, %s5506_s0 }
 0x9ca   :  { %3889 = vrot.lane.b32.xlu1 %v8846_v13, %s5509_s29 }
 0x9cd   :  { %4203 = vrot.lane.b32.xlu0 %v8861_v63, %s5514_s11 }
 0x9ce   :  { %3953 = vrot.lane.b32.xlu1 %v8852_v62, %s5510_s30 }
 0x9d1   :  { %4251 = vrot.lane.b32.xlu0 %v8855_v48, %s5506_s0 }
 0x9d2   :  { %3913 = vrot.lane.b32.xlu1 %v8864_v35, %s5509_s29 }
 0x9d5   :  { %4147 = vrot.lane.b32.xlu0 %v8861_v63, %s5513_s10 }
 0x9d6   :  { %3833 = vrot.lane.b32.xlu1 %v8846_v13, %s5508_s28 }
 0x9d9   :  { %4091 = vrot.lane.b32.xlu0 %v8861_v63, %s5512_s9 }
 0x9da   :  { %3897 = vrot.lane.b32.xlu1 %v8852_v62, %s5509_s29 }
 0x9dd   :  { %4017 = vrot.lane.b32.xlu0 %v8858_v56, %s5511_s8 }
 0x9de   :  { %3857 = vrot.lane.b32.xlu1 %v8864_v35, %s5508_s28 }
 0x9e1   :  { %3961 = vrot.lane.b32.xlu0 %v8858_v56, %s5510_s30 }
 0x9e2   :  { %3841 = vrot.lane.b32.xlu1 %v8852_v62, %s5508_s28 }
 0x9e5   :  { %3905 = vrot.lane.b32.xlu0 %v8858_v56, %s5509_s29 }
 0x9e6   :  { %4243 = vrot.lane.b32.xlu1 %v8849_v51, %s5506_s0 }
 0x9e9   :  { %4185 = vrot.lane.b32.xlu0 %v8874_v59, %s5514_s11 }
 0x9ea   :  { %4239 = vrot.lane.b32.xlu1 %v8846_v13, %s5506_s0 }
 0x9ed   :  { %4133 = vrot.lane.b32.xlu0 %v8877_v32, %s5513_s10 }
 0x9ee   :  { %4207 = vrot.lane.b32.xlu1 %v8864_v35, %s5514_s11 }
 0x9f1   :  { %4197 = vrot.lane.b32.xlu0 %v8883_v38, %s5514_s11 }
 0x9f2   :  { %4255 = vrot.lane.b32.xlu1 %v8858_v56, %s5506_s0 }
 0x9f5   :  { %4129 = vrot.lane.b32.xlu0 %v8874_v59, %s5513_s10 }
 0x9f6   :  { %4151 = vrot.lane.b32.xlu1 %v8864_v35, %s5513_s10 }
 0x9f9   :  { %4077 = vrot.lane.b32.xlu0 %v8877_v32, %s5512_s9 }
 0x9fa   :  { %4095 = vrot.lane.b32.xlu1 %v8864_v35, %s5512_s9 }
 0x9fd   :  { %4141 = vrot.lane.b32.xlu0 %v8883_v38, %s5513_s10 }
 0x9fe   :  { %4021 = vrot.lane.b32.xlu1 %v8861_v63, %s5511_s8 }
 0xa01   :  { %4073 = vrot.lane.b32.xlu0 %v8874_v59, %s5512_s9 }
 0xa02   :  { %3965 = vrot.lane.b32.xlu1 %v8861_v63, %s5510_s30 }
 0xa03   :  { %v4192_v6 = vpop.permute.xlu0 %4191 }
 0xa04   :  { %v4188_v2 = vpop.permute.xlu1 %4187 }
 0xa05   :  { %v9011_v34 = vsel %vm575_vm8, %v4188_v2, %v4192_v6  ;;  %4085 = vrot.lane.b32.xlu0 %v8883_v38, %s5512_s9 }
 0xa06   :  { %3909 = vrot.lane.b32.xlu1 %v8861_v63, %s5509_s29 }
 0xa07   :  { %v4136_v12 = vpop.permute.xlu0 %4135 }
 0xa08   :  { %v9017_v42 = vpop.permute.xlu1 %4183 }
 0xa09   :  { %v9022_v25 = vsel %vm575_vm8, %v9017_v42, %v4188_v2  ;;  %4003 = vrot.lane.b32.xlu0 %v8874_v59, %s5511_s8  ;;  %v9180_v2 = vld [vmem:[%s9706_s5 + $0x8] sm:$0xff] }
 0xa0a   :  { %4189 = vrot.lane.b32.xlu1 %v8877_v32, %s5514_s11  ;;  %10226 = vst [vmem:[#allocation16_spill] sm:$0xff] %v9180_v2  ;;  %4796 = vmatprep.mubr.msk.f32.mxu0 %vm10228_vm5, %v9180_v2 }
 0xa0b   :  { %v9028_v43 = vpop.permute.xlu0 %4199  ;;  %4797 = vmatprep.mubr.msk.f32.mxu1 %vm10229_vm11, %v9180_v2 }
 0xa0c   :  { %v4132_v54 = vpop.permute.xlu1 %4131 }
 0xa0d   :  { %v9032_v20 = vsel %vm494_vm7, %v4132_v54, %v4136_v12  ;;  %4027 = vrot.lane.b32.xlu0 %v8894_v60, %s5511_s8 }
 0xa0e   :  { %4193 = vrot.lane.b32.xlu1 %v8880_v4, %s5514_s11 }
 0xa0f   :  { %v4080_v47 = vpop.permute.xlu0 %4079 }
 0xa10   :  { %v4196_v46 = vpop.permute.xlu1 %4195 }
 0xa11   :  { %v9041_v55 = vsel %vm575_vm8, %v4196_v46, %v9028_v43  ;;  %v9045_v28 = vsel %vm575_vm8, %v4192_v6, %v4196_v46  ;;  %3947 = vrot.lane.b32.xlu0 %v8874_v59, %s5510_s30 }
 0xa12   :  { %4137 = vrot.lane.b32.xlu1 %v8880_v4, %s5513_s10 }
 0xa13   :  { %v9051_v17 = vpop.permute.xlu0 %4143 }
 0xa14   :  { %v9053_v3 = vpop.permute.xlu1 %4127 }
 0xa15   :  { %v9058_v8 = vsel %vm494_vm7, %v9053_v3, %v4132_v54  ;;  %4011 = vrot.lane.b32.xlu0 %v8880_v4, %s5511_s8 }
 0xa16   :  { %4201 = vrot.lane.b32.xlu1 %v8886_v21, %s5514_s11 }
 0xa17   :  { %v4084_v14 = vpop.permute.xlu0 %4083 }
 0xa18   :  { %v9066_v23 = vsel %vm413_vm6, %v4080_v47, %v4084_v14  ;;  %v4076_v18 = vpop.permute.xlu1 %4075 }
 0xa19   :  { %v9070_v41 = vsel %vm413_vm6, %v4076_v18, %v4080_v47  ;;  %3971 = vrot.lane.b32.xlu0 %v8894_v60, %s5510_s30 }
 0xa1a   :  { %4081 = vrot.lane.b32.xlu1 %v8880_v4, %s5512_s9 }
 0xa1b   :  { %v4006_v7 = vpop.permute.xlu0 %4005 }
 0xa1c   :  { %v4140_v61 = vpop.permute.xlu1 %4139 }
 0xa1d   :  { %v9079_v36 = vsel %vm494_vm7, %v4140_v61, %v9051_v17  ;;  %v9083_v16 = vsel %vm494_vm7, %v4136_v12, %v4140_v61  ;;  %3891 = vrot.lane.b32.xlu0 %v8874_v59, %s5509_s29 }
 0xa1e   :  { %4145 = vrot.lane.b32.xlu1 %v8886_v21, %s5513_s10 }
 0xa1f   :  { %v3950_v9 = vpop.permute.xlu0 %3949 }
 0xa20   :  { %v9089_v27 = vpop.permute.xlu1 %4071 }
 0xa21   :  { %v9094_v58 = vsel %vm413_vm6, %v9089_v27, %v4076_v18  ;;  %3955 = vrot.lane.b32.xlu0 %v8880_v4, %s5510_s30 }
 0xa22   :  { %4089 = vrot.lane.b32.xlu1 %v8886_v21, %s5512_s9 }
 0xa23   :  { %v9100_v33 = vpop.permute.xlu0 %4013 }
 0xa24   :  { %v4088_v49 = vpop.permute.xlu1 %4087 }
 0xa25   :  { %v9104_v57 = vsel %vm413_vm6, %v4084_v14, %v4088_v49  ;;  %3915 = vrot.lane.b32.xlu0 %v8894_v60, %s5509_s29 }
 0xa26   :  { %4007 = vrot.lane.b32.xlu1 %v8877_v32, %s5511_s8 }
 0xa27   :  { %v3894_v45 = vpop.permute.xlu0 %3893 }
 0xa28   :  { %v4002_v53 = vpop.permute.xlu1 %4001 }
 0xa29   :  { %v9112_v26 = vsel %vm10218_vm2, %v4002_v53, %v4006_v7  ;;  %3835 = vrot.lane.b32.xlu0 %v8874_v59, %s5508_s28  ;;  %vm10233_vm2 = vmmov %vm10225_vm10 }
 0xa2a   :  { %3951 = vrot.lane.b32.xlu1 %v8877_v32, %s5510_s30 }
 0xa2b   :  { %v9118_v37 = vpop.permute.xlu0 %3957 }
 0xa2c   :  { %v9120_v5 = vpop.permute.xlu1 %4025 }
 0xa2d   :  { %v9125_v19 = vsel %vm10219_vm3, %v9120_v5, %v4002_v53  ;;  %3899 = vrot.lane.b32.xlu0 %v8880_v4, %s5509_s29  ;;  %vm10235_vm3 = vcmp.lt.s32.totalorder %v10217_v24, 21 }
 0xa2e   :  { %4015 = vrot.lane.b32.xlu1 %v8883_v38, %s5511_s8  ;;  %vm10244_vm5 = vmmov %vm10235_vm3 }
 0xa2f   :  { %v9131_v10 = vpop.permute.xlu0 %3837  ;;  %vm10245_vm11 = vmmov %vm10235_vm3 }
 0xa30   :  { %v3946_v30 = vpop.permute.xlu1 %3945 }
 0xa31   :  { %v9135_v11 = vsel %vm10220_vm4, %v3946_v30, %v3950_v9  ;;  %3859 = vrot.lane.b32.xlu0 %v8894_v60, %s5508_s28  ;;  %vm10237_vm4 = vmmov %vm10233_vm2 }
 0xa32   :  { %3895 = vrot.lane.b32.xlu1 %v8877_v32, %s5509_s29 }
 0xa33   :  { %v9141_v22 = vpop.permute.xlu0 %3901 }
 0xa34   :  { %v4010_v0 = vpop.permute.xlu1 %4009 }
 0xa35   :  { %v9146_v40 = vsel %vm10221_vm9, %v4010_v0, %v9100_v33  ;;  %v9150_v15 = vsel %vm10222_vm14, %v4006_v7, %v4010_v0  ;;  %3843 = vrot.lane.b32.xlu0 %v8880_v4, %s5508_s28  ;;  %vm10238_vm9 = vmmov %vm10233_vm2 }
 0xa36   :  { %3959 = vrot.lane.b32.xlu1 %v8883_v38, %s5510_s30 }
 0xa37   :  { %v9156_v44 = vpop.permute.xlu0 %3845 }
 0xa38   :  { %10223 = vst [vmem:[#allocation22_spill] sm:$0xff] %v9156_v44  ;;  %v9158_v52 = vpop.permute.xlu1 %3969 }
 0xa39   :  { %v9163_v31 = vsel %vm10224_vm15, %v9158_v52, %v3946_v30  ;;  %4245 = vrot.lane.b32.xlu0 %v8877_v32, %s5506_s0  ;;  %vm10241_vm15 = vmmov %vm10235_vm3 }
 0xa3a   :  { %3839 = vrot.lane.b32.xlu1 %v8877_v32, %s5508_s28 }
 0xa3b   :  { %v4248_v50 = vpop.permute.xlu0 %4247 }
 0xa3c   :  { %v3890_v1 = vpop.permute.xlu1 %3889 }
 0xa3d   :  { %v9171_v29 = vsel %vm10225_vm10, %v3890_v1, %v3894_v45  ;;  %4241 = vrot.lane.b32.xlu0 %v8874_v59, %s5506_s0  ;;  %vm10242_vm10 = vmmov %vm10230_vm12 }
 0xa3e   :  { %3903 = vrot.lane.b32.xlu1 %v8883_v38, %s5509_s29 }
 0xa3f   :  { %v4204_v6 = vpop.permute.xlu0 %4203 }
 0xa40   :  { %v9185_v12 = vsel %vm575_vm8, %v9028_v43, %v4204_v6  ;;  %v3954_v54 = vpop.permute.xlu1 %3953 }
 0xa41   :  { %10227 = vst [vmem:[#allocation17_spill] sm:$0xff] %v9185_v12  ;;  %v9194_v47 = vsel %vm10230_vm12, %v3954_v54, %v9118_v37  ;;  %v9198_v46 = vsel %vm10231_vm13, %v3950_v9, %v3954_v54  ;;  %4205 = vrot.lane.b32.xlu0 %v8891_v39, %s5514_s11  ;;  %vm10246_vm12 = vmmov %vm10233_vm2 }
 0xa42   :  { %3847 = vrot.lane.b32.xlu1 %v8883_v38, %s5508_s28  ;;  %vm10255_vm13 = vmmov %vm10222_vm14 }
 0xa43   :  { %v4252_v43 = vpop.permute.xlu0 %4251 }
 0xa44   :  { %v9206_v14 = vsel %vm656_vm1, %v4248_v50, %v4252_v43  ;;  %v9208_v18 = vpop.permute.xlu1 %3913 }
 0xa45   :  { %10232 = vst [vmem:[#allocation18_spill] sm:$0xff] %v9206_v14  ;;  %v9213_v7 = vsel %vm10233_vm2, %v9208_v18, %v3890_v1  ;;  %4253 = vrot.lane.b32.xlu0 %v8883_v38, %s5506_s0  ;;  %vm10257_vm2 = vmmov %vm10255_vm13 }
 0xa46   :  { %4249 = vrot.lane.b32.xlu1 %v8880_v4, %s5506_s0 }
 0xa47   :  { %v4148_v61 = vpop.permute.xlu0 %4147 }
 0xa48   :  { %v9222_v9 = vsel %vm494_vm7, %v9051_v17, %v4148_v61  ;;  %v3834_v53 = vpop.permute.xlu1 %3833 }
 0xa49   :  { %10234 = vst [vmem:[#allocation19_spill] sm:$0xff] %v9222_v9  ;;  %4173 = vst [vmem:[#allocation2 + $0x2c0] sm:$0xff] %v9222_v9  ;;  %v9228_v30 = vsel %vm10235_vm3, %v3834_v53, %v9131_v10  ;;  %4149 = vrot.lane.b32.xlu0 %v8891_v39, %s5513_s10 }
 0xa4a   :  { %3876 = vst [vmem:[#allocation2 + $0x8] sm:$0xff] %v9228_v30  ;;  %4209 = vrot.lane.b32.xlu1 %v8894_v60, %s5514_s11  ;;  %vm10259_vm3 = vmmov %vm10242_vm10 }
 0xa4b   :  { %v4092_v0 = vpop.permute.xlu0 %4091 }
 0xa4c   :  { %v9237_v17 = vsel %vm413_vm6, %v4088_v49, %v4092_v0  ;;  %v3898_v1 = vpop.permute.xlu1 %3897 }
 0xa4d   :  { %10236 = vst [vmem:[#allocation28_spill] sm:$0xff] %v9237_v17  ;;  %v9242_v54 = vsel %vm10237_vm4, %v3898_v1, %v9141_v22  ;;  %v9246_v9 = vsel %vm10238_vm9, %v3894_v45, %v3898_v1  ;;  %4093 = vrot.lane.b32.xlu0 %v8891_v39, %s5512_s9  ;;  %vm10261_vm4 = vmmov %vm10259_vm3 }
 0xa4e   :  { %4257 = vrot.lane.b32.xlu1 %v8886_v21, %s5506_s0 }
 0xa4f   :  { %v4018_v14 = vpop.permute.xlu0 %4017 }
 0xa50   :  { %v9255_v49 = vsel %vm10222_vm14, %v9100_v33, %v4018_v14  ;;  %v9257_v17 = vpop.permute.xlu1 %3857  ;;  %vm10264_vm14 = vmmov %vm10238_vm9 }
 0xa51   :  { %10239 = vst [vmem:[#allocation20_spill] sm:$0xff] %v9255_v49  ;;  %10240 = vst [vmem:[#allocation23_spill] sm:$0xff] %v9257_v17  ;;  %v9262_v12 = vsel %vm10241_vm15, %v9257_v17, %v3834_v53  ;;  %3849 = vrot.lane.b32.xlu0 %v8858_v56, %s5508_s28 }
 0xa52   :  { %3875 = vst [vmem:[#allocation2] sm:$0xff] %v9262_v12  ;;  %4153 = vrot.lane.b32.xlu1 %v8894_v60, %s5513_s10  ;;  %vm10267_vm15 = vmmov %vm10257_vm2 }
 0xa53   :  { %v3962_v45 = vpop.permute.xlu0 %3961 }
 0xa54   :  { %v9272_v33 = vsel %vm10242_vm10, %v9118_v37, %v3962_v45  ;;  %v3842_v1 = vpop.permute.xlu1 %3841  ;;  %vm10268_vm10 = vmmov %vm10259_vm3 }
 0xa55   :  { %10243 = vst [vmem:[#allocation24_spill] sm:$0xff] %v9272_v33  ;;  %v9277_v53 = vsel %vm10244_vm5, %v3842_v1, %v9156_v44  ;;  %v9282_v56 = vsel %vm10245_vm11, %v9131_v10, %v3842_v1  ;;  %4019 = vrot.lane.b32.xlu0 %v8886_v21, %s5511_s8  ;;  %vm10269_vm5 = vmmov %vm10238_vm9 }
 0xa56   :  { %3877 = vst [vmem:[#allocation2 + $0x10] sm:$0xff] %v9282_v56  ;;  %3878 = vst [vmem:[#allocation2 + $0x18] sm:$0xff] %v9277_v53  ;;  %4097 = vrot.lane.b32.xlu1 %v8894_v60, %s5512_s9 }
 0xa57   :  { %v3906_v37 = vpop.permute.xlu0 %3905  ;;  %vm10270_vm11 = vmmov %vm10257_vm2 }
 0xa58   :  { %v9293_v33 = vsel %vm10246_vm12, %v9141_v22, %v3906_v37  ;;  %v4244_v49 = vpop.permute.xlu1 %4243  ;;  %vm10271_vm12 = vmmov %vm10257_vm2 }
 0xa59   :  { %10247 = vst [vmem:[#allocation25_spill] sm:$0xff] %v9293_v33  ;;  %v9297_v10 = vsel %vm656_vm1, %v4244_v49, %v4248_v50  ;;  %3963 = vrot.lane.b32.xlu0 %v8886_v21, %s5510_s30 }
 0xa5a   :  { %3853 = vrot.lane.b32.xlu1 %v8861_v63, %s5508_s28 }
 0xa5b   :  { %v9303_v1 = vpop.permute.xlu0 %4185 }
 0xa5c   :  { %v9305_v17 = vpop.permute.xlu1 %4239 }
 0xa5d   :  { %10248 = vst [vmem:[#allocation35_spill] sm:$0xff] %v9305_v17  ;;  %v9310_v22 = vsel %vm656_vm1, %v9305_v17, %v4244_v49  ;;  %3907 = vrot.lane.b32.xlu0 %v8886_v21, %s5509_s29 }
 0xa5e   :  { %10249 = vst [vmem:[#allocation14_spill] sm:$0xff] %v9310_v22  ;;  %4023 = vrot.lane.b32.xlu1 %v8891_v39, %s5511_s8 }
 0xa5f   :  { %v4134_v50 = vpop.permute.xlu0 %4133 }
 0xa60   :  { %v4208_v33 = vpop.permute.xlu1 %4207 }
 0xa61   :  { %v9318_v44 = vsel %vm575_vm8, %v4204_v6, %v4208_v33  ;;  %v9323_v2 = vsel %vm575_vm8, %v4208_v33, %v9017_v42  ;;  %3851 = vrot.lane.b32.xlu0 %v8886_v21, %s5508_s28 }
 0xa62   :  { %10250 = vst [vmem:[#allocation26_spill] sm:$0xff] %v9323_v2  ;;  %3967 = vrot.lane.b32.xlu1 %v8891_v39, %s5510_s30 }
 0xa63   :  { %v4198_v49 = vpop.permute.xlu0 %4197 }
 0xa64   :  { %v9329_v17 = vpop.permute.xlu1 %4255 }
 0xa65   :  { %10251 = vst [vmem:[#allocation27_spill] sm:$0xff] %v9329_v17  ;;  %v9334_v22 = vsel %vm656_vm1, %v4252_v43, %v9329_v17  ;;  %4261 = vrot.lane.b32.xlu0 %v8891_v39, %s5506_s0 }
 0xa66   :  { %3911 = vrot.lane.b32.xlu1 %v8891_v39, %s5509_s29 }
 0xa67   :  { %v9340_v42 = vpop.permute.xlu0 %4129 }
 0xa68   :  { %10252 = vst [vmem:[#allocation29_spill] sm:$0xff] %v9340_v42  ;;  %v4166_v21 = vsel %vm494_vm7, %v9340_v42, %v4134_v50  ;;  %v4152_v6 = vpop.permute.xlu1 %4151  ;;  %v5538_v42 = vmov 4  }
 0xa69   :  { %v9347_v33 = vsel %vm494_vm7, %v4148_v61, %v4152_v6  ;;  %v9352_v43 = vsel %vm494_vm7, %v4152_v6, %v9053_v3  ;;  %4259 = vrot.lane.b32.xlu0 %v8861_v63, %s5506_s0  ;;  %v4709_v61 = vld [vmem:[%s9704_s6] sm:$0x1] }
 0xa6a   :  { %10253 = vst [vmem:[#allocation32_spill] sm:$0xff] %v9352_v43  ;;  %4174 = vst [vmem:[#allocation2 + $0x2c8] sm:$0xff] %v9347_v33  ;;  %3855 = vrot.lane.b32.xlu1 %v8891_v39, %s5508_s28  ;;  %5497 = vset.pattern.permute.xlu0 %v5538_v42 }
 0xa6b   :  { %4175 = vst [vmem:[#allocation2 + $0x2d0] sm:$0xff] %v9352_v43  ;;  %v4078_v17 = vpop.permute.xlu0 %4077 }
 0xa6c   :  { %v4096_v2 = vpop.permute.xlu1 %4095 }
 0xa6d   :  { %v9365_v3 = vsel %vm413_vm6, %v4092_v0, %v4096_v2  ;;  %v9370_v63 = vsel %vm413_vm6, %v4096_v2, %v9089_v27  ;;  %4712 = vperm.xlu0 %5497, %v4709_v61  }
 0xa6e   :  { %10254 = vst [vmem:[#allocation64_spill] sm:$0xff] %v9370_v63  ;;  %4265 = vrot.lane.b32.xlu1 %v8894_v60, %s5506_s0 }
 0xa6f   :  { %v4142_v39 = vpop.permute.xlu0 %4141 }
 0xa70   :  { %v4022_v6 = vpop.permute.xlu1 %4021 }
 0xa71   :  { %v9377_v43 = vsel %vm10255_vm13, %v4022_v6, %v9120_v5  ;;  %v9381_v0 = vsel %vm10257_vm2, %v4018_v14, %v4022_v6  ;;  %vm10272_vm13 = vmmov %vm10259_vm3 }
 0xa72   :  { %10256 = vst [vmem:[#allocation30_spill] sm:$0xff] %v9377_v43  ;;  %10258 = vst [vmem:[#allocation63_spill] sm:$0xff] %v9381_v0  ;;  %4263 = vrot.lane.b32.xlu1 %v8864_v35, %s5506_s0 }
 0xa73   :  { %v9385_v27 = vpop.permute.xlu0 %4073  ;;  %vm10273_vm2 = vmmov %vm10259_vm3 }
 0xa74   :  { %v4110_v60 = vsel %vm413_vm6, %v9385_v27, %v4078_v17  ;;  %v3966_v2 = vpop.permute.xlu1 %3965 }
 0xa75   :  { %v9393_v42 = vsel %vm10259_vm3, %v3966_v2, %v9158_v52  ;;  %v9397_v5 = vsel %vm10261_vm4, %v3962_v45, %v3966_v2  ;;  %vm10274_vm3 = vmmov %vm10270_vm11  ;;  %vm10275_vm4 = vcmp.lt.s32.totalorder %v10217_v24, 21 }
 0xa76   :  { %10260 = vst [vmem:[#allocation31_spill] sm:$0xff] %v9393_v42  ;;  %10262 = vst [vmem:[#allocation33_spill] sm:$0xff] %v9397_v5 }
 0xa77   :  { %v4086_v14 = vpop.permute.xlu0 %4085 }
 0xa78   :  { %v3910_v61 = vpop.permute.xlu1 %3909 }
 0xa79   :  { %v9402_v35 = vsel %vm10238_vm9, %v3910_v61, %v9208_v18  ;;  %v9406_v6 = vsel %vm10264_vm14, %v3906_v37, %v3910_v61  ;;  %vm10276_vm9 = vmmov %vm10269_vm5 }
 0xa7a   :  { %10263 = vst [vmem:[#allocation3_spill] sm:$0xff] %v9402_v35  ;;  %10265 = vst [vmem:[#allocation34_spill] sm:$0xff] %v9406_v6 }
 0xa7b   :  { %v4004_v43 = vpop.permute.xlu0 %4003  ;;  %vm10277_vm14 = vmmov %vm10269_vm5 }
 0xa7c   :  { %v4190_v0 = vpop.permute.xlu1 %4189 }
 0xa7d   :  { %v4222_v52 = vsel %vm575_vm8, %v9303_v1, %v4190_v0 }
 0xa7f   :  { %v9411_v42 = vpop.permute.xlu0 %4027 }
 0xa80   :  { %10266 = vst [vmem:[#allocation36_spill] sm:$0xff] %v9411_v42  ;;  %v4042_v45 = vsel %vm10267_vm15, %v9411_v42, %v4004_v43  ;;  %v4194_v2 = vpop.permute.xlu1 %4193  ;;  %vm10278_vm15 = vmmov %vm10273_vm2 }
 0xa81   :  { %v4218_v18 = vsel %vm575_vm8, %v4194_v2, %v4198_v49  ;;  %v4220_v37 = vsel %vm575_vm8, %v4190_v0, %v4194_v2 }
 0xa82   :  { %4426 = vmatprep.subr.mxu0 %v4220_v37  ;;  %v10283_v37 = vld [vmem:[#allocation14_spill] sm:$0xff] }
 0xa83   :  { %v3948_v61 = vpop.permute.xlu0 %3947  ;;  %4427 = vmatpush1.msra.mxu0 %v4222_v52 }
 0xa84   :  { %v4138_v35 = vpop.permute.xlu1 %4137  ;;  %4428 = vmatprep.subr.mxu0 %v9011_v34 }
 0xa85   :  { %v4162_v6 = vsel %vm494_vm7, %v4138_v35, %v4142_v39  ;;  %v4164_v5 = vsel %vm494_vm7, %v4134_v50, %v4138_v35  ;;  %4429 = vmatpush1.msra.mxu0 %v9022_v25 }
 0xa86   :  { %4430 = vmatprep.subr.mxu0 %v4164_v5 }
 0xa87   :  { %v4012_v63 = vpop.permute.xlu0 %4011  ;;  %4431 = vmatpush1.msra.mxu0 %v4166_v21 }
 0xa88   :  { %v9426_v42 = vpop.permute.xlu1 %4201  ;;  %4432 = vmatprep.subr.mxu0 %v9032_v20 }
 0xa89   :  { %v4216_v0 = vsel %vm575_vm8, %v4198_v49, %v9426_v42  ;;  %4433 = vmatpush1.msra.mxu0 %v9058_v8 }
 0xa8a   :  { %4497 = vmatprep.subr.mxu1 %v4216_v0  ;;  %v10284_v0 = vld [vmem:[#allocation16_spill] sm:$0xff] }
 0xa8b   :  { %v9433_v34 = vpop.permute.xlu0 %3971  ;;  %4498 = vmatpush1.msra.mxu1 %v4218_v18 }
 0xa8c   :  { %v3986_v25 = vsel %vm10268_vm10, %v9433_v34, %v3948_v61  ;;  %v4082_v50 = vpop.permute.xlu1 %4081  ;;  %4499 = vmatprep.subr.mxu1 %v9041_v55  ;;  %vm10279_vm10 = vmmov %vm10275_vm4 }
 0xa8d   :  { %v4106_v20 = vsel %vm413_vm6, %v4082_v50, %v4086_v14  ;;  %v4108_v21 = vsel %vm413_vm6, %v4078_v17, %v4082_v50  ;;  %4500 = vmatpush1.msra.mxu1 %v9045_v28  ;;  %v10286_v50 = vld [vmem:[#allocation17_spill] sm:$0xff] }
 0xa8e   :  { %4434 = vmatprep.subr.mxu0 %v4108_v21  ;;  %v10287_v21 = vld [vmem:[#allocation22_spill] sm:$0xff] }
 0xa8f   :  { %v3892_v8 = vpop.permute.xlu0 %3891  ;;  %4435 = vmatpush1.msra.mxu0 %v4110_v60 }
 0xa90   :  { %v9444_v49 = vpop.permute.xlu1 %4145  ;;  %4436 = vmatprep.subr.mxu0 %v9070_v41 }
 0xa91   :  { %v4160_v5 = vsel %vm494_vm7, %v4142_v39, %v9444_v49  ;;  %4437 = vmatpush1.msra.mxu0 %v9094_v58 }
 0xa92   :  { %4438 = vmatprep.subr.mxu0 %v8877_v32  ;;  %4501 = vmatprep.subr.mxu1 %v4160_v5  ;;  %v10289_v5 = vld [vmem:[#allocation29_spill] sm:$0xff] }
 0xa93   :  { %v3956_v55 = vpop.permute.xlu0 %3955  ;;  %4439 = vmatpush1.msra.mxu0 %v8874_v59  ;;  %4502 = vmatpush1.msra.mxu1 %v4162_v6 }
 0xa94   :  { %v9453_v28 = vpop.permute.xlu1 %4089  ;;  %4440 = vmatprep.subr.mxu0 %v8849_v51  ;;  %4503 = vmatprep.subr.mxu1 %v9079_v36 }
 0xa95   :  { %v4104_v41 = vsel %vm413_vm6, %v4086_v14, %v9453_v28  ;;  %4441 = vmatpush1.msra.mxu0 %v8846_v13  ;;  %4504 = vmatpush1.msra.mxu1 %v9083_v16 }
 0xa96   :  { %4505 = vmatprep.subr.mxu1 %v4104_v41 }
 0xa97   :  { %v9462_v32 = vpop.permute.xlu0 %3915  ;;  %4506 = vmatpush1.msra.mxu1 %v4106_v20 }
 0xa98   :  { %v3930_v59 = vsel %vm10269_vm5, %v9462_v32, %v3892_v8  ;;  %v4008_v58 = vpop.permute.xlu1 %4007  ;;  %4507 = vmatprep.subr.mxu1 %v9104_v57  ;;  %vm10280_vm5 = vmmov %vm10275_vm4 }
 0xa99   :  { %v4038_v51 = vsel %vm10270_vm11, %v4008_v58, %v4012_v63  ;;  %v4040_v36 = vsel %vm10271_vm12, %v4004_v43, %v4008_v58  ;;  %4508 = vmatpush1.msra.mxu1 %v9066_v23  ;;  %vm10281_vm11 = vmmov %vm10276_vm9 }
 0xa9a   :  { %4442 = vmatprep.subr.mxu0 %v4040_v36  ;;  %4509 = vmatprep.subr.mxu1 %v8883_v38  ;;  %vm10282_vm12 = vmmov %vm10275_vm4 }
 0xa9b   :  { %v3836_v13 = vpop.permute.xlu0 %3835  ;;  %4443 = vmatpush1.msra.mxu0 %v4042_v45  ;;  %4510 = vmatpush1.msra.mxu1 %v8880_v4 }
 0xa9c   :  { %v3952_v16 = vpop.permute.xlu1 %3951  ;;  %4444 = vmatprep.subr.mxu0 %v9112_v26  ;;  %4511 = vmatprep.subr.mxu1 %v8855_v48 }
 0xa9d   :  { %v3982_v57 = vsel %vm10272_vm13, %v3952_v16, %v3956_v55  ;;  %v3984_v17 = vsel %vm10273_vm2, %v3948_v61, %v3952_v16  ;;  %4445 = vmatpush1.msra.mxu0 %v9125_v19  ;;  %4512 = vmatpush1.msra.mxu1 %v8852_v62  ;;  %vm10285_vm13 = vcmask 130048   ;;  %vm10292_vm2 = vmmov %vm10274_vm3  ;;  %v10294_v16 = vld [vmem:[#allocation26_spill] sm:$0xff] }
 0xa9e   :  { %4446 = vmatprep.subr.mxu0 %v3984_v17 }
 0xa9f   :  { %v3900_v38 = vpop.permute.xlu0 %3899  ;;  %4447 = vmatpush1.msra.mxu0 %v3986_v25 }
 0xaa0   :  { %v9483_v23 = vpop.permute.xlu1 %4015  ;;  %4448 = vmatprep.subr.mxu0 %v9135_v11 }
 0xaa1   :  { %v4036_v48 = vsel %vm10274_vm3, %v4012_v63, %v9483_v23  ;;  %4449 = vmatpush1.msra.mxu0 %v9163_v31  ;;  %vm10298_vm3 = vmmov %vm10275_vm4 }
 0xaa2   :  { %4513 = vmatprep.subr.mxu1 %v4036_v48  ;;  %v10299_v48 = vld [vmem:[#allocation28_spill] sm:$0xff] }
 0xaa3   :  { %v9490_v4 = vpop.permute.xlu0 %3859  ;;  %4514 = vmatpush1.msra.mxu1 %v4038_v51 }
 0xaa4   :  { %v3874_v62 = vsel %vm10275_vm4, %v9490_v4, %v3836_v13  ;;  %v3896_v26 = vpop.permute.xlu1 %3895  ;;  %4515 = vmatprep.subr.mxu1 %v9146_v40 }
 0xaa5   :  { %3882 = vst [vmem:[#allocation2 + $0x38] sm:$0xff] %v3874_v62  ;;  %v3926_v19 = vsel %vm10276_vm9, %v3896_v26, %v3900_v38  ;;  %v3928_v11 = vsel %vm10277_vm14, %v3892_v8, %v3896_v26  ;;  %4516 = vmatpush1.msra.mxu1 %v9150_v15  ;;  %v10300_v26 = vld [vmem:[#allocation32_spill] sm:$0xff]  ;;  %vm10304_vm14 = vmmov %vm10292_vm2 }
 0xaa6   :  { %4450 = vmatprep.subr.mxu0 %v3928_v11  ;;  %v4358_v11 = vld [vmem:[#allocation2 + $0x1e8] sm:$0xff] }
 0xaa7   :  { %v3844_v31 = vpop.permute.xlu0 %3843  ;;  %4451 = vmatpush1.msra.mxu0 %v3930_v59  ;;  %v10291_v59 = vmov 0.0  }
 0xaa8   :  { %v9501_v43 = vpop.permute.xlu1 %3959  ;;  %4452 = vmatprep.subr.mxu0 %v9171_v29 }
 0xaa9   :  { %v3980_v40 = vsel %vm10278_vm15, %v3956_v55, %v9501_v43  ;;  %4453 = vmatpush1.msra.mxu0 %v9213_v7 }
 0xaaa   :  { %4517 = vmatprep.subr.mxu1 %v3980_v40  ;;  %v4357_v40 = vld [vmem:[#allocation2 + $0x1e0] sm:$0xff] }
 0xaab   :  { %v4246_v63 = vpop.permute.xlu0 %4245  ;;  %4518 = vmatpush1.msra.mxu1 %v3982_v57 }
 0xaac   :  { %v3840_v39 = vpop.permute.xlu1 %3839  ;;  %4519 = vmatprep.subr.mxu1 %v9194_v47 }
 0xaad   :  { %v3870_v15 = vsel %vm10279_vm10, %v3840_v39, %v3844_v31  ;;  %v3872_v60 = vsel %vm10280_vm5, %v3836_v13, %v3840_v39  ;;  %4520 = vmatpush1.msra.mxu1 %v9198_v46  ;;  %v10293_v13 = vld [vmem:[#allocation19_spill] sm:$0xff] }
 0xaae   :  { %3883 = vst [vmem:[#allocation2 + $0x40] sm:$0xff] %v3872_v60  ;;  %3884 = vst [vmem:[#allocation2 + $0x48] sm:$0xff] %v3870_v15  ;;  %4454 = vmatprep.subr.mxu0 %v3872_v60  ;;  %v10305_v60 = vld [vmem:[#allocation64_spill] sm:$0xff] }
 0xaaf   :  { %v9514_v29 = vpop.permute.xlu0 %4241  ;;  %4455 = vmatpush1.msra.mxu0 %v3874_v62  ;;  %v4365_v62 = vld [vmem:[#allocation2 + $0x220] sm:$0xff] }
 0xab0   :  { %v4278_v7 = vsel %vm656_vm1, %v9514_v29, %v4246_v63  ;;  %v9519_v14 = vpop.permute.xlu1 %3903  ;;  %4456 = vmatprep.subr.mxu0 %v9228_v30 }
 0xab1   :  { %v3924_v47 = vsel %vm10281_vm11, %v3900_v38, %v9519_v14  ;;  %4457 = vmatpush1.msra.mxu0 %v9262_v12 }
 0xab2   :  { %4521 = vmatprep.subr.mxu1 %v3924_v47 }
 0xab3   :  { %v4206_v46 = vpop.permute.xlu0 %4205  ;;  %4522 = vmatpush1.msra.mxu1 %v3926_v19 }
 0xab4   :  { %v4214_v35 = vsel %vm575_vm8, %v9426_v42, %v4206_v46  ;;  %v9529_v6 = vpop.permute.xlu1 %3847  ;;  %4523 = vmatprep.subr.mxu1 %v9242_v54 }
 0xab5   :  { %v3868_v30 = vsel %vm10282_vm12, %v3844_v31, %v9529_v6  ;;  %4524 = vmatpush1.msra.mxu1 %v9246_v9  ;;  %v9545_v9 = vld [vmem:[%s9706_s5] sm:$0xff] }
 0xab6   :  { %3885 = vst [vmem:[#allocation2 + $0x50] sm:$0xff] %v3868_v30  ;;  %4525 = vmatprep.subr.mxu1 %v3868_v30 }
 0xab7   :  { %v4254_v12 = vpop.permute.xlu0 %4253  ;;  %4526 = vmatpush1.msra.mxu1 %v3870_v15 }
 0xab8   :  { %v4250_v52 = vpop.permute.xlu1 %4249  ;;  %4527 = vmatprep.subr.mxu1 %v9277_v53 }
 0xab9   :  { %v4274_v42 = vsel %vm656_vm1, %v4250_v52, %v4254_v12  ;;  %v4276_v45 = vsel %vm656_vm1, %v4246_v63, %v4250_v52  ;;  %4528 = vmatpush1.msra.mxu1 %v9282_v56  ;;  %v10302_v63 = vld [vmem:[#allocation36_spill] sm:$0xff] }
 0xaba   :  { %4486 = vmatprep.subr.mxu0 %v4276_v45  ;;  %v10310_v52 = vld [vmem:[#allocation20_spill] sm:$0xff] }
 0xabb   :  { %v4150_v54 = vpop.permute.xlu0 %4149  ;;  %4487 = vmatpush2.msra.mxu0 %v4278_v7 }
 0xabc   :  { %v4158_v53 = vsel %vm494_vm7, %v9444_v49, %v4150_v54  ;;  %v4210_v2 = vpop.permute.xlu1 %4209  ;;  %4488 = vmatprep.subr.mxu0 %v9297_v10 }
 0xabd   :  { %v4212_v18 = vsel %vm575_vm8, %v4206_v46, %v4210_v2  ;;  %v4224_v56 = vsel %vm575_vm8, %v4210_v2, %v9303_v1  ;;  %4489 = vmatpush2.msra.mxu0 %v10283_v37  ;;  %vm10288_vm8 = vmmov %vm10275_vm4 }
 0xabe   :  { %4568 = vmatprep.subr.mxu0 %v4212_v18  ;;  %4491 = vmatmul.mubr.f32.vlgmr.msra.gmra.mxu0 %v9545_v9  ;;  %v10314_v18 = vld [vmem:[#allocation24_spill] sm:$0xff] }
 0xabf   :  { %v4094_v61 = vpop.permute.xlu0 %4093  ;;  %4569 = vmatpush1.msra.mxu0 %v4214_v35  ;;  %4798 = vmatprep.mubr.msk.f32.mxu0 %vm10285_vm13, %v10284_v0  ;;  %v10307_v35 = vld [vmem:[#allocation63_spill] sm:$0xff]  ;;  %vm10318_vm13 = vmmov %vm10298_vm3 }
 0xac0   :  { %v4102_v10 = vsel %vm413_vm6, %v9453_v28, %v4094_v61  ;;  %v9563_v25 = vpop.permute.xlu1 %4257  ;;  %4570 = vmatprep.subr.mxu0 %v9318_v44  ;;  %v10290_v28 = vld [vmem:[#allocation18_spill] sm:$0xff] }
 0xac1   :  { %v4272_v1 = vsel %vm656_vm1, %v4254_v12, %v9563_v25  ;;  %4571 = vmatpush1.msra.mxu0 %v10286_v50 }
 0xac2   :  { %4557 = vmatprep.subr.mxu1 %v4272_v1 }
 0xac3   :  { %v3850_v20 = vpop.permute.xlu0 %3849  ;;  %4558 = vmatpush2.msra.mxu1 %v4274_v42  ;;  %v4359_v42 = vld [vmem:[#allocation2 + $0x1f0] sm:$0xff] }
 0xac4   :  { %v9573_v8 = vsel %vm10288_vm8, %v10287_v21, %v3850_v20  ;;  %v4154_v49 = vpop.permute.xlu1 %4153  ;;  %4559 = vmatprep.subr.mxu1 %v9334_v22  ;;  %vm10319_vm8 = vmmov %vm10298_vm3  ;;  %v10321_v21 = vld [vmem:[#allocation31_spill] sm:$0xff] }
 0xac5   :  { %3879 = vst [vmem:[#allocation2 + $0x20] sm:$0xff] %v9573_v8  ;;  %v4156_v44 = vsel %vm494_vm7, %v4150_v54, %v4154_v49  ;;  %v4168_v55 = vsel %vm494_vm7, %v4154_v49, %v10289_v5  ;;  %4560 = vmatpush2.msra.mxu1 %v10290_v28  ;;  %vm10295_vm7 = vmmov %vm10278_vm15  ;;  %v10322_v5 = vld [vmem:[#allocation3_spill] sm:$0xff] }
 0xac6   :  { %4562 = vmatmul.mubr.f32.vlgmr.msra.gmra.mxu1 %v9545_v9  ;;  %4572 = vmatprep.subr.mxu0 %v4156_v44  ;;  %vm10306_vm15 = vmmov %vm10298_vm3 }
 0xac7   :  { %v4020_v41 = vpop.permute.xlu0 %4019  ;;  %4639 = vmatprep.subr.mxu1 %v10291_v59  ;;  %4573 = vmatpush1.msra.mxu0 %v4158_v53  ;;  %vm10308_vm10 = vmmov %vm10295_vm7 }
 0xac8   :  { %v4034_v22 = vsel %vm10292_vm2, %v9483_v23, %v4020_v41  ;;  %v4098_v58 = vpop.permute.xlu1 %4097  ;;  %4640 = vmatpush1.msra.mxu1 %v4224_v56  ;;  %4574 = vmatprep.subr.mxu0 %v9347_v33  ;;  %vm10309_vm5 = vmmov %vm10295_vm7  ;;  %v10315_v56 = vld [vmem:[#allocation30_spill] sm:$0xff] }
 0xac9   :  { %v4100_v51 = vsel %vm413_vm6, %v4094_v61, %v4098_v58  ;;  %v4112_v36 = vsel %vm413_vm6, %v4098_v58, %v9385_v27  ;;  %4641 = vmatprep.subr.mxu1 %v10291_v59  ;;  %4575 = vmatpush1.msra.mxu0 %v10293_v13  ;;  %v10296_v27 = vld [vmem:[#allocation23_spill] sm:$0xff]  ;;  %vm10297_vm6 = vmmov %vm10275_vm4 }
 0xaca   :  { %4642 = vmatpush1.msra.mxu1 %v10294_v16  ;;  %4576 = vmatprep.subr.mxu0 %v4100_v51  ;;  %vm10301_vm4 = vmmov %vm10276_vm9  ;;  %v10316_v61 = vld [vmem:[#allocation27_spill] sm:$0xff] }
 0xacb   :  { %v3964_v57 = vpop.permute.xlu0 %3963  ;;  %4643 = vmatprep.subr.mxu1 %v10291_v59  ;;  %4577 = vmatpush1.msra.mxu0 %v4102_v10  ;;  %vm10303_vm9 = vmmov %vm10292_vm2  ;;  %vm10323_vm2 = vcmask 130048  }
 0xacc   :  { %v3978_v33 = vsel %vm10295_vm7, %v9501_v43, %v3964_v57  ;;  %v3854_v17 = vpop.permute.xlu1 %3853  ;;  %4644 = vmatpush1.msra.mxu1 %v4168_v55  ;;  %4578 = vmatprep.subr.mxu0 %v9365_v3  ;;  %v4364_v3 = vld [vmem:[#allocation2 + $0x218] sm:$0xff]  ;;  %vm10312_vm11 = vmmov %vm10301_vm4 }
 0xacd   :  { %v9605_v38 = vsel %vm10297_vm6, %v3854_v17, %v10296_v27  ;;  %v9609_v23 = vsel %vm10298_vm3, %v3850_v20, %v3854_v17  ;;  %4645 = vmatprep.subr.mxu1 %v10291_v59  ;;  %4579 = vmatpush1.msra.mxu0 %v10299_v48  ;;  %vm10313_vm12 = vmmov %vm10301_vm4  ;;  %v10320_v20 = vld [vmem:[#allocation25_spill] sm:$0xff] }
 0xace   :  { %3880 = vst [vmem:[#allocation2 + $0x28] sm:$0xff] %v9609_v23  ;;  %3881 = vst [vmem:[#allocation2 + $0x30] sm:$0xff] %v9605_v38  ;;  %4646 = vmatpush1.msra.mxu1 %v10300_v26  ;;  %4580 = vmatprep.subr.mxu0 %v4365_v62 }
 0xacf   :  { %v3908_v19 = vpop.permute.xlu0 %3907  ;;  %4647 = vmatprep.subr.mxu1 %v10291_v59  ;;  %4581 = vmatpush1.msra.mxu0 %v4364_v3 }
 0xad0   :  { %v3922_v31 = vsel %vm10301_vm4, %v9519_v14, %v3908_v19  ;;  %v4024_v43 = vpop.permute.xlu1 %4023  ;;  %4648 = vmatpush1.msra.mxu1 %v4112_v36  ;;  %4582 = vmatprep.subr.mxu0 %v4358_v11  ;;  %v4366_v14 = vld [vmem:[#allocation2 + $0x228] sm:$0xff] }
 0xad1   :  { %v4030_v39 = vsel %vm10303_vm9, %v4024_v43, %v10302_v63  ;;  %v4032_v15 = vsel %vm10304_vm14, %v4020_v41, %v4024_v43  ;;  %4649 = vmatprep.subr.mxu1 %v10291_v59  ;;  %4583 = vmatpush1.msra.mxu0 %v4357_v40  ;;  %v10324_v41 = vld [vmem:[#allocation35_spill] sm:$0xff] }
 0xad2   :  { %4650 = vmatpush1.msra.mxu1 %v10305_v60  ;;  %4584 = vmatprep.subr.mxu0 %v4032_v15 }
 0xad3   :  { %v3852_v7 = vpop.permute.xlu0 %3851  ;;  %4651 = vmatprep.subr.mxu1 %v10291_v59  ;;  %4585 = vmatpush1.msra.mxu0 %v4034_v22 }
 0xad4   :  { %v3866_v47 = vsel %vm10306_vm15, %v9529_v6, %v3852_v7  ;;  %v3968_v46 = vpop.permute.xlu1 %3967  ;;  %4652 = vmatpush1.msra.mxu1 %v4366_v14  ;;  %4586 = vmatprep.subr.mxu0 %v10307_v35 }
 0xad5   :  { %3886 = vst [vmem:[#allocation2 + $0x58] sm:$0xff] %v3866_v47  ;;  %v3974_v30 = vsel %vm10308_vm10, %v3968_v46, %v9433_v34  ;;  %v3976_v12 = vsel %vm10309_vm5, %v3964_v57, %v3968_v46  ;;  %4653 = vmatprep.subr.mxu1 %v10291_v59  ;;  %4587 = vmatpush1.msra.mxu0 %v10310_v52  ;;  %v10311_v34 = vld [vmem:[#allocation33_spill] sm:$0xff] }
 0xad6   :  { %4654 = vmatpush1.msra.mxu1 %v4359_v42  ;;  %4588 = vmatprep.subr.mxu0 %v3976_v12 }
 0xad7   :  { %v4262_v6 = vpop.permute.xlu0 %4261  ;;  %4655 = vmatprep.subr.mxu1 %v10291_v59  ;;  %4589 = vmatpush1.msra.mxu0 %v3978_v33 }
 0xad8   :  { %v4270_v45 = vsel %vm656_vm1, %v9563_v25, %v4262_v6  ;;  %v3912_v54 = vpop.permute.xlu1 %3911  ;;  %4656 = vmatpush1.msra.mxu1 %v4030_v39  ;;  %4590 = vmatprep.subr.mxu0 %v10311_v34 }
 0xad9   :  { %v3918_v53 = vsel %vm10312_vm11, %v3912_v54, %v9462_v32  ;;  %v3920_v2 = vsel %vm10313_vm12, %v3908_v19, %v3912_v54  ;;  %4657 = vmatprep.subr.mxu1 %v10291_v59  ;;  %4591 = vmatpush1.msra.mxu0 %v10314_v18  ;;  %v10317_v32 = vld [vmem:[#allocation34_spill] sm:$0xff] }
 0xada   :  { %4658 = vmatpush1.msra.mxu1 %v10315_v56  ;;  %4592 = vmatprep.subr.mxu0 %v3920_v2 }
 0xadb   :  { %v4260_v37 = vpop.permute.xlu0 %4259  ;;  %4659 = vmatprep.subr.mxu1 %v10291_v59  ;;  %4593 = vmatpush1.msra.mxu0 %v3922_v31 }
 0xadc   :  { %v4269_v10 = vsel %vm656_vm1, %v10316_v61, %v4260_v37  ;;  %v3856_v25 = vpop.permute.xlu1 %3855  ;;  %4660 = vmatpush1.msra.mxu1 %v3974_v30  ;;  %4594 = vmatprep.subr.mxu0 %v10317_v32 }
 0xadd   :  { %v3862_v1 = vsel %vm10318_vm13, %v3856_v25, %v9490_v4  ;;  %v3864_v50 = vsel %vm10319_vm8, %v3852_v7, %v3856_v25  ;;  %4661 = vmatprep.subr.mxu1 %v10291_v59  ;;  %4595 = vmatpush1.msra.mxu0 %v10320_v20 }
 0xade   :  { %3887 = vst [vmem:[#allocation2 + $0x60] sm:$0xff] %v3864_v50  ;;  %3888 = vst [vmem:[#allocation2 + $0x68] sm:$0xff] %v3862_v1  ;;  %4662 = vmatpush1.msra.mxu1 %v10321_v21  ;;  %4596 = vmatprep.subr.mxu0 %v3864_v50 }
 0xadf   :  { %4663 = vmatprep.subr.mxu1 %v10291_v59  ;;  %4597 = vmatpush1.msra.mxu0 %v3866_v47 }
 0xae0   :  { %v4266_v49 = vpop.permute.xlu1 %4265  ;;  %4664 = vmatpush1.msra.mxu1 %v3918_v53  ;;  %4598 = vmatprep.subr.mxu0 %v9609_v23 }
 0xae1   :  { %v4268_v4 = vsel %vm656_vm1, %v4262_v6, %v4266_v49  ;;  %v4280_v44 = vsel %vm656_vm1, %v4266_v49, %v9514_v29  ;;  %4665 = vmatprep.subr.mxu1 %v10291_v59  ;;  %4599 = vmatpush1.msra.mxu0 %v9573_v8 }
 0xae2   :  { %4666 = vmatpush1.msra.mxu1 %v10322_v5  ;;  %4628 = vmatprep.subr.mxu0 %v4268_v4 }
 0xae3   :  { %4667 = vmatprep.subr.mxu1 %v10291_v59  ;;  %4629 = vmatpush2.msra.mxu0 %v4270_v45 }
 0xae4   :  { %v4264_v55 = vpop.permute.xlu1 %4263  ;;  %4668 = vmatpush1.msra.mxu1 %v3862_v1  ;;  %4799 = vmatprep.mubr.msk.f32.mxu1 %vm10323_vm2, %v10284_v0 }
 0xae5   :  { %v4267_v28 = vsel %vm656_vm1, %v4260_v37, %v4264_v55  ;;  %v4279_v29 = vsel %vm656_vm1, %v4264_v55, %v10324_v41  ;;  %4669 = vmatprep.subr.mxu1 %v10291_v59 }
 0xae6   :  { %4670 = vmatpush1.msra.mxu1 %v9605_v38  ;;  %4630 = vmatprep.subr.mxu0 %v4267_v28  ;;  %v10325_v38 = vld [vmem:[#allocation6_spill] sm:$0xff] }
 0xae7   :  { %4699 = vmatprep.subr.mxu1 %v10291_v59  ;;  %4631 = vmatpush2.msra.mxu0 %v4269_v10 }
 0xae8   :  { %4700 = vmatpush2.msra.mxu1 %v4280_v44  ;;  %4633 = vmatmul.mubr.f32.vlgmr.msra.gmra.mxu0 %v9545_v9  ;;  %v4713_v22 = vpop.permute.xlu0 %4712 }
 0xae9   :  { %4701 = vmatprep.subr.mxu1 %v10291_v59 }
 0xaea   :  { %4702 = vmatpush2.msra.mxu1 %v4279_v29 }
 0xaeb   :  { %4704 = vmatmul.mubr.f32.vlgmr.msra.gmra.mxu1 %v9545_v9 }
 0xb7e   :  { %v4492_v8 = vpop.f32.mrf.mxu0 }
 0xb7f   :  { %v4715_v13 = vadd.f32 %v4713_v22, %v4492_v8 }
 0xb80   :  { %v4494_v58 = vpop.f32.mrf.mxu0 }
 0xb81   :  { %v4716_v16 = vadd.f32 %v4713_v22, %v4494_v58 }
 0xb83   :  { %v4729_v17 = vcombine.low %v4715_v13, %v4716_v16 }
 0xb85   :  { %v4738_v9 = vrot.slane %v4729_v17, %v10325_v38 }
 0xb86   :  { %v4563_v0 = vpop.f32.mrf.mxu1 }
 0xb87   :  { %v4717_v51 = vadd.f32 %v4713_v22, %v4563_v0 }
 0xb88   :  { %v4565_v24 = vpop.f32.mrf.mxu1 }
 0xb89   :  { %v4718_v36 = vadd.f32 %v4713_v22, %v4565_v24 }
 0xb8b   :  { %v4730_v57 = vcombine.low %v4717_v51, %v4718_v36 }
 0xb8d   :  { %v4745_v23 = vrot.slane %v4730_v57, %v10325_v38 }
 0xb8f   :  { %v4760_v11 = vcombine.low %v4738_v9, %v4745_v23 }
 0xb91   :  { %v4768_v63 = vrot.slane %v4760_v11, %v10325_v38 }
 0xba8   :  { %v4634_v33 = vpop.f32.mrf.mxu0 }
 0xba9   :  { %v4719_v48 = vadd.f32 %v4713_v22, %v4634_v33 }
 0xbaa   :  { %v4636_v27 = vpop.f32.mrf.mxu0 }
 0xbab   :  { %v4720_v59 = vadd.f32 %v4713_v22, %v4636_v27  ;;  %v4705_v62 = vpop.f32.mrf.mxu1 }
 0xbac   :  { %v4721_v26 = vadd.f32 %v4713_v22, %v4705_v62 }
 0xbad   :  { %v4731_v3 = vcombine.low %v4719_v48, %v4720_v59  ;;  %v4707_v19 = vpop.f32.mrf.mxu1 }
 0xbae   :  { %v4759_v43 = vrot.slane %v4721_v26, %v10325_v38 }
 0xbaf   :  { %v4752_v31 = vrot.slane %v4731_v3, %v10325_v38 }
 0xbb1   :  { %v4761_v40 = vcombine.low %v4752_v31, %v4759_v43 }
 0xbb3   :  { %v4775_v39 = vrot.slane %v4761_v40, %v10325_v38 }
 0xbb5   :  { %v4776_v15 = vcombine.low %v4768_v63, %v4775_v39 }
 0xbb7   :  { %4778 = vst.msk [vmem:[%s9707_s7] sm:$0x7f] %vm5593_vm0, %v4776_v15 }

</bundles_post_ra>
